<compile_context>
chip_gen: v5e
topology: v5e:2x2
jax: 0.10.0
libtpu: 0.0.40
codegen_flags: <defaults>
</compile_context>

<pallas_src>
import jax
import jax.numpy as jnp
from jax.experimental import pallas as pl
from jax.experimental.pallas import tpu as pltpu

# ---------------- static configuration (small shapes) ----------------
B = 2                      # batch
X_DIM = 4                  # x_dim
TIME_DIM = 8               # time-embedding dim carried in ts[..., x_dim:]
H_DIM = 32                 # h_dim
N_LAYERS = 2               # LSTM layers
T_TOTAL = 8                # total sequence length
SEQ_LEN = T_TOTAL // 2     # context length
PRED_LEN = T_TOTAL - SEQ_LEN
COND_DIM = H_DIM + TIME_DIM        # diffusion conditioning = [z_emb, time_emb]
DIFF_DIM = 16              # diffusion-step embedding dim
DIFF_STEPS = 10
DENOISE_HID = 64
KLD_WEIGHT = 1.0
REC_WEIGHT = 1.0


def _softplus(x):
    # numerically-stable softplus with only exp/log (clean Mosaic lowering)
    return jnp.maximum(x, 0.0) + jnp.log(1.0 + jnp.exp(-jnp.abs(x)))


# ----------------------------- kernel --------------------------------
def stochdiff_kernel(
    # sequences (whole (T,B,d) blocks, VMEM) + per-step scalars (SMEM)
    x_ref, te_ref, eps_ref, noise_ref, semb_ref, ab_ref,
    # packed parameters (VMEM)
    wxp_ref, bxp_ref,
    wprior_ref, bprior_ref,               # (H, 2H), (1, 2H): [mean | logvar]
    wenc_x_ref, wenc_h_ref, benc_ref,     # (H, 2H), (H, 2H), (1, 2H)
    wzp_ref, bzp_ref,
    wd1x_ref, wd1c_ref, wd1t_ref, wd1s_ref, bd1_ref,
    wd2_ref, bd2_ref,
    wl0x_ref, wl0e_ref, wl0t_ref, wl0h_ref, bl0_ref,   # layer-0 row slabs
    wl1h0_ref, wl1h1_ref, bl1_ref,                     # layer-1 row slabs
    # outputs (written once)
    kld_ref, diff_ref, pred_ref,
):
    f32 = jnp.float32

    def lstm_gates(gates, c_prev):
        # one sigmoid + one tanh over the full (B, 4H) gates, then slice i/f/g/o
        sig = jax.nn.sigmoid(gates)
        tah = jnp.tanh(gates)
        i_g = sig[:, 0:H_DIM]
        f_g = sig[:, H_DIM:2 * H_DIM]
        g_g = tah[:, 2 * H_DIM:3 * H_DIM]
        o_g = sig[:, 3 * H_DIM:4 * H_DIM]
        c_new = f_g * c_prev + i_g * g_g
        h_new = o_g * jnp.tanh(c_new)
        return h_new, c_new

    zeros_h = jnp.zeros((B, H_DIM), f32)
    h = [zeros_h, zeros_h]
    c = [zeros_h, zeros_h]
    emb_store = zeros_h
    kld_acc = jnp.zeros((B, H_DIM), f32)
    diff_acc = jnp.zeros((B, X_DIM), f32)
    pred_acc = jnp.zeros((B, X_DIM), f32)

    for t in range(T_TOTAL):              # fully unrolled, static branches
        is_ctx = t < SEQ_LEN
        x_t = x_ref[t]                    # (B, X_DIM)
        te_t = te_ref[t]                  # (B, TIME_DIM)
        eps_t = eps_ref[t]                # (B, H_DIM)
        noise_t = noise_ref[t]            # (B, X_DIM)
        semb_t = semb_ref[t]              # (B, DIFF_DIM)
        a_t = ab_ref[t, 0]                # scalar (SMEM)
        b_t = ab_ref[t, 1]                # scalar (SMEM)

        hid = h[1] + c[1]                 # h[-1] + c[-1]

        # merged prior mean|logvar: single (B,H) @ (H,2H) matmul
        pm_pl = jnp.dot(hid, wprior_ref[...],
                        preferred_element_type=f32) + bprior_ref[...]
        prior_mean = pm_pl[:, :H_DIM]
        prior_logvar = pm_pl[:, H_DIM:]

        if is_ctx:
            # ---- encoder branch (context phase only) ----
            # TODO(synk): FeatureAttention internals are not provided in the
            # source; approximated by a linear projection x_dim -> h_dim.
            x_proj = jnp.dot(x_t, wxp_ref[...],
                             preferred_element_type=f32) + bxp_ref[...]
            # merged enc mean|logvar; LHS split (x_proj / hid) avoids a concat
            em_el = (jnp.dot(x_proj, wenc_x_ref[...], preferred_element_type=f32)
                     + jnp.dot(hid, wenc_h_ref[...], preferred_element_type=f32)
                     + benc_ref[...])
            enc_mean = em_el[:, :H_DIM]
            enc_logvar = em_el[:, H_DIM:]
            std_enc = jnp.exp(0.5 * enc_logvar)
            z_t = enc_mean + std_enc * eps_t
            emb = _softplus(
                jnp.dot(z_t, wzp_ref[...],
                        preferred_element_type=f32) + bzp_ref[...])
            emb_store = emb
            cond_emb = emb
            # KLD, reusing std_enc^2 = exp(enc_logvar) and exp(-prior_logvar)
            inv_var_pri = jnp.exp(-prior_logvar)
            kld_acc = kld_acc + (
                0.5 * (prior_logvar - enc_logvar)
                + (std_enc * std_enc + (enc_mean - prior_mean) ** 2)
                * (0.5 * inv_var_pri)
                - 0.5)
        else:
            # ---- prior branch (forecast phase only) ----
            std_pri = jnp.exp(0.5 * prior_logvar)
            z_t = prior_mean + std_pri * eps_t
            emb = _softplus(
                jnp.dot(z_t, wzp_ref[...],
                        preferred_element_type=f32) + bzp_ref[...])
            cond_emb = emb_store          # forecast reuses the last enc embedding

        # ---- diffusion log_prob surrogate (pred_type='data') ----
        # TODO(synk): GaussianDiffusion / AttentionNet internals are not
        # provided; implemented as q-sample + 2-layer MLP denoiser with
        # data-prediction MSE loss.  wd1 is pre-split into row slabs so the
        # denoiser input needs no in-kernel concatenation.
        x_tgt = x_ref[t % SEQ_LEN]
        x_noisy = a_t * x_tgt + b_t * noise_t
        dn_h = jax.nn.relu(
            jnp.dot(x_noisy, wd1x_ref[...], preferred_element_type=f32)
            + jnp.dot(cond_emb, wd1c_ref[...], preferred_element_type=f32)
            + jnp.dot(te_t, wd1t_ref[...], preferred_element_type=f32)
            + jnp.dot(semb_t, wd1s_ref[...], preferred_element_type=f32)
            + bd1_ref[...])
        x_pred = jnp.dot(dn_h, wd2_ref[...],
                         preferred_element_type=f32) + bd2_ref[...]
        sq = (x_pred - x_tgt) ** 2
        if is_ctx:
            diff_acc = diff_acc + sq
        else:
            pred_acc = pred_acc + sq

        # ---- 2-layer LSTM step (gate order i,f,g,o), row-split weights ----
        # TODO(synk): original forecast loop feeds `pred[t]` (indexing a scalar
        # accumulator, not runnable); we feed x at the forecast time step.
        g0 = (jnp.dot(x_t, wl0x_ref[...], preferred_element_type=f32)
              + jnp.dot(emb, wl0e_ref[...], preferred_element_type=f32)
              + jnp.dot(te_t, wl0t_ref[...], preferred_element_type=f32)
              + jnp.dot(h[0], wl0h_ref[...], preferred_element_type=f32)
              + bl0_ref[...])
        h0, c0 = lstm_gates(g0, c[0])
        g1 = (jnp.dot(h0, wl1h0_ref[...], preferred_element_type=f32)
              + jnp.dot(h[1], wl1h1_ref[...], preferred_element_type=f32)
              + bl1_ref[...])
        h1, c1 = lstm_gates(g1, c[1])
        h = [h0, h1]
        c = [c0, c1]

    # single epilogue: one cross-lane reduction per accumulator + one write each
    kld_ref[...] = jnp.sum(kld_acc, keepdims=True) * (1.0 / (B * H_DIM))
    diff_ref[...] = jnp.sum(diff_acc, keepdims=True) * (1.0 / (B * X_DIM))
    pred_ref[...] = jnp.sum(pred_acc, keepdims=True) * (1.0 / (B * X_DIM))


# --------------------------- wrapper / glue ---------------------------
def init_params(key):
    def lin(k, fan_in, fan_out):
        k1, k2 = jax.random.split(k)
        bound = 1.0 / jnp.sqrt(jnp.float32(fan_in))
        w = jax.random.uniform(k1, (fan_in, fan_out), jnp.float32, -bound, bound)
        b = jax.random.uniform(k2, (1, fan_out), jnp.float32, -bound, bound)
        return w, b

    ks = jax.random.split(key, 12)
    wxp, bxp = lin(ks[0], X_DIM, H_DIM)
    wpm, bpm = lin(ks[1], H_DIM, H_DIM)
    wpl, bpl = lin(ks[2], H_DIM, H_DIM)
    wem, bem = lin(ks[3], 2 * H_DIM, H_DIM)
    wel, bel = lin(ks[4], 2 * H_DIM, H_DIM)
    wzp, bzp = lin(ks[5], H_DIM, H_DIM)
    wd1, bd1 = lin(ks[6], X_DIM + COND_DIM + DIFF_DIM, DENOISE_HID)
    wd2, bd2 = lin(ks[7], DENOISE_HID, X_DIM)
    rnn_in_dim = X_DIM + COND_DIM
    wih0, bih0 = lin(ks[8], rnn_in_dim, 4 * H_DIM)
    whh0, bhh0 = lin(ks[9], H_DIM, 4 * H_DIM)
    wih1, bih1 = lin(ks[10], H_DIM, 4 * H_DIM)
    whh1, bhh1 = lin(ks[11], H_DIM, 4 * H_DIM)
    blstm0 = bih0 + bhh0      # combined (b_ih + b_hh), equivalent to PyTorch
    blstm1 = bih1 + bhh1
    return [wxp, bxp, wpm, bpm, wpl, bpl, wem, bem, wel, bel, wzp, bzp,
            wd1, bd1, wd2, bd2, wih0, whh0, blstm0, wih1, whh1, blstm1]


def stochdiff_fore_pallas(params, x_seq, te_seq, eps_seq, noise_seq,
                          semb_seq, a_vec, b_vec):
    (wxp, bxp, wpm, bpm, wpl, bpl, wem, bem, wel, bel, wzp, bzp,
     wd1, bd1, wd2, bd2, wih0, whh0, bl0, wih1, whh1, bl1) = params

    # --- one-time weight packing / splitting (outside the kernel) ---
    wprior = jnp.concatenate([wpm, wpl], axis=1)                  # (H, 2H)
    bprior = jnp.concatenate([bpm, bpl], axis=1)                  # (1, 2H)
    wenc_x = jnp.concatenate([wem[:H_DIM], wel[:H_DIM]], axis=1)  # rows for x_proj
    wenc_h = jnp.concatenate([wem[H_DIM:], wel[H_DIM:]], axis=1)  # rows for hid
    benc = jnp.concatenate([bem, bel], axis=1)                    # (1, 2H)
    # split wd1 rows by dn_in layout [x_noisy(4) | cond_emb(32) | te(8) | semb(16)]
    wd1x = wd1[:X_DIM]
    wd1c = wd1[X_DIM:X_DIM + H_DIM]
    wd1t = wd1[X_DIM + H_DIM:X_DIM + H_DIM + TIME_DIM]
    wd1s = wd1[X_DIM + H_DIM + TIME_DIM:]
    # split LSTM layer-0 W_ih rows by rnn_in layout [x(4) | emb(32) | te(8)]
    wl0x = wih0[:X_DIM]
    wl0e = wih0[X_DIM:X_DIM + H_DIM]
    wl0t = wih0[X_DIM + H_DIM:]
    wl0h = whh0
    wl1h0 = wih1
    wl1h1 = whh1
    ab = jnp.stack([a_vec, b_vec], axis=1).astype(jnp.float32)    # (T, 2) -> SMEM

    kparams = [wxp, bxp, wprior, bprior, wenc_x, wenc_h, benc, wzp, bzp,
               wd1x, wd1c, wd1t, wd1s, bd1, wd2, bd2,
               wl0x, wl0e, wl0t, wl0h, bl0, wl1h0, wl1h1, bl1]

    def vspec():
        return pl.BlockSpec(memory_space=pltpu.MemorySpace.VMEM)

    in_specs = ([vspec() for _ in range(5)]                            # sequences
                + [pl.BlockSpec(memory_space=pltpu.MemorySpace.SMEM)]  # ab scalars
                + [vspec() for _ in kparams])                          # weights

    out_shape = tuple(jax.ShapeDtypeStruct((1, 1), jnp.float32) for _ in range(3))
    out_specs = tuple(vspec() for _ in range(3))

    kld, diff, pred = pl.pallas_call(
        stochdiff_kernel,
        out_shape=out_shape,
        in_specs=in_specs,
        out_specs=out_specs,
        compiler_params=pltpu.CompilerParams(vmem_limit_bytes=32 * 1024 * 1024),
    )(x_seq, te_seq, eps_seq, noise_seq, semb_seq, ab, *kparams)

    kld = kld[0, 0]
    diff = diff[0, 0]
    pred = pred[0, 0]
    loss = (kld * KLD_WEIGHT + diff * REC_WEIGHT) / SEQ_LEN \
        + pred * REC_WEIGHT / PRED_LEN
    return loss, kld, diff, pred


# ----------------------- pure-JAX reference --------------------------
def reference(params, x_seq, te_seq, eps_seq, noise_seq, semb_seq, a_vec, b_vec):
    (wxp, bxp, wpm, bpm, wpl, bpl, wem, bem, wel, bel, wzp, bzp,
     wd1, bd1, wd2, bd2, wih0, whh0, bl0, wih1, whh1, bl1) = params

    def lstm_cell(inp, hp, cp, wih, whh, bias):
        g = inp @ wih + hp @ whh + bias
        i = jax.nn.sigmoid(g[:, :H_DIM])
        f = jax.nn.sigmoid(g[:, H_DIM:2 * H_DIM])
        gg = jnp.tanh(g[:, 2 * H_DIM:3 * H_DIM])
        o = jax.nn.sigmoid(g[:, 3 * H_DIM:])
        cn = f * cp + i * gg
        return o * jnp.tanh(cn), cn

    h = jnp.zeros((N_LAYERS, B, H_DIM), jnp.float32)
    c = jnp.zeros_like(h)
    kld = jnp.float32(0.0)
    diff = jnp.float32(0.0)
    pred = jnp.float32(0.0)
    emb_store = jnp.zeros((B, H_DIM), jnp.float32)

    for t in range(T_TOTAL):
        is_ctx = t < SEQ_LEN
        hid = h[-1] + c[-1]
        prior_mean = hid @ wpm + bpm
        prior_logvar = hid @ wpl + bpl
        if is_ctx:
            x_proj = x_seq[t] @ wxp + bxp
            xh = jnp.concatenate([x_proj, hid], -1)
            enc_mean = xh @ wem + bem
            enc_logvar = xh @ wel + bel
            z = enc_mean + jnp.exp(0.5 * enc_logvar) * eps_seq[t]
            emb = _softplus(z @ wzp + bzp)
            emb_store = emb
            kld = kld + jnp.mean(
                (prior_logvar - enc_logvar) / 2
                + (jnp.exp(enc_logvar) + (enc_mean - prior_mean) ** 2)
                / (2 * jnp.exp(prior_logvar)) - 0.5)
            cond_emb = emb
            x_tgt = x_seq[t]
        else:
            z = prior_mean + jnp.exp(0.5 * prior_logvar) * eps_seq[t]
            emb = _softplus(z @ wzp + bzp)
            cond_emb = emb_store
            x_tgt = x_seq[t - SEQ_LEN]
        x_noisy = a_vec[t] * x_tgt + b_vec[t] * noise_seq[t]
        cond = jnp.concatenate([cond_emb, te_seq[t]], -1)
        dn_in = jnp.concatenate([x_noisy, cond, semb_seq[t]], -1)
        x_pred = jax.nn.relu(dn_in @ wd1 + bd1) @ wd2 + bd2
        d = jnp.mean((x_pred - x_tgt) ** 2)
        if is_ctx:
            diff = diff + d
        else:
            pred = pred + d
        rnn_in = jnp.concatenate([x_seq[t], emb, te_seq[t]], -1)
        h0, c0 = lstm_cell(rnn_in, h[0], c[0], wih0, whh0, bl0)
        h1, c1 = lstm_cell(h0, h[1], c[1], wih1, whh1, bl1)
        h = jnp.stack([h0, h1])
        c = jnp.stack([c0, c1])
    return kld, diff, pred


# ------------------------------ main ----------------------------------
if __name__ == "__main__":
    key = jax.random.PRNGKey(0)
    kp, kts, keps, knoise, kstep = jax.random.split(key, 5)

    params = init_params(kp)

    # ts : (batch, T, x_dim + time_dim), as in the PyTorch forward
    ts = jax.random.normal(kts, (B, T_TOTAL, X_DIM + TIME_DIM), jnp.float32)
    x = ts[:, :, :X_DIM]
    time_emb = ts[:, :, X_DIM:]
    x_seq = jnp.transpose(x, (1, 0, 2))          # (T, B, X_DIM)
    te_seq = jnp.transpose(time_emb, (1, 0, 2))  # (T, B, TIME_DIM)

    eps_seq = jax.random.normal(keps, (T_TOTAL, B, H_DIM), jnp.float32)
    noise_seq = jax.random.normal(knoise, (T_TOTAL, B, X_DIM), jnp.float32)

    # diffusion schedule + per-step random diffusion timestep
    betas = jnp.linspace(1e-4, 0.1, DIFF_STEPS)
    alphas_cumprod = jnp.cumprod(1.0 - betas)
    step_idx = jax.random.randint(kstep, (T_TOTAL,), 0, DIFF_STEPS)
    a_vec = jnp.sqrt(alphas_cumprod[step_idx]).astype(jnp.float32)        # (T,)
    b_vec = jnp.sqrt(1.0 - alphas_cumprod[step_idx]).astype(jnp.float32)  # (T,)

    # sinusoidal diffusion-step embedding, broadcast over batch
    half = DIFF_DIM // 2
    freqs = jnp.exp(-jnp.log(10000.0) * jnp.arange(half) / (half - 1))
    args = step_idx[:, None].astype(jnp.float32) * freqs[None, :]
    semb = jnp.concatenate([jnp.sin(args), jnp.cos(args)], axis=-1)
    semb_seq = jnp.broadcast_to(semb[:, None, :], (T_TOTAL, B, DIFF_DIM))
    semb_seq = jnp.asarray(semb_seq, jnp.float32)

    run = jax.jit(stochdiff_fore_pallas)
    loss, kld, diff, pred = run(params, x_seq, te_seq, eps_seq, noise_seq,
                                semb_seq, a_vec, b_vec)
    jax.block_until_ready((loss, kld, diff, pred))

    # sanity check against a pure-JAX reference of the same math
    kld_r, diff_r, pred_r = reference(params, x_seq, te_seq, eps_seq,
                                      noise_seq, semb_seq, a_vec, b_vec)
    ok = (jnp.allclose(kld, kld_r, rtol=1e-3, atol=1e-3)
          and jnp.allclose(diff, diff_r, rtol=1e-3, atol=1e-3)
          and jnp.allclose(pred, pred_r, rtol=1e-3, atol=1e-3))
    assert bool(ok), (kld, kld_r, diff, diff_r, pred, pred_r)

    print("KERNEL_OK")
</pallas_src>

<mosaic_0001>
module attributes {stable_mosaic.version = 11 : i64} {
  func.func @stochdiff_kernel(%arg0: memref<8x2x4xf32, #tpu.memory_space<vmem>>, %arg1: memref<8x2x8xf32, #tpu.memory_space<vmem>>, %arg2: memref<8x2x32xf32, #tpu.memory_space<vmem>>, %arg3: memref<8x2x4xf32, #tpu.memory_space<vmem>>, %arg4: memref<8x2x16xf32, #tpu.memory_space<vmem>>, %arg5: memref<8x2xf32, #tpu.memory_space<smem>>, %arg6: memref<4x32xf32, #tpu.memory_space<vmem>>, %arg7: memref<1x32xf32, #tpu.memory_space<vmem>>, %arg8: memref<32x64xf32, #tpu.memory_space<vmem>>, %arg9: memref<1x64xf32, #tpu.memory_space<vmem>>, %arg10: memref<32x64xf32, #tpu.memory_space<vmem>>, %arg11: memref<32x64xf32, #tpu.memory_space<vmem>>, %arg12: memref<1x64xf32, #tpu.memory_space<vmem>>, %arg13: memref<32x32xf32, #tpu.memory_space<vmem>>, %arg14: memref<1x32xf32, #tpu.memory_space<vmem>>, %arg15: memref<4x64xf32, #tpu.memory_space<vmem>>, %arg16: memref<32x64xf32, #tpu.memory_space<vmem>>, %arg17: memref<8x64xf32, #tpu.memory_space<vmem>>, %arg18: memref<16x64xf32, #tpu.memory_space<vmem>>, %arg19: memref<1x64xf32, #tpu.memory_space<vmem>>, %arg20: memref<64x4xf32, #tpu.memory_space<vmem>>, %arg21: memref<1x4xf32, #tpu.memory_space<vmem>>, %arg22: memref<4x128xf32, #tpu.memory_space<vmem>>, %arg23: memref<32x128xf32, #tpu.memory_space<vmem>>, %arg24: memref<8x128xf32, #tpu.memory_space<vmem>>, %arg25: memref<32x128xf32, #tpu.memory_space<vmem>>, %arg26: memref<1x128xf32, #tpu.memory_space<vmem>>, %arg27: memref<32x128xf32, #tpu.memory_space<vmem>>, %arg28: memref<32x128xf32, #tpu.memory_space<vmem>>, %arg29: memref<1x128xf32, #tpu.memory_space<vmem>>, %arg30: memref<1x1xf32, #tpu.memory_space<vmem>>, %arg31: memref<1x1xf32, #tpu.memory_space<vmem>>, %arg32: memref<1x1xf32, #tpu.memory_space<vmem>>) attributes {dimension_semantics = [], scalar_prefetch = 0 : i64, scratch_operands = 0 : i64, tpu.core_type = #tpu.core_type<tc>} {
    %cst = arith.constant 0.000000e+00 : f32
    %0 = vector.broadcast %cst : f32 to vector<2x32xf32>
    %cst_0 = arith.constant 0.000000e+00 : f32
    %1 = vector.broadcast %cst_0 : f32 to vector<2x32xf32>
    %cst_1 = arith.constant 0.000000e+00 : f32
    %2 = vector.broadcast %cst_1 : f32 to vector<2x4xf32>
    %cst_2 = arith.constant 0.000000e+00 : f32
    %3 = vector.broadcast %cst_2 : f32 to vector<2x4xf32>
    %c0 = arith.constant 0 : index
    %c0_3 = arith.constant 0 : index
    %c0_4 = arith.constant 0 : index
    %4 = vector.load %arg0[%c0, %c0_3, %c0_4] : memref<8x2x4xf32, #tpu.memory_space<vmem>>, vector<1x2x4xf32>
    %5 = vector.shape_cast %4 : vector<1x2x4xf32> to vector<2x4xf32>
    %c0_5 = arith.constant 0 : index
    %c0_6 = arith.constant 0 : index
    %c0_7 = arith.constant 0 : index
    %6 = vector.load %arg1[%c0_5, %c0_6, %c0_7] : memref<8x2x8xf32, #tpu.memory_space<vmem>>, vector<1x2x8xf32>
    %7 = vector.shape_cast %6 : vector<1x2x8xf32> to vector<2x8xf32>
    %c0_8 = arith.constant 0 : index
    %c0_9 = arith.constant 0 : index
    %c0_10 = arith.constant 0 : index
    %8 = vector.load %arg2[%c0_8, %c0_9, %c0_10] : memref<8x2x32xf32, #tpu.memory_space<vmem>>, vector<1x2x32xf32>
    %9 = vector.shape_cast %8 : vector<1x2x32xf32> to vector<2x32xf32>
    %c0_11 = arith.constant 0 : index
    %c0_12 = arith.constant 0 : index
    %c0_13 = arith.constant 0 : index
    %10 = vector.load %arg3[%c0_11, %c0_12, %c0_13] : memref<8x2x4xf32, #tpu.memory_space<vmem>>, vector<1x2x4xf32>
    %11 = vector.shape_cast %10 : vector<1x2x4xf32> to vector<2x4xf32>
    %c0_14 = arith.constant 0 : index
    %c0_15 = arith.constant 0 : index
    %c0_16 = arith.constant 0 : index
    %12 = vector.load %arg4[%c0_14, %c0_15, %c0_16] : memref<8x2x16xf32, #tpu.memory_space<vmem>>, vector<1x2x16xf32>
    %13 = vector.shape_cast %12 : vector<1x2x16xf32> to vector<2x16xf32>
    %c0_17 = arith.constant 0 : index
    %c0_18 = arith.constant 0 : index
    %14 = memref.load %arg5[%c0_17, %c0_18] : memref<8x2xf32, #tpu.memory_space<smem>>
    %c0_19 = arith.constant 0 : index
    %c1 = arith.constant 1 : index
    %15 = memref.load %arg5[%c0_19, %c1] : memref<8x2xf32, #tpu.memory_space<smem>>
    %16 = arith.addf %0, %0 : vector<2x32xf32>
    %c0_20 = arith.constant 0 : index
    %c0_21 = arith.constant 0 : index
    %17 = vector.load %arg8[%c0_20, %c0_21] : memref<32x64xf32, #tpu.memory_space<vmem>>, vector<32x64xf32>
    %cst_22 = arith.constant dense<0.000000e+00> : vector<2x64xf32>
    %18 = tpu.matmul %16, %17, %cst_22 {dimension_numbers = #tpu.dot_dimension_numbers<[1], [0], [0], [1], [0, 0, 1, 1], [], []>} : vector<2x32xf32>, vector<32x64xf32>, vector<2x64xf32> -> vector<2x64xf32>
    %c0_23 = arith.constant 0 : index
    %c0_24 = arith.constant 0 : index
    %19 = vector.load %arg9[%c0_23, %c0_24] : memref<1x64xf32, #tpu.memory_space<vmem>>, vector<1x64xf32>
    %20 = vector.broadcast %19 : vector<1x64xf32> to vector<2x64xf32>
    %21 = arith.addf %18, %20 : vector<2x64xf32>
    %22 = vector.extract_strided_slice %21 {offsets = [0, 0], sizes = [2, 32], strides = [1, 1]} : vector<2x64xf32> to vector<2x32xf32>
    %23 = vector.extract_strided_slice %21 {offsets = [0, 32], sizes = [2, 32], strides = [1, 1]} : vector<2x64xf32> to vector<2x32xf32>
    %c0_25 = arith.constant 0 : index
    %c0_26 = arith.constant 0 : index
    %24 = vector.load %arg6[%c0_25, %c0_26] : memref<4x32xf32, #tpu.memory_space<vmem>>, vector<4x32xf32>
    %cst_27 = arith.constant dense<0.000000e+00> : vector<2x32xf32>
    %25 = tpu.matmul %5, %24, %cst_27 {dimension_numbers = #tpu.dot_dimension_numbers<[1], [0], [0], [1], [0, 0, 1, 1], [], []>} : vector<2x4xf32>, vector<4x32xf32>, vector<2x32xf32> -> vector<2x32xf32>
    %c0_28 = arith.constant 0 : index
    %c0_29 = arith.constant 0 : index
    %26 = vector.load %arg7[%c0_28, %c0_29] : memref<1x32xf32, #tpu.memory_space<vmem>>, vector<1x32xf32>
    %27 = vector.broadcast %26 : vector<1x32xf32> to vector<2x32xf32>
    %28 = arith.addf %25, %27 : vector<2x32xf32>
    %c0_30 = arith.constant 0 : index
    %c0_31 = arith.constant 0 : index
    %29 = vector.load %arg10[%c0_30, %c0_31] : memref<32x64xf32, #tpu.memory_space<vmem>>, vector<32x64xf32>
    %cst_32 = arith.constant dense<0.000000e+00> : vector<2x64xf32>
    %30 = tpu.matmul %28, %29, %cst_32 {dimension_numbers = #tpu.dot_dimension_numbers<[1], [0], [0], [1], [0, 0, 1, 1], [], []>} : vector<2x32xf32>, vector<32x64xf32>, vector<2x64xf32> -> vector<2x64xf32>
    %c0_33 = arith.constant 0 : index
    %c0_34 = arith.constant 0 : index
    %31 = vector.load %arg11[%c0_33, %c0_34] : memref<32x64xf32, #tpu.memory_space<vmem>>, vector<32x64xf32>
    %cst_35 = arith.constant dense<0.000000e+00> : vector<2x64xf32>
    %32 = tpu.matmul %16, %31, %cst_35 {dimension_numbers = #tpu.dot_dimension_numbers<[1], [0], [0], [1], [0, 0, 1, 1], [], []>} : vector<2x32xf32>, vector<32x64xf32>, vector<2x64xf32> -> vector<2x64xf32>
    %33 = arith.addf %30, %32 : vector<2x64xf32>
    %c0_36 = arith.constant 0 : index
    %c0_37 = arith.constant 0 : index
    %34 = vector.load %arg12[%c0_36, %c0_37] : memref<1x64xf32, #tpu.memory_space<vmem>>, vector<1x64xf32>
    %35 = vector.broadcast %34 : vector<1x64xf32> to vector<2x64xf32>
    %36 = arith.addf %33, %35 : vector<2x64xf32>
    %37 = vector.extract_strided_slice %36 {offsets = [0, 0], sizes = [2, 32], strides = [1, 1]} : vector<2x64xf32> to vector<2x32xf32>
    %38 = vector.extract_strided_slice %36 {offsets = [0, 32], sizes = [2, 32], strides = [1, 1]} : vector<2x64xf32> to vector<2x32xf32>
    %cst_38 = arith.constant 5.000000e-01 : f32
    %39 = vector.broadcast %cst_38 : f32 to vector<2x32xf32>
    %40 = arith.mulf %39, %38 : vector<2x32xf32>
    %41 = math.exp %40 : vector<2x32xf32>
    %42 = arith.mulf %41, %9 : vector<2x32xf32>
    %43 = arith.addf %37, %42 : vector<2x32xf32>
    %c0_39 = arith.constant 0 : index
    %c0_40 = arith.constant 0 : index
    %44 = vector.load %arg13[%c0_39, %c0_40] : memref<32x32xf32, #tpu.memory_space<vmem>>, vector<32x32xf32>
    %cst_41 = arith.constant dense<0.000000e+00> : vector<2x32xf32>
    %45 = tpu.matmul %43, %44, %cst_41 {dimension_numbers = #tpu.dot_dimension_numbers<[1], [0], [0], [1], [0, 0, 1, 1], [], []>} : vector<2x32xf32>, vector<32x32xf32>, vector<2x32xf32> -> vector<2x32xf32>
    %c0_42 = arith.constant 0 : index
    %c0_43 = arith.constant 0 : index
    %46 = vector.load %arg14[%c0_42, %c0_43] : memref<1x32xf32, #tpu.memory_space<vmem>>, vector<1x32xf32>
    %47 = vector.broadcast %46 : vector<1x32xf32> to vector<2x32xf32>
    %48 = arith.addf %45, %47 : vector<2x32xf32>
    %cst_44 = arith.constant 0.000000e+00 : f32
    %49 = vector.broadcast %cst_44 : f32 to vector<2x32xf32>
    %50 = arith.maximumf %48, %49 : vector<2x32xf32>
    %51 = math.absf %48 : vector<2x32xf32>
    %cst_45 = arith.constant 0.000000e+00 : f32
    %52 = vector.broadcast %cst_45 : f32 to vector<2x32xf32>
    %53 = arith.subf %52, %51 : vector<2x32xf32>
    %54 = math.exp %53 : vector<2x32xf32>
    %cst_46 = arith.constant 1.000000e+00 : f32
    %55 = vector.broadcast %cst_46 : f32 to vector<2x32xf32>
    %56 = arith.addf %55, %54 : vector<2x32xf32>
    %57 = math.log %56 : vector<2x32xf32>
    %58 = arith.addf %50, %57 : vector<2x32xf32>
    %cst_47 = arith.constant 0.000000e+00 : f32
    %59 = vector.broadcast %cst_47 : f32 to vector<2x32xf32>
    %60 = arith.subf %59, %23 : vector<2x32xf32>
    %61 = math.exp %60 : vector<2x32xf32>
    %62 = arith.subf %23, %38 : vector<2x32xf32>
    %cst_48 = arith.constant 5.000000e-01 : f32
    %63 = vector.broadcast %cst_48 : f32 to vector<2x32xf32>
    %64 = arith.mulf %63, %62 : vector<2x32xf32>
    %65 = arith.mulf %41, %41 : vector<2x32xf32>
    %66 = arith.subf %37, %22 : vector<2x32xf32>
    %67 = arith.mulf %66, %66 : vector<2x32xf32>
    %68 = arith.addf %65, %67 : vector<2x32xf32>
    %cst_49 = arith.constant 5.000000e-01 : f32
    %69 = vector.broadcast %cst_49 : f32 to vector<2x32xf32>
    %70 = arith.mulf %69, %61 : vector<2x32xf32>
    %71 = arith.mulf %68, %70 : vector<2x32xf32>
    %72 = arith.addf %64, %71 : vector<2x32xf32>
    %cst_50 = arith.constant 5.000000e-01 : f32
    %73 = vector.broadcast %cst_50 : f32 to vector<2x32xf32>
    %74 = arith.subf %72, %73 : vector<2x32xf32>
    %75 = arith.addf %1, %74 : vector<2x32xf32>
    %c0_51 = arith.constant 0 : index
    %c0_52 = arith.constant 0 : index
    %c0_53 = arith.constant 0 : index
    %76 = vector.load %arg0[%c0_51, %c0_52, %c0_53] : memref<8x2x4xf32, #tpu.memory_space<vmem>>, vector<1x2x4xf32>
    %77 = vector.shape_cast %76 : vector<1x2x4xf32> to vector<2x4xf32>
    %78 = vector.broadcast %14 : f32 to vector<2x4xf32>
    %79 = arith.mulf %78, %77 : vector<2x4xf32>
    %80 = vector.broadcast %15 : f32 to vector<2x4xf32>
    %81 = arith.mulf %80, %11 : vector<2x4xf32>
    %82 = arith.addf %79, %81 : vector<2x4xf32>
    %c0_54 = arith.constant 0 : index
    %c0_55 = arith.constant 0 : index
    %83 = vector.load %arg15[%c0_54, %c0_55] : memref<4x64xf32, #tpu.memory_space<vmem>>, vector<4x64xf32>
    %cst_56 = arith.constant dense<0.000000e+00> : vector<2x64xf32>
    %84 = tpu.matmul %82, %83, %cst_56 {dimension_numbers = #tpu.dot_dimension_numbers<[1], [0], [0], [1], [0, 0, 1, 1], [], []>} : vector<2x4xf32>, vector<4x64xf32>, vector<2x64xf32> -> vector<2x64xf32>
    %c0_57 = arith.constant 0 : index
    %c0_58 = arith.constant 0 : index
    %85 = vector.load %arg16[%c0_57, %c0_58] : memref<32x64xf32, #tpu.memory_space<vmem>>, vector<32x64xf32>
    %cst_59 = arith.constant dense<0.000000e+00> : vector<2x64xf32>
    %86 = tpu.matmul %58, %85, %cst_59 {dimension_numbers = #tpu.dot_dimension_numbers<[1], [0], [0], [1], [0, 0, 1, 1], [], []>} : vector<2x32xf32>, vector<32x64xf32>, vector<2x64xf32> -> vector<2x64xf32>
    %87 = arith.addf %84, %86 : vector<2x64xf32>
    %c0_60 = arith.constant 0 : index
    %c0_61 = arith.constant 0 : index
    %88 = vector.load %arg17[%c0_60, %c0_61] : memref<8x64xf32, #tpu.memory_space<vmem>>, vector<8x64xf32>
    %cst_62 = arith.constant dense<0.000000e+00> : vector<2x64xf32>
    %89 = tpu.matmul %7, %88, %cst_62 {dimension_numbers = #tpu.dot_dimension_numbers<[1], [0], [0], [1], [0, 0, 1, 1], [], []>} : vector<2x8xf32>, vector<8x64xf32>, vector<2x64xf32> -> vector<2x64xf32>
    %90 = arith.addf %87, %89 : vector<2x64xf32>
    %c0_63 = arith.constant 0 : index
    %c0_64 = arith.constant 0 : index
    %91 = vector.load %arg18[%c0_63, %c0_64] : memref<16x64xf32, #tpu.memory_space<vmem>>, vector<16x64xf32>
    %cst_65 = arith.constant dense<0.000000e+00> : vector<2x64xf32>
    %92 = tpu.matmul %13, %91, %cst_65 {dimension_numbers = #tpu.dot_dimension_numbers<[1], [0], [0], [1], [0, 0, 1, 1], [], []>} : vector<2x16xf32>, vector<16x64xf32>, vector<2x64xf32> -> vector<2x64xf32>
    %93 = arith.addf %90, %92 : vector<2x64xf32>
    %c0_66 = arith.constant 0 : index
    %c0_67 = arith.constant 0 : index
    %94 = vector.load %arg19[%c0_66, %c0_67] : memref<1x64xf32, #tpu.memory_space<vmem>>, vector<1x64xf32>
    %95 = vector.broadcast %94 : vector<1x64xf32> to vector<2x64xf32>
    %96 = arith.addf %93, %95 : vector<2x64xf32>
    %cst_68 = arith.constant 0.000000e+00 : f32
    %97 = vector.broadcast %cst_68 : f32 to vector<2x64xf32>
    %98 = arith.maximumf %96, %97 : vector<2x64xf32>
    %c0_69 = arith.constant 0 : index
    %c0_70 = arith.constant 0 : index
    %99 = vector.load %arg20[%c0_69, %c0_70] : memref<64x4xf32, #tpu.memory_space<vmem>>, vector<64x4xf32>
    %cst_71 = arith.constant dense<0.000000e+00> : vector<2x4xf32>
    %100 = tpu.matmul %98, %99, %cst_71 {dimension_numbers = #tpu.dot_dimension_numbers<[1], [0], [0], [1], [0, 0, 1, 1], [], []>} : vector<2x64xf32>, vector<64x4xf32>, vector<2x4xf32> -> vector<2x4xf32>
    %c0_72 = arith.constant 0 : index
    %c0_73 = arith.constant 0 : index
    %101 = vector.load %arg21[%c0_72, %c0_73] : memref<1x4xf32, #tpu.memory_space<vmem>>, vector<1x4xf32>
    %102 = vector.broadcast %101 : vector<1x4xf32> to vector<2x4xf32>
    %103 = arith.addf %100, %102 : vector<2x4xf32>
    %104 = arith.subf %103, %77 : vector<2x4xf32>
    %105 = arith.mulf %104, %104 : vector<2x4xf32>
    %106 = arith.addf %2, %105 : vector<2x4xf32>
    %c0_74 = arith.constant 0 : index
    %c0_75 = arith.constant 0 : index
    %107 = vector.load %arg22[%c0_74, %c0_75] : memref<4x128xf32, #tpu.memory_space<vmem>>, vector<4x128xf32>
    %cst_76 = arith.constant dense<0.000000e+00> : vector<2x128xf32>
    %108 = tpu.matmul %5, %107, %cst_76 {dimension_numbers = #tpu.dot_dimension_numbers<[1], [0], [0], [1], [0, 0, 1, 1], [], []>} : vector<2x4xf32>, vector<4x128xf32>, vector<2x128xf32> -> vector<2x128xf32>
    %c0_77 = arith.constant 0 : index
    %c0_78 = arith.constant 0 : index
    %109 = vector.load %arg23[%c0_77, %c0_78] : memref<32x128xf32, #tpu.memory_space<vmem>>, vector<32x128xf32>
    %cst_79 = arith.constant dense<0.000000e+00> : vector<2x128xf32>
    %110 = tpu.matmul %58, %109, %cst_79 {dimension_numbers = #tpu.dot_dimension_numbers<[1], [0], [0], [1], [0, 0, 1, 1], [], []>} : vector<2x32xf32>, vector<32x128xf32>, vector<2x128xf32> -> vector<2x128xf32>
    %111 = arith.addf %108, %110 : vector<2x128xf32>
    %c0_80 = arith.constant 0 : index
    %c0_81 = arith.constant 0 : index
    %112 = vector.load %arg24[%c0_80, %c0_81] : memref<8x128xf32, #tpu.memory_space<vmem>>, vector<8x128xf32>
    %cst_82 = arith.constant dense<0.000000e+00> : vector<2x128xf32>
    %113 = tpu.matmul %7, %112, %cst_82 {dimension_numbers = #tpu.dot_dimension_numbers<[1], [0], [0], [1], [0, 0, 1, 1], [], []>} : vector<2x8xf32>, vector<8x128xf32>, vector<2x128xf32> -> vector<2x128xf32>
    %114 = arith.addf %111, %113 : vector<2x128xf32>
    %c0_83 = arith.constant 0 : index
    %c0_84 = arith.constant 0 : index
    %115 = vector.load %arg25[%c0_83, %c0_84] : memref<32x128xf32, #tpu.memory_space<vmem>>, vector<32x128xf32>
    %cst_85 = arith.constant dense<0.000000e+00> : vector<2x128xf32>
    %116 = tpu.matmul %0, %115, %cst_85 {dimension_numbers = #tpu.dot_dimension_numbers<[1], [0], [0], [1], [0, 0, 1, 1], [], []>} : vector<2x32xf32>, vector<32x128xf32>, vector<2x128xf32> -> vector<2x128xf32>
    %117 = arith.addf %114, %116 : vector<2x128xf32>
    %c0_86 = arith.constant 0 : index
    %c0_87 = arith.constant 0 : index
    %118 = vector.load %arg26[%c0_86, %c0_87] : memref<1x128xf32, #tpu.memory_space<vmem>>, vector<1x128xf32>
    %119 = vector.broadcast %118 : vector<1x128xf32> to vector<2x128xf32>
    %120 = arith.addf %117, %119 : vector<2x128xf32>
    %121 = arith.negf %120 : vector<2x128xf32>
    %122 = math.exp %121 : vector<2x128xf32>
    %cst_88 = arith.constant 1.000000e+00 : f32
    %123 = vector.broadcast %cst_88 : f32 to vector<2x128xf32>
    %124 = arith.addf %123, %122 : vector<2x128xf32>
    %125 = arith.divf %123, %124 : vector<2x128xf32>
    %126 = math.tanh %120 : vector<2x128xf32>
    %127 = vector.extract_strided_slice %125 {offsets = [0, 0], sizes = [2, 32], strides = [1, 1]} : vector<2x128xf32> to vector<2x32xf32>
    %128 = vector.extract_strided_slice %125 {offsets = [0, 32], sizes = [2, 32], strides = [1, 1]} : vector<2x128xf32> to vector<2x32xf32>
    %129 = vector.extract_strided_slice %126 {offsets = [0, 64], sizes = [2, 32], strides = [1, 1]} : vector<2x128xf32> to vector<2x32xf32>
    %130 = vector.extract_strided_slice %125 {offsets = [0, 96], sizes = [2, 32], strides = [1, 1]} : vector<2x128xf32> to vector<2x32xf32>
    %131 = arith.mulf %128, %0 : vector<2x32xf32>
    %132 = arith.mulf %127, %129 : vector<2x32xf32>
    %133 = arith.addf %131, %132 : vector<2x32xf32>
    %134 = math.tanh %133 : vector<2x32xf32>
    %135 = arith.mulf %130, %134 : vector<2x32xf32>
    %c0_89 = arith.constant 0 : index
    %c0_90 = arith.constant 0 : index
    %136 = vector.load %arg27[%c0_89, %c0_90] : memref<32x128xf32, #tpu.memory_space<vmem>>, vector<32x128xf32>
    %cst_91 = arith.constant dense<0.000000e+00> : vector<2x128xf32>
    %137 = tpu.matmul %135, %136, %cst_91 {dimension_numbers = #tpu.dot_dimension_numbers<[1], [0], [0], [1], [0, 0, 1, 1], [], []>} : vector<2x32xf32>, vector<32x128xf32>, vector<2x128xf32> -> vector<2x128xf32>
    %c0_92 = arith.constant 0 : index
    %c0_93 = arith.constant 0 : index
    %138 = vector.load %arg28[%c0_92, %c0_93] : memref<32x128xf32, #tpu.memory_space<vmem>>, vector<32x128xf32>
    %cst_94 = arith.constant dense<0.000000e+00> : vector<2x128xf32>
    %139 = tpu.matmul %0, %138, %cst_94 {dimension_numbers = #tpu.dot_dimension_numbers<[1], [0], [0], [1], [0, 0, 1, 1], [], []>} : vector<2x32xf32>, vector<32x128xf32>, vector<2x128xf32> -> vector<2x128xf32>
    %140 = arith.addf %137, %139 : vector<2x128xf32>
    %c0_95 = arith.constant 0 : index
    %c0_96 = arith.constant 0 : index
    %141 = vector.load %arg29[%c0_95, %c0_96] : memref<1x128xf32, #tpu.memory_space<vmem>>, vector<1x128xf32>
    %142 = vector.broadcast %141 : vector<1x128xf32> to vector<2x128xf32>
    %143 = arith.addf %140, %142 : vector<2x128xf32>
    %144 = arith.negf %143 : vector<2x128xf32>
    %145 = math.exp %144 : vector<2x128xf32>
    %cst_97 = arith.constant 1.000000e+00 : f32
    %146 = vector.broadcast %cst_97 : f32 to vector<2x128xf32>
    %147 = arith.addf %146, %145 : vector<2x128xf32>
    %148 = arith.divf %146, %147 : vector<2x128xf32>
    %149 = math.tanh %143 : vector<2x128xf32>
    %150 = vector.extract_strided_slice %148 {offsets = [0, 0], sizes = [2, 32], strides = [1, 1]} : vector<2x128xf32> to vector<2x32xf32>
    %151 = vector.extract_strided_slice %148 {offsets = [0, 32], sizes = [2, 32], strides = [1, 1]} : vector<2x128xf32> to vector<2x32xf32>
    %152 = vector.extract_strided_slice %149 {offsets = [0, 64], sizes = [2, 32], strides = [1, 1]} : vector<2x128xf32> to vector<2x32xf32>
    %153 = vector.extract_strided_slice %148 {offsets = [0, 96], sizes = [2, 32], strides = [1, 1]} : vector<2x128xf32> to vector<2x32xf32>
    %154 = arith.mulf %151, %0 : vector<2x32xf32>
    %155 = arith.mulf %150, %152 : vector<2x32xf32>
    %156 = arith.addf %154, %155 : vector<2x32xf32>
    %157 = math.tanh %156 : vector<2x32xf32>
    %158 = arith.mulf %153, %157 : vector<2x32xf32>
    %c1_98 = arith.constant 1 : index
    %c0_99 = arith.constant 0 : index
    %c0_100 = arith.constant 0 : index
    %159 = vector.load %arg0[%c1_98, %c0_99, %c0_100] : memref<8x2x4xf32, #tpu.memory_space<vmem>>, vector<1x2x4xf32>
    %160 = vector.shape_cast %159 : vector<1x2x4xf32> to vector<2x4xf32>
    %c1_101 = arith.constant 1 : index
    %c0_102 = arith.constant 0 : index
    %c0_103 = arith.constant 0 : index
    %161 = vector.load %arg1[%c1_101, %c0_102, %c0_103] : memref<8x2x8xf32, #tpu.memory_space<vmem>>, vector<1x2x8xf32>
    %162 = vector.shape_cast %161 : vector<1x2x8xf32> to vector<2x8xf32>
    %c1_104 = arith.constant 1 : index
    %c0_105 = arith.constant 0 : index
    %c0_106 = arith.constant 0 : index
    %163 = vector.load %arg2[%c1_104, %c0_105, %c0_106] : memref<8x2x32xf32, #tpu.memory_space<vmem>>, vector<1x2x32xf32>
    %164 = vector.shape_cast %163 : vector<1x2x32xf32> to vector<2x32xf32>
    %c1_107 = arith.constant 1 : index
    %c0_108 = arith.constant 0 : index
    %c0_109 = arith.constant 0 : index
    %165 = vector.load %arg3[%c1_107, %c0_108, %c0_109] : memref<8x2x4xf32, #tpu.memory_space<vmem>>, vector<1x2x4xf32>
    %166 = vector.shape_cast %165 : vector<1x2x4xf32> to vector<2x4xf32>
    %c1_110 = arith.constant 1 : index
    %c0_111 = arith.constant 0 : index
    %c0_112 = arith.constant 0 : index
    %167 = vector.load %arg4[%c1_110, %c0_111, %c0_112] : memref<8x2x16xf32, #tpu.memory_space<vmem>>, vector<1x2x16xf32>
    %168 = vector.shape_cast %167 : vector<1x2x16xf32> to vector<2x16xf32>
    %c1_113 = arith.constant 1 : index
    %c0_114 = arith.constant 0 : index
    %169 = memref.load %arg5[%c1_113, %c0_114] : memref<8x2xf32, #tpu.memory_space<smem>>
    %c1_115 = arith.constant 1 : index
    %c1_116 = arith.constant 1 : index
    %170 = memref.load %arg5[%c1_115, %c1_116] : memref<8x2xf32, #tpu.memory_space<smem>>
    %171 = arith.addf %158, %156 : vector<2x32xf32>
    %c0_117 = arith.constant 0 : index
    %c0_118 = arith.constant 0 : index
    %172 = vector.load %arg8[%c0_117, %c0_118] : memref<32x64xf32, #tpu.memory_space<vmem>>, vector<32x64xf32>
    %cst_119 = arith.constant dense<0.000000e+00> : vector<2x64xf32>
    %173 = tpu.matmul %171, %172, %cst_119 {dimension_numbers = #tpu.dot_dimension_numbers<[1], [0], [0], [1], [0, 0, 1, 1], [], []>} : vector<2x32xf32>, vector<32x64xf32>, vector<2x64xf32> -> vector<2x64xf32>
    %c0_120 = arith.constant 0 : index
    %c0_121 = arith.constant 0 : index
    %174 = vector.load %arg9[%c0_120, %c0_121] : memref<1x64xf32, #tpu.memory_space<vmem>>, vector<1x64xf32>
    %175 = vector.broadcast %174 : vector<1x64xf32> to vector<2x64xf32>
    %176 = arith.addf %173, %175 : vector<2x64xf32>
    %177 = vector.extract_strided_slice %176 {offsets = [0, 0], sizes = [2, 32], strides = [1, 1]} : vector<2x64xf32> to vector<2x32xf32>
    %178 = vector.extract_strided_slice %176 {offsets = [0, 32], sizes = [2, 32], strides = [1, 1]} : vector<2x64xf32> to vector<2x32xf32>
    %c0_122 = arith.constant 0 : index
    %c0_123 = arith.constant 0 : index
    %179 = vector.load %arg6[%c0_122, %c0_123] : memref<4x32xf32, #tpu.memory_space<vmem>>, vector<4x32xf32>
    %cst_124 = arith.constant dense<0.000000e+00> : vector<2x32xf32>
    %180 = tpu.matmul %160, %179, %cst_124 {dimension_numbers = #tpu.dot_dimension_numbers<[1], [0], [0], [1], [0, 0, 1, 1], [], []>} : vector<2x4xf32>, vector<4x32xf32>, vector<2x32xf32> -> vector<2x32xf32>
    %c0_125 = arith.constant 0 : index
    %c0_126 = arith.constant 0 : index
    %181 = vector.load %arg7[%c0_125, %c0_126] : memref<1x32xf32, #tpu.memory_space<vmem>>, vector<1x32xf32>
    %182 = vector.broadcast %181 : vector<1x32xf32> to vector<2x32xf32>
    %183 = arith.addf %180, %182 : vector<2x32xf32>
    %c0_127 = arith.constant 0 : index
    %c0_128 = arith.constant 0 : index
    %184 = vector.load %arg10[%c0_127, %c0_128] : memref<32x64xf32, #tpu.memory_space<vmem>>, vector<32x64xf32>
    %cst_129 = arith.constant dense<0.000000e+00> : vector<2x64xf32>
    %185 = tpu.matmul %183, %184, %cst_129 {dimension_numbers = #tpu.dot_dimension_numbers<[1], [0], [0], [1], [0, 0, 1, 1], [], []>} : vector<2x32xf32>, vector<32x64xf32>, vector<2x64xf32> -> vector<2x64xf32>
    %c0_130 = arith.constant 0 : index
    %c0_131 = arith.constant 0 : index
    %186 = vector.load %arg11[%c0_130, %c0_131] : memref<32x64xf32, #tpu.memory_space<vmem>>, vector<32x64xf32>
    %cst_132 = arith.constant dense<0.000000e+00> : vector<2x64xf32>
    %187 = tpu.matmul %171, %186, %cst_132 {dimension_numbers = #tpu.dot_dimension_numbers<[1], [0], [0], [1], [0, 0, 1, 1], [], []>} : vector<2x32xf32>, vector<32x64xf32>, vector<2x64xf32> -> vector<2x64xf32>
    %188 = arith.addf %185, %187 : vector<2x64xf32>
    %c0_133 = arith.constant 0 : index
    %c0_134 = arith.constant 0 : index
    %189 = vector.load %arg12[%c0_133, %c0_134] : memref<1x64xf32, #tpu.memory_space<vmem>>, vector<1x64xf32>
    %190 = vector.broadcast %189 : vector<1x64xf32> to vector<2x64xf32>
    %191 = arith.addf %188, %190 : vector<2x64xf32>
    %192 = vector.extract_strided_slice %191 {offsets = [0, 0], sizes = [2, 32], strides = [1, 1]} : vector<2x64xf32> to vector<2x32xf32>
    %193 = vector.extract_strided_slice %191 {offsets = [0, 32], sizes = [2, 32], strides = [1, 1]} : vector<2x64xf32> to vector<2x32xf32>
    %cst_135 = arith.constant 5.000000e-01 : f32
    %194 = vector.broadcast %cst_135 : f32 to vector<2x32xf32>
    %195 = arith.mulf %194, %193 : vector<2x32xf32>
    %196 = math.exp %195 : vector<2x32xf32>
    %197 = arith.mulf %196, %164 : vector<2x32xf32>
    %198 = arith.addf %192, %197 : vector<2x32xf32>
    %c0_136 = arith.constant 0 : index
    %c0_137 = arith.constant 0 : index
    %199 = vector.load %arg13[%c0_136, %c0_137] : memref<32x32xf32, #tpu.memory_space<vmem>>, vector<32x32xf32>
    %cst_138 = arith.constant dense<0.000000e+00> : vector<2x32xf32>
    %200 = tpu.matmul %198, %199, %cst_138 {dimension_numbers = #tpu.dot_dimension_numbers<[1], [0], [0], [1], [0, 0, 1, 1], [], []>} : vector<2x32xf32>, vector<32x32xf32>, vector<2x32xf32> -> vector<2x32xf32>
    %c0_139 = arith.constant 0 : index
    %c0_140 = arith.constant 0 : index
    %201 = vector.load %arg14[%c0_139, %c0_140] : memref<1x32xf32, #tpu.memory_space<vmem>>, vector<1x32xf32>
    %202 = vector.broadcast %201 : vector<1x32xf32> to vector<2x32xf32>
    %203 = arith.addf %200, %202 : vector<2x32xf32>
    %cst_141 = arith.constant 0.000000e+00 : f32
    %204 = vector.broadcast %cst_141 : f32 to vector<2x32xf32>
    %205 = arith.maximumf %203, %204 : vector<2x32xf32>
    %206 = math.absf %203 : vector<2x32xf32>
    %cst_142 = arith.constant 0.000000e+00 : f32
    %207 = vector.broadcast %cst_142 : f32 to vector<2x32xf32>
    %208 = arith.subf %207, %206 : vector<2x32xf32>
    %209 = math.exp %208 : vector<2x32xf32>
    %cst_143 = arith.constant 1.000000e+00 : f32
    %210 = vector.broadcast %cst_143 : f32 to vector<2x32xf32>
    %211 = arith.addf %210, %209 : vector<2x32xf32>
    %212 = math.log %211 : vector<2x32xf32>
    %213 = arith.addf %205, %212 : vector<2x32xf32>
    %cst_144 = arith.constant 0.000000e+00 : f32
    %214 = vector.broadcast %cst_144 : f32 to vector<2x32xf32>
    %215 = arith.subf %214, %178 : vector<2x32xf32>
    %216 = math.exp %215 : vector<2x32xf32>
    %217 = arith.subf %178, %193 : vector<2x32xf32>
    %cst_145 = arith.constant 5.000000e-01 : f32
    %218 = vector.broadcast %cst_145 : f32 to vector<2x32xf32>
    %219 = arith.mulf %218, %217 : vector<2x32xf32>
    %220 = arith.mulf %196, %196 : vector<2x32xf32>
    %221 = arith.subf %192, %177 : vector<2x32xf32>
    %222 = arith.mulf %221, %221 : vector<2x32xf32>
    %223 = arith.addf %220, %222 : vector<2x32xf32>
    %cst_146 = arith.constant 5.000000e-01 : f32
    %224 = vector.broadcast %cst_146 : f32 to vector<2x32xf32>
    %225 = arith.mulf %224, %216 : vector<2x32xf32>
    %226 = arith.mulf %223, %225 : vector<2x32xf32>
    %227 = arith.addf %219, %226 : vector<2x32xf32>
    %cst_147 = arith.constant 5.000000e-01 : f32
    %228 = vector.broadcast %cst_147 : f32 to vector<2x32xf32>
    %229 = arith.subf %227, %228 : vector<2x32xf32>
    %230 = arith.addf %75, %229 : vector<2x32xf32>
    %c1_148 = arith.constant 1 : index
    %c0_149 = arith.constant 0 : index
    %c0_150 = arith.constant 0 : index
    %231 = vector.load %arg0[%c1_148, %c0_149, %c0_150] : memref<8x2x4xf32, #tpu.memory_space<vmem>>, vector<1x2x4xf32>
    %232 = vector.shape_cast %231 : vector<1x2x4xf32> to vector<2x4xf32>
    %233 = vector.broadcast %169 : f32 to vector<2x4xf32>
    %234 = arith.mulf %233, %232 : vector<2x4xf32>
    %235 = vector.broadcast %170 : f32 to vector<2x4xf32>
    %236 = arith.mulf %235, %166 : vector<2x4xf32>
    %237 = arith.addf %234, %236 : vector<2x4xf32>
    %c0_151 = arith.constant 0 : index
    %c0_152 = arith.constant 0 : index
    %238 = vector.load %arg15[%c0_151, %c0_152] : memref<4x64xf32, #tpu.memory_space<vmem>>, vector<4x64xf32>
    %cst_153 = arith.constant dense<0.000000e+00> : vector<2x64xf32>
    %239 = tpu.matmul %237, %238, %cst_153 {dimension_numbers = #tpu.dot_dimension_numbers<[1], [0], [0], [1], [0, 0, 1, 1], [], []>} : vector<2x4xf32>, vector<4x64xf32>, vector<2x64xf32> -> vector<2x64xf32>
    %c0_154 = arith.constant 0 : index
    %c0_155 = arith.constant 0 : index
    %240 = vector.load %arg16[%c0_154, %c0_155] : memref<32x64xf32, #tpu.memory_space<vmem>>, vector<32x64xf32>
    %cst_156 = arith.constant dense<0.000000e+00> : vector<2x64xf32>
    %241 = tpu.matmul %213, %240, %cst_156 {dimension_numbers = #tpu.dot_dimension_numbers<[1], [0], [0], [1], [0, 0, 1, 1], [], []>} : vector<2x32xf32>, vector<32x64xf32>, vector<2x64xf32> -> vector<2x64xf32>
    %242 = arith.addf %239, %241 : vector<2x64xf32>
    %c0_157 = arith.constant 0 : index
    %c0_158 = arith.constant 0 : index
    %243 = vector.load %arg17[%c0_157, %c0_158] : memref<8x64xf32, #tpu.memory_space<vmem>>, vector<8x64xf32>
    %cst_159 = arith.constant dense<0.000000e+00> : vector<2x64xf32>
    %244 = tpu.matmul %162, %243, %cst_159 {dimension_numbers = #tpu.dot_dimension_numbers<[1], [0], [0], [1], [0, 0, 1, 1], [], []>} : vector<2x8xf32>, vector<8x64xf32>, vector<2x64xf32> -> vector<2x64xf32>
    %245 = arith.addf %242, %244 : vector<2x64xf32>
    %c0_160 = arith.constant 0 : index
    %c0_161 = arith.constant 0 : index
    %246 = vector.load %arg18[%c0_160, %c0_161] : memref<16x64xf32, #tpu.memory_space<vmem>>, vector<16x64xf32>
    %cst_162 = arith.constant dense<0.000000e+00> : vector<2x64xf32>
    %247 = tpu.matmul %168, %246, %cst_162 {dimension_numbers = #tpu.dot_dimension_numbers<[1], [0], [0], [1], [0, 0, 1, 1], [], []>} : vector<2x16xf32>, vector<16x64xf32>, vector<2x64xf32> -> vector<2x64xf32>
    %248 = arith.addf %245, %247 : vector<2x64xf32>
    %c0_163 = arith.constant 0 : index
    %c0_164 = arith.constant 0 : index
    %249 = vector.load %arg19[%c0_163, %c0_164] : memref<1x64xf32, #tpu.memory_space<vmem>>, vector<1x64xf32>
    %250 = vector.broadcast %249 : vector<1x64xf32> to vector<2x64xf32>
    %251 = arith.addf %248, %250 : vector<2x64xf32>
    %cst_165 = arith.constant 0.000000e+00 : f32
    %252 = vector.broadcast %cst_165 : f32 to vector<2x64xf32>
    %253 = arith.maximumf %251, %252 : vector<2x64xf32>
    %c0_166 = arith.constant 0 : index
    %c0_167 = arith.constant 0 : index
    %254 = vector.load %arg20[%c0_166, %c0_167] : memref<64x4xf32, #tpu.memory_space<vmem>>, vector<64x4xf32>
    %cst_168 = arith.constant dense<0.000000e+00> : vector<2x4xf32>
    %255 = tpu.matmul %253, %254, %cst_168 {dimension_numbers = #tpu.dot_dimension_numbers<[1], [0], [0], [1], [0, 0, 1, 1], [], []>} : vector<2x64xf32>, vector<64x4xf32>, vector<2x4xf32> -> vector<2x4xf32>
    %c0_169 = arith.constant 0 : index
    %c0_170 = arith.constant 0 : index
    %256 = vector.load %arg21[%c0_169, %c0_170] : memref<1x4xf32, #tpu.memory_space<vmem>>, vector<1x4xf32>
    %257 = vector.broadcast %256 : vector<1x4xf32> to vector<2x4xf32>
    %258 = arith.addf %255, %257 : vector<2x4xf32>
    %259 = arith.subf %258, %232 : vector<2x4xf32>
    %260 = arith.mulf %259, %259 : vector<2x4xf32>
    %261 = arith.addf %106, %260 : vector<2x4xf32>
    %c0_171 = arith.constant 0 : index
    %c0_172 = arith.constant 0 : index
    %262 = vector.load %arg22[%c0_171, %c0_172] : memref<4x128xf32, #tpu.memory_space<vmem>>, vector<4x128xf32>
    %cst_173 = arith.constant dense<0.000000e+00> : vector<2x128xf32>
    %263 = tpu.matmul %160, %262, %cst_173 {dimension_numbers = #tpu.dot_dimension_numbers<[1], [0], [0], [1], [0, 0, 1, 1], [], []>} : vector<2x4xf32>, vector<4x128xf32>, vector<2x128xf32> -> vector<2x128xf32>
    %c0_174 = arith.constant 0 : index
    %c0_175 = arith.constant 0 : index
    %264 = vector.load %arg23[%c0_174, %c0_175] : memref<32x128xf32, #tpu.memory_space<vmem>>, vector<32x128xf32>
    %cst_176 = arith.constant dense<0.000000e+00> : vector<2x128xf32>
    %265 = tpu.matmul %213, %264, %cst_176 {dimension_numbers = #tpu.dot_dimension_numbers<[1], [0], [0], [1], [0, 0, 1, 1], [], []>} : vector<2x32xf32>, vector<32x128xf32>, vector<2x128xf32> -> vector<2x128xf32>
    %266 = arith.addf %263, %265 : vector<2x128xf32>
    %c0_177 = arith.constant 0 : index
    %c0_178 = arith.constant 0 : index
    %267 = vector.load %arg24[%c0_177, %c0_178] : memref<8x128xf32, #tpu.memory_space<vmem>>, vector<8x128xf32>
    %cst_179 = arith.constant dense<0.000000e+00> : vector<2x128xf32>
    %268 = tpu.matmul %162, %267, %cst_179 {dimension_numbers = #tpu.dot_dimension_numbers<[1], [0], [0], [1], [0, 0, 1, 1], [], []>} : vector<2x8xf32>, vector<8x128xf32>, vector<2x128xf32> -> vector<2x128xf32>
    %269 = arith.addf %266, %268 : vector<2x128xf32>
    %c0_180 = arith.constant 0 : index
    %c0_181 = arith.constant 0 : index
    %270 = vector.load %arg25[%c0_180, %c0_181] : memref<32x128xf32, #tpu.memory_space<vmem>>, vector<32x128xf32>
    %cst_182 = arith.constant dense<0.000000e+00> : vector<2x128xf32>
    %271 = tpu.matmul %135, %270, %cst_182 {dimension_numbers = #tpu.dot_dimension_numbers<[1], [0], [0], [1], [0, 0, 1, 1], [], []>} : vector<2x32xf32>, vector<32x128xf32>, vector<2x128xf32> -> vector<2x128xf32>
    %272 = arith.addf %269, %271 : vector<2x128xf32>
    %c0_183 = arith.constant 0 : index
    %c0_184 = arith.constant 0 : index
    %273 = vector.load %arg26[%c0_183, %c0_184] : memref<1x128xf32, #tpu.memory_space<vmem>>, vector<1x128xf32>
    %274 = vector.broadcast %273 : vector<1x128xf32> to vector<2x128xf32>
    %275 = arith.addf %272, %274 : vector<2x128xf32>
    %276 = arith.negf %275 : vector<2x128xf32>
    %277 = math.exp %276 : vector<2x128xf32>
    %cst_185 = arith.constant 1.000000e+00 : f32
    %278 = vector.broadcast %cst_185 : f32 to vector<2x128xf32>
    %279 = arith.addf %278, %277 : vector<2x128xf32>
    %280 = arith.divf %278, %279 : vector<2x128xf32>
    %281 = math.tanh %275 : vector<2x128xf32>
    %282 = vector.extract_strided_slice %280 {offsets = [0, 0], sizes = [2, 32], strides = [1, 1]} : vector<2x128xf32> to vector<2x32xf32>
    %283 = vector.extract_strided_slice %280 {offsets = [0, 32], sizes = [2, 32], strides = [1, 1]} : vector<2x128xf32> to vector<2x32xf32>
    %284 = vector.extract_strided_slice %281 {offsets = [0, 64], sizes = [2, 32], strides = [1, 1]} : vector<2x128xf32> to vector<2x32xf32>
    %285 = vector.extract_strided_slice %280 {offsets = [0, 96], sizes = [2, 32], strides = [1, 1]} : vector<2x128xf32> to vector<2x32xf32>
    %286 = arith.mulf %283, %133 : vector<2x32xf32>
    %287 = arith.mulf %282, %284 : vector<2x32xf32>
    %288 = arith.addf %286, %287 : vector<2x32xf32>
    %289 = math.tanh %288 : vector<2x32xf32>
    %290 = arith.mulf %285, %289 : vector<2x32xf32>
    %c0_186 = arith.constant 0 : index
    %c0_187 = arith.constant 0 : index
    %291 = vector.load %arg27[%c0_186, %c0_187] : memref<32x128xf32, #tpu.memory_space<vmem>>, vector<32x128xf32>
    %cst_188 = arith.constant dense<0.000000e+00> : vector<2x128xf32>
    %292 = tpu.matmul %290, %291, %cst_188 {dimension_numbers = #tpu.dot_dimension_numbers<[1], [0], [0], [1], [0, 0, 1, 1], [], []>} : vector<2x32xf32>, vector<32x128xf32>, vector<2x128xf32> -> vector<2x128xf32>
    %c0_189 = arith.constant 0 : index
    %c0_190 = arith.constant 0 : index
    %293 = vector.load %arg28[%c0_189, %c0_190] : memref<32x128xf32, #tpu.memory_space<vmem>>, vector<32x128xf32>
    %cst_191 = arith.constant dense<0.000000e+00> : vector<2x128xf32>
    %294 = tpu.matmul %158, %293, %cst_191 {dimension_numbers = #tpu.dot_dimension_numbers<[1], [0], [0], [1], [0, 0, 1, 1], [], []>} : vector<2x32xf32>, vector<32x128xf32>, vector<2x128xf32> -> vector<2x128xf32>
    %295 = arith.addf %292, %294 : vector<2x128xf32>
    %c0_192 = arith.constant 0 : index
    %c0_193 = arith.constant 0 : index
    %296 = vector.load %arg29[%c0_192, %c0_193] : memref<1x128xf32, #tpu.memory_space<vmem>>, vector<1x128xf32>
    %297 = vector.broadcast %296 : vector<1x128xf32> to vector<2x128xf32>
    %298 = arith.addf %295, %297 : vector<2x128xf32>
    %299 = arith.negf %298 : vector<2x128xf32>
    %300 = math.exp %299 : vector<2x128xf32>
    %cst_194 = arith.constant 1.000000e+00 : f32
    %301 = vector.broadcast %cst_194 : f32 to vector<2x128xf32>
    %302 = arith.addf %301, %300 : vector<2x128xf32>
    %303 = arith.divf %301, %302 : vector<2x128xf32>
    %304 = math.tanh %298 : vector<2x128xf32>
    %305 = vector.extract_strided_slice %303 {offsets = [0, 0], sizes = [2, 32], strides = [1, 1]} : vector<2x128xf32> to vector<2x32xf32>
    %306 = vector.extract_strided_slice %303 {offsets = [0, 32], sizes = [2, 32], strides = [1, 1]} : vector<2x128xf32> to vector<2x32xf32>
    %307 = vector.extract_strided_slice %304 {offsets = [0, 64], sizes = [2, 32], strides = [1, 1]} : vector<2x128xf32> to vector<2x32xf32>
    %308 = vector.extract_strided_slice %303 {offsets = [0, 96], sizes = [2, 32], strides = [1, 1]} : vector<2x128xf32> to vector<2x32xf32>
    %309 = arith.mulf %306, %156 : vector<2x32xf32>
    %310 = arith.mulf %305, %307 : vector<2x32xf32>
    %311 = arith.addf %309, %310 : vector<2x32xf32>
    %312 = math.tanh %311 : vector<2x32xf32>
    %313 = arith.mulf %308, %312 : vector<2x32xf32>
    %c2 = arith.constant 2 : index
    %c0_195 = arith.constant 0 : index
    %c0_196 = arith.constant 0 : index
    %314 = vector.load %arg0[%c2, %c0_195, %c0_196] : memref<8x2x4xf32, #tpu.memory_space<vmem>>, vector<1x2x4xf32>
    %315 = vector.shape_cast %314 : vector<1x2x4xf32> to vector<2x4xf32>
    %c2_197 = arith.constant 2 : index
    %c0_198 = arith.constant 0 : index
    %c0_199 = arith.constant 0 : index
    %316 = vector.load %arg1[%c2_197, %c0_198, %c0_199] : memref<8x2x8xf32, #tpu.memory_space<vmem>>, vector<1x2x8xf32>
    %317 = vector.shape_cast %316 : vector<1x2x8xf32> to vector<2x8xf32>
    %c2_200 = arith.constant 2 : index
    %c0_201 = arith.constant 0 : index
    %c0_202 = arith.constant 0 : index
    %318 = vector.load %arg2[%c2_200, %c0_201, %c0_202] : memref<8x2x32xf32, #tpu.memory_space<vmem>>, vector<1x2x32xf32>
    %319 = vector.shape_cast %318 : vector<1x2x32xf32> to vector<2x32xf32>
    %c2_203 = arith.constant 2 : index
    %c0_204 = arith.constant 0 : index
    %c0_205 = arith.constant 0 : index
    %320 = vector.load %arg3[%c2_203, %c0_204, %c0_205] : memref<8x2x4xf32, #tpu.memory_space<vmem>>, vector<1x2x4xf32>
    %321 = vector.shape_cast %320 : vector<1x2x4xf32> to vector<2x4xf32>
    %c2_206 = arith.constant 2 : index
    %c0_207 = arith.constant 0 : index
    %c0_208 = arith.constant 0 : index
    %322 = vector.load %arg4[%c2_206, %c0_207, %c0_208] : memref<8x2x16xf32, #tpu.memory_space<vmem>>, vector<1x2x16xf32>
    %323 = vector.shape_cast %322 : vector<1x2x16xf32> to vector<2x16xf32>
    %c2_209 = arith.constant 2 : index
    %c0_210 = arith.constant 0 : index
    %324 = memref.load %arg5[%c2_209, %c0_210] : memref<8x2xf32, #tpu.memory_space<smem>>
    %c2_211 = arith.constant 2 : index
    %c1_212 = arith.constant 1 : index
    %325 = memref.load %arg5[%c2_211, %c1_212] : memref<8x2xf32, #tpu.memory_space<smem>>
    %326 = arith.addf %313, %311 : vector<2x32xf32>
    %c0_213 = arith.constant 0 : index
    %c0_214 = arith.constant 0 : index
    %327 = vector.load %arg8[%c0_213, %c0_214] : memref<32x64xf32, #tpu.memory_space<vmem>>, vector<32x64xf32>
    %cst_215 = arith.constant dense<0.000000e+00> : vector<2x64xf32>
    %328 = tpu.matmul %326, %327, %cst_215 {dimension_numbers = #tpu.dot_dimension_numbers<[1], [0], [0], [1], [0, 0, 1, 1], [], []>} : vector<2x32xf32>, vector<32x64xf32>, vector<2x64xf32> -> vector<2x64xf32>
    %c0_216 = arith.constant 0 : index
    %c0_217 = arith.constant 0 : index
    %329 = vector.load %arg9[%c0_216, %c0_217] : memref<1x64xf32, #tpu.memory_space<vmem>>, vector<1x64xf32>
    %330 = vector.broadcast %329 : vector<1x64xf32> to vector<2x64xf32>
    %331 = arith.addf %328, %330 : vector<2x64xf32>
    %332 = vector.extract_strided_slice %331 {offsets = [0, 0], sizes = [2, 32], strides = [1, 1]} : vector<2x64xf32> to vector<2x32xf32>
    %333 = vector.extract_strided_slice %331 {offsets = [0, 32], sizes = [2, 32], strides = [1, 1]} : vector<2x64xf32> to vector<2x32xf32>
    %c0_218 = arith.constant 0 : index
    %c0_219 = arith.constant 0 : index
    %334 = vector.load %arg6[%c0_218, %c0_219] : memref<4x32xf32, #tpu.memory_space<vmem>>, vector<4x32xf32>
    %cst_220 = arith.constant dense<0.000000e+00> : vector<2x32xf32>
    %335 = tpu.matmul %315, %334, %cst_220 {dimension_numbers = #tpu.dot_dimension_numbers<[1], [0], [0], [1], [0, 0, 1, 1], [], []>} : vector<2x4xf32>, vector<4x32xf32>, vector<2x32xf32> -> vector<2x32xf32>
    %c0_221 = arith.constant 0 : index
    %c0_222 = arith.constant 0 : index
    %336 = vector.load %arg7[%c0_221, %c0_222] : memref<1x32xf32, #tpu.memory_space<vmem>>, vector<1x32xf32>
    %337 = vector.broadcast %336 : vector<1x32xf32> to vector<2x32xf32>
    %338 = arith.addf %335, %337 : vector<2x32xf32>
    %c0_223 = arith.constant 0 : index
    %c0_224 = arith.constant 0 : index
    %339 = vector.load %arg10[%c0_223, %c0_224] : memref<32x64xf32, #tpu.memory_space<vmem>>, vector<32x64xf32>
    %cst_225 = arith.constant dense<0.000000e+00> : vector<2x64xf32>
    %340 = tpu.matmul %338, %339, %cst_225 {dimension_numbers = #tpu.dot_dimension_numbers<[1], [0], [0], [1], [0, 0, 1, 1], [], []>} : vector<2x32xf32>, vector<32x64xf32>, vector<2x64xf32> -> vector<2x64xf32>
    %c0_226 = arith.constant 0 : index
    %c0_227 = arith.constant 0 : index
    %341 = vector.load %arg11[%c0_226, %c0_227] : memref<32x64xf32, #tpu.memory_space<vmem>>, vector<32x64xf32>
    %cst_228 = arith.constant dense<0.000000e+00> : vector<2x64xf32>
    %342 = tpu.matmul %326, %341, %cst_228 {dimension_numbers = #tpu.dot_dimension_numbers<[1], [0], [0], [1], [0, 0, 1, 1], [], []>} : vector<2x32xf32>, vector<32x64xf32>, vector<2x64xf32> -> vector<2x64xf32>
    %343 = arith.addf %340, %342 : vector<2x64xf32>
    %c0_229 = arith.constant 0 : index
    %c0_230 = arith.constant 0 : index
    %344 = vector.load %arg12[%c0_229, %c0_230] : memref<1x64xf32, #tpu.memory_space<vmem>>, vector<1x64xf32>
    %345 = vector.broadcast %344 : vector<1x64xf32> to vector<2x64xf32>
    %346 = arith.addf %343, %345 : vector<2x64xf32>
    %347 = vector.extract_strided_slice %346 {offsets = [0, 0], sizes = [2, 32], strides = [1, 1]} : vector<2x64xf32> to vector<2x32xf32>
    %348 = vector.extract_strided_slice %346 {offsets = [0, 32], sizes = [2, 32], strides = [1, 1]} : vector<2x64xf32> to vector<2x32xf32>
    %cst_231 = arith.constant 5.000000e-01 : f32
    %349 = vector.broadcast %cst_231 : f32 to vector<2x32xf32>
    %350 = arith.mulf %349, %348 : vector<2x32xf32>
    %351 = math.exp %350 : vector<2x32xf32>
    %352 = arith.mulf %351, %319 : vector<2x32xf32>
    %353 = arith.addf %347, %352 : vector<2x32xf32>
    %c0_232 = arith.constant 0 : index
    %c0_233 = arith.constant 0 : index
    %354 = vector.load %arg13[%c0_232, %c0_233] : memref<32x32xf32, #tpu.memory_space<vmem>>, vector<32x32xf32>
    %cst_234 = arith.constant dense<0.000000e+00> : vector<2x32xf32>
    %355 = tpu.matmul %353, %354, %cst_234 {dimension_numbers = #tpu.dot_dimension_numbers<[1], [0], [0], [1], [0, 0, 1, 1], [], []>} : vector<2x32xf32>, vector<32x32xf32>, vector<2x32xf32> -> vector<2x32xf32>
    %c0_235 = arith.constant 0 : index
    %c0_236 = arith.constant 0 : index
    %356 = vector.load %arg14[%c0_235, %c0_236] : memref<1x32xf32, #tpu.memory_space<vmem>>, vector<1x32xf32>
    %357 = vector.broadcast %356 : vector<1x32xf32> to vector<2x32xf32>
    %358 = arith.addf %355, %357 : vector<2x32xf32>
    %cst_237 = arith.constant 0.000000e+00 : f32
    %359 = vector.broadcast %cst_237 : f32 to vector<2x32xf32>
    %360 = arith.maximumf %358, %359 : vector<2x32xf32>
    %361 = math.absf %358 : vector<2x32xf32>
    %cst_238 = arith.constant 0.000000e+00 : f32
    %362 = vector.broadcast %cst_238 : f32 to vector<2x32xf32>
    %363 = arith.subf %362, %361 : vector<2x32xf32>
    %364 = math.exp %363 : vector<2x32xf32>
    %cst_239 = arith.constant 1.000000e+00 : f32
    %365 = vector.broadcast %cst_239 : f32 to vector<2x32xf32>
    %366 = arith.addf %365, %364 : vector<2x32xf32>
    %367 = math.log %366 : vector<2x32xf32>
    %368 = arith.addf %360, %367 : vector<2x32xf32>
    %cst_240 = arith.constant 0.000000e+00 : f32
    %369 = vector.broadcast %cst_240 : f32 to vector<2x32xf32>
    %370 = arith.subf %369, %333 : vector<2x32xf32>
    %371 = math.exp %370 : vector<2x32xf32>
    %372 = arith.subf %333, %348 : vector<2x32xf32>
    %cst_241 = arith.constant 5.000000e-01 : f32
    %373 = vector.broadcast %cst_241 : f32 to vector<2x32xf32>
    %374 = arith.mulf %373, %372 : vector<2x32xf32>
    %375 = arith.mulf %351, %351 : vector<2x32xf32>
    %376 = arith.subf %347, %332 : vector<2x32xf32>
    %377 = arith.mulf %376, %376 : vector<2x32xf32>
    %378 = arith.addf %375, %377 : vector<2x32xf32>
    %cst_242 = arith.constant 5.000000e-01 : f32
    %379 = vector.broadcast %cst_242 : f32 to vector<2x32xf32>
    %380 = arith.mulf %379, %371 : vector<2x32xf32>
    %381 = arith.mulf %378, %380 : vector<2x32xf32>
    %382 = arith.addf %374, %381 : vector<2x32xf32>
    %cst_243 = arith.constant 5.000000e-01 : f32
    %383 = vector.broadcast %cst_243 : f32 to vector<2x32xf32>
    %384 = arith.subf %382, %383 : vector<2x32xf32>
    %385 = arith.addf %230, %384 : vector<2x32xf32>
    %c2_244 = arith.constant 2 : index
    %c0_245 = arith.constant 0 : index
    %c0_246 = arith.constant 0 : index
    %386 = vector.load %arg0[%c2_244, %c0_245, %c0_246] : memref<8x2x4xf32, #tpu.memory_space<vmem>>, vector<1x2x4xf32>
    %387 = vector.shape_cast %386 : vector<1x2x4xf32> to vector<2x4xf32>
    %388 = vector.broadcast %324 : f32 to vector<2x4xf32>
    %389 = arith.mulf %388, %387 : vector<2x4xf32>
    %390 = vector.broadcast %325 : f32 to vector<2x4xf32>
    %391 = arith.mulf %390, %321 : vector<2x4xf32>
    %392 = arith.addf %389, %391 : vector<2x4xf32>
    %c0_247 = arith.constant 0 : index
    %c0_248 = arith.constant 0 : index
    %393 = vector.load %arg15[%c0_247, %c0_248] : memref<4x64xf32, #tpu.memory_space<vmem>>, vector<4x64xf32>
    %cst_249 = arith.constant dense<0.000000e+00> : vector<2x64xf32>
    %394 = tpu.matmul %392, %393, %cst_249 {dimension_numbers = #tpu.dot_dimension_numbers<[1], [0], [0], [1], [0, 0, 1, 1], [], []>} : vector<2x4xf32>, vector<4x64xf32>, vector<2x64xf32> -> vector<2x64xf32>
    %c0_250 = arith.constant 0 : index
    %c0_251 = arith.constant 0 : index
    %395 = vector.load %arg16[%c0_250, %c0_251] : memref<32x64xf32, #tpu.memory_space<vmem>>, vector<32x64xf32>
    %cst_252 = arith.constant dense<0.000000e+00> : vector<2x64xf32>
    %396 = tpu.matmul %368, %395, %cst_252 {dimension_numbers = #tpu.dot_dimension_numbers<[1], [0], [0], [1], [0, 0, 1, 1], [], []>} : vector<2x32xf32>, vector<32x64xf32>, vector<2x64xf32> -> vector<2x64xf32>
    %397 = arith.addf %394, %396 : vector<2x64xf32>
    %c0_253 = arith.constant 0 : index
    %c0_254 = arith.constant 0 : index
    %398 = vector.load %arg17[%c0_253, %c0_254] : memref<8x64xf32, #tpu.memory_space<vmem>>, vector<8x64xf32>
    %cst_255 = arith.constant dense<0.000000e+00> : vector<2x64xf32>
    %399 = tpu.matmul %317, %398, %cst_255 {dimension_numbers = #tpu.dot_dimension_numbers<[1], [0], [0], [1], [0, 0, 1, 1], [], []>} : vector<2x8xf32>, vector<8x64xf32>, vector<2x64xf32> -> vector<2x64xf32>
    %400 = arith.addf %397, %399 : vector<2x64xf32>
    %c0_256 = arith.constant 0 : index
    %c0_257 = arith.constant 0 : index
    %401 = vector.load %arg18[%c0_256, %c0_257] : memref<16x64xf32, #tpu.memory_space<vmem>>, vector<16x64xf32>
    %cst_258 = arith.constant dense<0.000000e+00> : vector<2x64xf32>
    %402 = tpu.matmul %323, %401, %cst_258 {dimension_numbers = #tpu.dot_dimension_numbers<[1], [0], [0], [1], [0, 0, 1, 1], [], []>} : vector<2x16xf32>, vector<16x64xf32>, vector<2x64xf32> -> vector<2x64xf32>
    %403 = arith.addf %400, %402 : vector<2x64xf32>
    %c0_259 = arith.constant 0 : index
    %c0_260 = arith.constant 0 : index
    %404 = vector.load %arg19[%c0_259, %c0_260] : memref<1x64xf32, #tpu.memory_space<vmem>>, vector<1x64xf32>
    %405 = vector.broadcast %404 : vector<1x64xf32> to vector<2x64xf32>
    %406 = arith.addf %403, %405 : vector<2x64xf32>
    %cst_261 = arith.constant 0.000000e+00 : f32
    %407 = vector.broadcast %cst_261 : f32 to vector<2x64xf32>
    %408 = arith.maximumf %406, %407 : vector<2x64xf32>
    %c0_262 = arith.constant 0 : index
    %c0_263 = arith.constant 0 : index
    %409 = vector.load %arg20[%c0_262, %c0_263] : memref<64x4xf32, #tpu.memory_space<vmem>>, vector<64x4xf32>
    %cst_264 = arith.constant dense<0.000000e+00> : vector<2x4xf32>
    %410 = tpu.matmul %408, %409, %cst_264 {dimension_numbers = #tpu.dot_dimension_numbers<[1], [0], [0], [1], [0, 0, 1, 1], [], []>} : vector<2x64xf32>, vector<64x4xf32>, vector<2x4xf32> -> vector<2x4xf32>
    %c0_265 = arith.constant 0 : index
    %c0_266 = arith.constant 0 : index
    %411 = vector.load %arg21[%c0_265, %c0_266] : memref<1x4xf32, #tpu.memory_space<vmem>>, vector<1x4xf32>
    %412 = vector.broadcast %411 : vector<1x4xf32> to vector<2x4xf32>
    %413 = arith.addf %410, %412 : vector<2x4xf32>
    %414 = arith.subf %413, %387 : vector<2x4xf32>
    %415 = arith.mulf %414, %414 : vector<2x4xf32>
    %416 = arith.addf %261, %415 : vector<2x4xf32>
    %c0_267 = arith.constant 0 : index
    %c0_268 = arith.constant 0 : index
    %417 = vector.load %arg22[%c0_267, %c0_268] : memref<4x128xf32, #tpu.memory_space<vmem>>, vector<4x128xf32>
    %cst_269 = arith.constant dense<0.000000e+00> : vector<2x128xf32>
    %418 = tpu.matmul %315, %417, %cst_269 {dimension_numbers = #tpu.dot_dimension_numbers<[1], [0], [0], [1], [0, 0, 1, 1], [], []>} : vector<2x4xf32>, vector<4x128xf32>, vector<2x128xf32> -> vector<2x128xf32>
    %c0_270 = arith.constant 0 : index
    %c0_271 = arith.constant 0 : index
    %419 = vector.load %arg23[%c0_270, %c0_271] : memref<32x128xf32, #tpu.memory_space<vmem>>, vector<32x128xf32>
    %cst_272 = arith.constant dense<0.000000e+00> : vector<2x128xf32>
    %420 = tpu.matmul %368, %419, %cst_272 {dimension_numbers = #tpu.dot_dimension_numbers<[1], [0], [0], [1], [0, 0, 1, 1], [], []>} : vector<2x32xf32>, vector<32x128xf32>, vector<2x128xf32> -> vector<2x128xf32>
    %421 = arith.addf %418, %420 : vector<2x128xf32>
    %c0_273 = arith.constant 0 : index
    %c0_274 = arith.constant 0 : index
    %422 = vector.load %arg24[%c0_273, %c0_274] : memref<8x128xf32, #tpu.memory_space<vmem>>, vector<8x128xf32>
    %cst_275 = arith.constant dense<0.000000e+00> : vector<2x128xf32>
    %423 = tpu.matmul %317, %422, %cst_275 {dimension_numbers = #tpu.dot_dimension_numbers<[1], [0], [0], [1], [0, 0, 1, 1], [], []>} : vector<2x8xf32>, vector<8x128xf32>, vector<2x128xf32> -> vector<2x128xf32>
    %424 = arith.addf %421, %423 : vector<2x128xf32>
    %c0_276 = arith.constant 0 : index
    %c0_277 = arith.constant 0 : index
    %425 = vector.load %arg25[%c0_276, %c0_277] : memref<32x128xf32, #tpu.memory_space<vmem>>, vector<32x128xf32>
    %cst_278 = arith.constant dense<0.000000e+00> : vector<2x128xf32>
    %426 = tpu.matmul %290, %425, %cst_278 {dimension_numbers = #tpu.dot_dimension_numbers<[1], [0], [0], [1], [0, 0, 1, 1], [], []>} : vector<2x32xf32>, vector<32x128xf32>, vector<2x128xf32> -> vector<2x128xf32>
    %427 = arith.addf %424, %426 : vector<2x128xf32>
    %c0_279 = arith.constant 0 : index
    %c0_280 = arith.constant 0 : index
    %428 = vector.load %arg26[%c0_279, %c0_280] : memref<1x128xf32, #tpu.memory_space<vmem>>, vector<1x128xf32>
    %429 = vector.broadcast %428 : vector<1x128xf32> to vector<2x128xf32>
    %430 = arith.addf %427, %429 : vector<2x128xf32>
    %431 = arith.negf %430 : vector<2x128xf32>
    %432 = math.exp %431 : vector<2x128xf32>
    %cst_281 = arith.constant 1.000000e+00 : f32
    %433 = vector.broadcast %cst_281 : f32 to vector<2x128xf32>
    %434 = arith.addf %433, %432 : vector<2x128xf32>
    %435 = arith.divf %433, %434 : vector<2x128xf32>
    %436 = math.tanh %430 : vector<2x128xf32>
    %437 = vector.extract_strided_slice %435 {offsets = [0, 0], sizes = [2, 32], strides = [1, 1]} : vector<2x128xf32> to vector<2x32xf32>
    %438 = vector.extract_strided_slice %435 {offsets = [0, 32], sizes = [2, 32], strides = [1, 1]} : vector<2x128xf32> to vector<2x32xf32>
    %439 = vector.extract_strided_slice %436 {offsets = [0, 64], sizes = [2, 32], strides = [1, 1]} : vector<2x128xf32> to vector<2x32xf32>
    %440 = vector.extract_strided_slice %435 {offsets = [0, 96], sizes = [2, 32], strides = [1, 1]} : vector<2x128xf32> to vector<2x32xf32>
    %441 = arith.mulf %438, %288 : vector<2x32xf32>
    %442 = arith.mulf %437, %439 : vector<2x32xf32>
    %443 = arith.addf %441, %442 : vector<2x32xf32>
    %444 = math.tanh %443 : vector<2x32xf32>
    %445 = arith.mulf %440, %444 : vector<2x32xf32>
    %c0_282 = arith.constant 0 : index
    %c0_283 = arith.constant 0 : index
    %446 = vector.load %arg27[%c0_282, %c0_283] : memref<32x128xf32, #tpu.memory_space<vmem>>, vector<32x128xf32>
    %cst_284 = arith.constant dense<0.000000e+00> : vector<2x128xf32>
    %447 = tpu.matmul %445, %446, %cst_284 {dimension_numbers = #tpu.dot_dimension_numbers<[1], [0], [0], [1], [0, 0, 1, 1], [], []>} : vector<2x32xf32>, vector<32x128xf32>, vector<2x128xf32> -> vector<2x128xf32>
    %c0_285 = arith.constant 0 : index
    %c0_286 = arith.constant 0 : index
    %448 = vector.load %arg28[%c0_285, %c0_286] : memref<32x128xf32, #tpu.memory_space<vmem>>, vector<32x128xf32>
    %cst_287 = arith.constant dense<0.000000e+00> : vector<2x128xf32>
    %449 = tpu.matmul %313, %448, %cst_287 {dimension_numbers = #tpu.dot_dimension_numbers<[1], [0], [0], [1], [0, 0, 1, 1], [], []>} : vector<2x32xf32>, vector<32x128xf32>, vector<2x128xf32> -> vector<2x128xf32>
    %450 = arith.addf %447, %449 : vector<2x128xf32>
    %c0_288 = arith.constant 0 : index
    %c0_289 = arith.constant 0 : index
    %451 = vector.load %arg29[%c0_288, %c0_289] : memref<1x128xf32, #tpu.memory_space<vmem>>, vector<1x128xf32>
    %452 = vector.broadcast %451 : vector<1x128xf32> to vector<2x128xf32>
    %453 = arith.addf %450, %452 : vector<2x128xf32>
    %454 = arith.negf %453 : vector<2x128xf32>
    %455 = math.exp %454 : vector<2x128xf32>
    %cst_290 = arith.constant 1.000000e+00 : f32
    %456 = vector.broadcast %cst_290 : f32 to vector<2x128xf32>
    %457 = arith.addf %456, %455 : vector<2x128xf32>
    %458 = arith.divf %456, %457 : vector<2x128xf32>
    %459 = math.tanh %453 : vector<2x128xf32>
    %460 = vector.extract_strided_slice %458 {offsets = [0, 0], sizes = [2, 32], strides = [1, 1]} : vector<2x128xf32> to vector<2x32xf32>
    %461 = vector.extract_strided_slice %458 {offsets = [0, 32], sizes = [2, 32], strides = [1, 1]} : vector<2x128xf32> to vector<2x32xf32>
    %462 = vector.extract_strided_slice %459 {offsets = [0, 64], sizes = [2, 32], strides = [1, 1]} : vector<2x128xf32> to vector<2x32xf32>
    %463 = vector.extract_strided_slice %458 {offsets = [0, 96], sizes = [2, 32], strides = [1, 1]} : vector<2x128xf32> to vector<2x32xf32>
    %464 = arith.mulf %461, %311 : vector<2x32xf32>
    %465 = arith.mulf %460, %462 : vector<2x32xf32>
    %466 = arith.addf %464, %465 : vector<2x32xf32>
    %467 = math.tanh %466 : vector<2x32xf32>
    %468 = arith.mulf %463, %467 : vector<2x32xf32>
    %c3 = arith.constant 3 : index
    %c0_291 = arith.constant 0 : index
    %c0_292 = arith.constant 0 : index
    %469 = vector.load %arg0[%c3, %c0_291, %c0_292] : memref<8x2x4xf32, #tpu.memory_space<vmem>>, vector<1x2x4xf32>
    %470 = vector.shape_cast %469 : vector<1x2x4xf32> to vector<2x4xf32>
    %c3_293 = arith.constant 3 : index
    %c0_294 = arith.constant 0 : index
    %c0_295 = arith.constant 0 : index
    %471 = vector.load %arg1[%c3_293, %c0_294, %c0_295] : memref<8x2x8xf32, #tpu.memory_space<vmem>>, vector<1x2x8xf32>
    %472 = vector.shape_cast %471 : vector<1x2x8xf32> to vector<2x8xf32>
    %c3_296 = arith.constant 3 : index
    %c0_297 = arith.constant 0 : index
    %c0_298 = arith.constant 0 : index
    %473 = vector.load %arg2[%c3_296, %c0_297, %c0_298] : memref<8x2x32xf32, #tpu.memory_space<vmem>>, vector<1x2x32xf32>
    %474 = vector.shape_cast %473 : vector<1x2x32xf32> to vector<2x32xf32>
    %c3_299 = arith.constant 3 : index
    %c0_300 = arith.constant 0 : index
    %c0_301 = arith.constant 0 : index
    %475 = vector.load %arg3[%c3_299, %c0_300, %c0_301] : memref<8x2x4xf32, #tpu.memory_space<vmem>>, vector<1x2x4xf32>
    %476 = vector.shape_cast %475 : vector<1x2x4xf32> to vector<2x4xf32>
    %c3_302 = arith.constant 3 : index
    %c0_303 = arith.constant 0 : index
    %c0_304 = arith.constant 0 : index
    %477 = vector.load %arg4[%c3_302, %c0_303, %c0_304] : memref<8x2x16xf32, #tpu.memory_space<vmem>>, vector<1x2x16xf32>
    %478 = vector.shape_cast %477 : vector<1x2x16xf32> to vector<2x16xf32>
    %c3_305 = arith.constant 3 : index
    %c0_306 = arith.constant 0 : index
    %479 = memref.load %arg5[%c3_305, %c0_306] : memref<8x2xf32, #tpu.memory_space<smem>>
    %c3_307 = arith.constant 3 : index
    %c1_308 = arith.constant 1 : index
    %480 = memref.load %arg5[%c3_307, %c1_308] : memref<8x2xf32, #tpu.memory_space<smem>>
    %481 = arith.addf %468, %466 : vector<2x32xf32>
    %c0_309 = arith.constant 0 : index
    %c0_310 = arith.constant 0 : index
    %482 = vector.load %arg8[%c0_309, %c0_310] : memref<32x64xf32, #tpu.memory_space<vmem>>, vector<32x64xf32>
    %cst_311 = arith.constant dense<0.000000e+00> : vector<2x64xf32>
    %483 = tpu.matmul %481, %482, %cst_311 {dimension_numbers = #tpu.dot_dimension_numbers<[1], [0], [0], [1], [0, 0, 1, 1], [], []>} : vector<2x32xf32>, vector<32x64xf32>, vector<2x64xf32> -> vector<2x64xf32>
    %c0_312 = arith.constant 0 : index
    %c0_313 = arith.constant 0 : index
    %484 = vector.load %arg9[%c0_312, %c0_313] : memref<1x64xf32, #tpu.memory_space<vmem>>, vector<1x64xf32>
    %485 = vector.broadcast %484 : vector<1x64xf32> to vector<2x64xf32>
    %486 = arith.addf %483, %485 : vector<2x64xf32>
    %487 = vector.extract_strided_slice %486 {offsets = [0, 0], sizes = [2, 32], strides = [1, 1]} : vector<2x64xf32> to vector<2x32xf32>
    %488 = vector.extract_strided_slice %486 {offsets = [0, 32], sizes = [2, 32], strides = [1, 1]} : vector<2x64xf32> to vector<2x32xf32>
    %c0_314 = arith.constant 0 : index
    %c0_315 = arith.constant 0 : index
    %489 = vector.load %arg6[%c0_314, %c0_315] : memref<4x32xf32, #tpu.memory_space<vmem>>, vector<4x32xf32>
    %cst_316 = arith.constant dense<0.000000e+00> : vector<2x32xf32>
    %490 = tpu.matmul %470, %489, %cst_316 {dimension_numbers = #tpu.dot_dimension_numbers<[1], [0], [0], [1], [0, 0, 1, 1], [], []>} : vector<2x4xf32>, vector<4x32xf32>, vector<2x32xf32> -> vector<2x32xf32>
    %c0_317 = arith.constant 0 : index
    %c0_318 = arith.constant 0 : index
    %491 = vector.load %arg7[%c0_317, %c0_318] : memref<1x32xf32, #tpu.memory_space<vmem>>, vector<1x32xf32>
    %492 = vector.broadcast %491 : vector<1x32xf32> to vector<2x32xf32>
    %493 = arith.addf %490, %492 : vector<2x32xf32>
    %c0_319 = arith.constant 0 : index
    %c0_320 = arith.constant 0 : index
    %494 = vector.load %arg10[%c0_319, %c0_320] : memref<32x64xf32, #tpu.memory_space<vmem>>, vector<32x64xf32>
    %cst_321 = arith.constant dense<0.000000e+00> : vector<2x64xf32>
    %495 = tpu.matmul %493, %494, %cst_321 {dimension_numbers = #tpu.dot_dimension_numbers<[1], [0], [0], [1], [0, 0, 1, 1], [], []>} : vector<2x32xf32>, vector<32x64xf32>, vector<2x64xf32> -> vector<2x64xf32>
    %c0_322 = arith.constant 0 : index
    %c0_323 = arith.constant 0 : index
    %496 = vector.load %arg11[%c0_322, %c0_323] : memref<32x64xf32, #tpu.memory_space<vmem>>, vector<32x64xf32>
    %cst_324 = arith.constant dense<0.000000e+00> : vector<2x64xf32>
    %497 = tpu.matmul %481, %496, %cst_324 {dimension_numbers = #tpu.dot_dimension_numbers<[1], [0], [0], [1], [0, 0, 1, 1], [], []>} : vector<2x32xf32>, vector<32x64xf32>, vector<2x64xf32> -> vector<2x64xf32>
    %498 = arith.addf %495, %497 : vector<2x64xf32>
    %c0_325 = arith.constant 0 : index
    %c0_326 = arith.constant 0 : index
    %499 = vector.load %arg12[%c0_325, %c0_326] : memref<1x64xf32, #tpu.memory_space<vmem>>, vector<1x64xf32>
    %500 = vector.broadcast %499 : vector<1x64xf32> to vector<2x64xf32>
    %501 = arith.addf %498, %500 : vector<2x64xf32>
    %502 = vector.extract_strided_slice %501 {offsets = [0, 0], sizes = [2, 32], strides = [1, 1]} : vector<2x64xf32> to vector<2x32xf32>
    %503 = vector.extract_strided_slice %501 {offsets = [0, 32], sizes = [2, 32], strides = [1, 1]} : vector<2x64xf32> to vector<2x32xf32>
    %cst_327 = arith.constant 5.000000e-01 : f32
    %504 = vector.broadcast %cst_327 : f32 to vector<2x32xf32>
    %505 = arith.mulf %504, %503 : vector<2x32xf32>
    %506 = math.exp %505 : vector<2x32xf32>
    %507 = arith.mulf %506, %474 : vector<2x32xf32>
    %508 = arith.addf %502, %507 : vector<2x32xf32>
    %c0_328 = arith.constant 0 : index
    %c0_329 = arith.constant 0 : index
    %509 = vector.load %arg13[%c0_328, %c0_329] : memref<32x32xf32, #tpu.memory_space<vmem>>, vector<32x32xf32>
    %cst_330 = arith.constant dense<0.000000e+00> : vector<2x32xf32>
    %510 = tpu.matmul %508, %509, %cst_330 {dimension_numbers = #tpu.dot_dimension_numbers<[1], [0], [0], [1], [0, 0, 1, 1], [], []>} : vector<2x32xf32>, vector<32x32xf32>, vector<2x32xf32> -> vector<2x32xf32>
    %c0_331 = arith.constant 0 : index
    %c0_332 = arith.constant 0 : index
    %511 = vector.load %arg14[%c0_331, %c0_332] : memref<1x32xf32, #tpu.memory_space<vmem>>, vector<1x32xf32>
    %512 = vector.broadcast %511 : vector<1x32xf32> to vector<2x32xf32>
    %513 = arith.addf %510, %512 : vector<2x32xf32>
    %cst_333 = arith.constant 0.000000e+00 : f32
    %514 = vector.broadcast %cst_333 : f32 to vector<2x32xf32>
    %515 = arith.maximumf %513, %514 : vector<2x32xf32>
    %516 = math.absf %513 : vector<2x32xf32>
    %cst_334 = arith.constant 0.000000e+00 : f32
    %517 = vector.broadcast %cst_334 : f32 to vector<2x32xf32>
    %518 = arith.subf %517, %516 : vector<2x32xf32>
    %519 = math.exp %518 : vector<2x32xf32>
    %cst_335 = arith.constant 1.000000e+00 : f32
    %520 = vector.broadcast %cst_335 : f32 to vector<2x32xf32>
    %521 = arith.addf %520, %519 : vector<2x32xf32>
    %522 = math.log %521 : vector<2x32xf32>
    %523 = arith.addf %515, %522 : vector<2x32xf32>
    %cst_336 = arith.constant 0.000000e+00 : f32
    %524 = vector.broadcast %cst_336 : f32 to vector<2x32xf32>
    %525 = arith.subf %524, %488 : vector<2x32xf32>
    %526 = math.exp %525 : vector<2x32xf32>
    %527 = arith.subf %488, %503 : vector<2x32xf32>
    %cst_337 = arith.constant 5.000000e-01 : f32
    %528 = vector.broadcast %cst_337 : f32 to vector<2x32xf32>
    %529 = arith.mulf %528, %527 : vector<2x32xf32>
    %530 = arith.mulf %506, %506 : vector<2x32xf32>
    %531 = arith.subf %502, %487 : vector<2x32xf32>
    %532 = arith.mulf %531, %531 : vector<2x32xf32>
    %533 = arith.addf %530, %532 : vector<2x32xf32>
    %cst_338 = arith.constant 5.000000e-01 : f32
    %534 = vector.broadcast %cst_338 : f32 to vector<2x32xf32>
    %535 = arith.mulf %534, %526 : vector<2x32xf32>
    %536 = arith.mulf %533, %535 : vector<2x32xf32>
    %537 = arith.addf %529, %536 : vector<2x32xf32>
    %cst_339 = arith.constant 5.000000e-01 : f32
    %538 = vector.broadcast %cst_339 : f32 to vector<2x32xf32>
    %539 = arith.subf %537, %538 : vector<2x32xf32>
    %540 = arith.addf %385, %539 : vector<2x32xf32>
    %c3_340 = arith.constant 3 : index
    %c0_341 = arith.constant 0 : index
    %c0_342 = arith.constant 0 : index
    %541 = vector.load %arg0[%c3_340, %c0_341, %c0_342] : memref<8x2x4xf32, #tpu.memory_space<vmem>>, vector<1x2x4xf32>
    %542 = vector.shape_cast %541 : vector<1x2x4xf32> to vector<2x4xf32>
    %543 = vector.broadcast %479 : f32 to vector<2x4xf32>
    %544 = arith.mulf %543, %542 : vector<2x4xf32>
    %545 = vector.broadcast %480 : f32 to vector<2x4xf32>
    %546 = arith.mulf %545, %476 : vector<2x4xf32>
    %547 = arith.addf %544, %546 : vector<2x4xf32>
    %c0_343 = arith.constant 0 : index
    %c0_344 = arith.constant 0 : index
    %548 = vector.load %arg15[%c0_343, %c0_344] : memref<4x64xf32, #tpu.memory_space<vmem>>, vector<4x64xf32>
    %cst_345 = arith.constant dense<0.000000e+00> : vector<2x64xf32>
    %549 = tpu.matmul %547, %548, %cst_345 {dimension_numbers = #tpu.dot_dimension_numbers<[1], [0], [0], [1], [0, 0, 1, 1], [], []>} : vector<2x4xf32>, vector<4x64xf32>, vector<2x64xf32> -> vector<2x64xf32>
    %c0_346 = arith.constant 0 : index
    %c0_347 = arith.constant 0 : index
    %550 = vector.load %arg16[%c0_346, %c0_347] : memref<32x64xf32, #tpu.memory_space<vmem>>, vector<32x64xf32>
    %cst_348 = arith.constant dense<0.000000e+00> : vector<2x64xf32>
    %551 = tpu.matmul %523, %550, %cst_348 {dimension_numbers = #tpu.dot_dimension_numbers<[1], [0], [0], [1], [0, 0, 1, 1], [], []>} : vector<2x32xf32>, vector<32x64xf32>, vector<2x64xf32> -> vector<2x64xf32>
    %552 = arith.addf %549, %551 : vector<2x64xf32>
    %c0_349 = arith.constant 0 : index
    %c0_350 = arith.constant 0 : index
    %553 = vector.load %arg17[%c0_349, %c0_350] : memref<8x64xf32, #tpu.memory_space<vmem>>, vector<8x64xf32>
    %cst_351 = arith.constant dense<0.000000e+00> : vector<2x64xf32>
    %554 = tpu.matmul %472, %553, %cst_351 {dimension_numbers = #tpu.dot_dimension_numbers<[1], [0], [0], [1], [0, 0, 1, 1], [], []>} : vector<2x8xf32>, vector<8x64xf32>, vector<2x64xf32> -> vector<2x64xf32>
    %555 = arith.addf %552, %554 : vector<2x64xf32>
    %c0_352 = arith.constant 0 : index
    %c0_353 = arith.constant 0 : index
    %556 = vector.load %arg18[%c0_352, %c0_353] : memref<16x64xf32, #tpu.memory_space<vmem>>, vector<16x64xf32>
    %cst_354 = arith.constant dense<0.000000e+00> : vector<2x64xf32>
    %557 = tpu.matmul %478, %556, %cst_354 {dimension_numbers = #tpu.dot_dimension_numbers<[1], [0], [0], [1], [0, 0, 1, 1], [], []>} : vector<2x16xf32>, vector<16x64xf32>, vector<2x64xf32> -> vector<2x64xf32>
    %558 = arith.addf %555, %557 : vector<2x64xf32>
    %c0_355 = arith.constant 0 : index
    %c0_356 = arith.constant 0 : index
    %559 = vector.load %arg19[%c0_355, %c0_356] : memref<1x64xf32, #tpu.memory_space<vmem>>, vector<1x64xf32>
    %560 = vector.broadcast %559 : vector<1x64xf32> to vector<2x64xf32>
    %561 = arith.addf %558, %560 : vector<2x64xf32>
    %cst_357 = arith.constant 0.000000e+00 : f32
    %562 = vector.broadcast %cst_357 : f32 to vector<2x64xf32>
    %563 = arith.maximumf %561, %562 : vector<2x64xf32>
    %c0_358 = arith.constant 0 : index
    %c0_359 = arith.constant 0 : index
    %564 = vector.load %arg20[%c0_358, %c0_359] : memref<64x4xf32, #tpu.memory_space<vmem>>, vector<64x4xf32>
    %cst_360 = arith.constant dense<0.000000e+00> : vector<2x4xf32>
    %565 = tpu.matmul %563, %564, %cst_360 {dimension_numbers = #tpu.dot_dimension_numbers<[1], [0], [0], [1], [0, 0, 1, 1], [], []>} : vector<2x64xf32>, vector<64x4xf32>, vector<2x4xf32> -> vector<2x4xf32>
    %c0_361 = arith.constant 0 : index
    %c0_362 = arith.constant 0 : index
    %566 = vector.load %arg21[%c0_361, %c0_362] : memref<1x4xf32, #tpu.memory_space<vmem>>, vector<1x4xf32>
    %567 = vector.broadcast %566 : vector<1x4xf32> to vector<2x4xf32>
    %568 = arith.addf %565, %567 : vector<2x4xf32>
    %569 = arith.subf %568, %542 : vector<2x4xf32>
    %570 = arith.mulf %569, %569 : vector<2x4xf32>
    %571 = arith.addf %416, %570 : vector<2x4xf32>
    %c4 = arith.constant 4 : index
    %c0_363 = arith.constant 0 : index
    %c0_364 = arith.constant 0 : index
    %572 = vector.load %arg1[%c4, %c0_363, %c0_364] : memref<8x2x8xf32, #tpu.memory_space<vmem>>, vector<1x2x8xf32>
    %573 = vector.shape_cast %572 : vector<1x2x8xf32> to vector<2x8xf32>
    %c4_365 = arith.constant 4 : index
    %c0_366 = arith.constant 0 : index
    %c0_367 = arith.constant 0 : index
    %574 = vector.load %arg3[%c4_365, %c0_366, %c0_367] : memref<8x2x4xf32, #tpu.memory_space<vmem>>, vector<1x2x4xf32>
    %575 = vector.shape_cast %574 : vector<1x2x4xf32> to vector<2x4xf32>
    %c4_368 = arith.constant 4 : index
    %c0_369 = arith.constant 0 : index
    %c0_370 = arith.constant 0 : index
    %576 = vector.load %arg4[%c4_368, %c0_369, %c0_370] : memref<8x2x16xf32, #tpu.memory_space<vmem>>, vector<1x2x16xf32>
    %577 = vector.shape_cast %576 : vector<1x2x16xf32> to vector<2x16xf32>
    %c4_371 = arith.constant 4 : index
    %c0_372 = arith.constant 0 : index
    %578 = memref.load %arg5[%c4_371, %c0_372] : memref<8x2xf32, #tpu.memory_space<smem>>
    %c4_373 = arith.constant 4 : index
    %c1_374 = arith.constant 1 : index
    %579 = memref.load %arg5[%c4_373, %c1_374] : memref<8x2xf32, #tpu.memory_space<smem>>
    %c0_375 = arith.constant 0 : index
    %c0_376 = arith.constant 0 : index
    %c0_377 = arith.constant 0 : index
    %580 = vector.load %arg0[%c0_375, %c0_376, %c0_377] : memref<8x2x4xf32, #tpu.memory_space<vmem>>, vector<1x2x4xf32>
    %581 = vector.shape_cast %580 : vector<1x2x4xf32> to vector<2x4xf32>
    %582 = vector.broadcast %578 : f32 to vector<2x4xf32>
    %583 = arith.mulf %582, %581 : vector<2x4xf32>
    %584 = vector.broadcast %579 : f32 to vector<2x4xf32>
    %585 = arith.mulf %584, %575 : vector<2x4xf32>
    %586 = arith.addf %583, %585 : vector<2x4xf32>
    %c0_378 = arith.constant 0 : index
    %c0_379 = arith.constant 0 : index
    %587 = vector.load %arg15[%c0_378, %c0_379] : memref<4x64xf32, #tpu.memory_space<vmem>>, vector<4x64xf32>
    %cst_380 = arith.constant dense<0.000000e+00> : vector<2x64xf32>
    %588 = tpu.matmul %586, %587, %cst_380 {dimension_numbers = #tpu.dot_dimension_numbers<[1], [0], [0], [1], [0, 0, 1, 1], [], []>} : vector<2x4xf32>, vector<4x64xf32>, vector<2x64xf32> -> vector<2x64xf32>
    %c0_381 = arith.constant 0 : index
    %c0_382 = arith.constant 0 : index
    %589 = vector.load %arg16[%c0_381, %c0_382] : memref<32x64xf32, #tpu.memory_space<vmem>>, vector<32x64xf32>
    %cst_383 = arith.constant dense<0.000000e+00> : vector<2x64xf32>
    %590 = tpu.matmul %523, %589, %cst_383 {dimension_numbers = #tpu.dot_dimension_numbers<[1], [0], [0], [1], [0, 0, 1, 1], [], []>} : vector<2x32xf32>, vector<32x64xf32>, vector<2x64xf32> -> vector<2x64xf32>
    %591 = arith.addf %588, %590 : vector<2x64xf32>
    %c0_384 = arith.constant 0 : index
    %c0_385 = arith.constant 0 : index
    %592 = vector.load %arg17[%c0_384, %c0_385] : memref<8x64xf32, #tpu.memory_space<vmem>>, vector<8x64xf32>
    %cst_386 = arith.constant dense<0.000000e+00> : vector<2x64xf32>
    %593 = tpu.matmul %573, %592, %cst_386 {dimension_numbers = #tpu.dot_dimension_numbers<[1], [0], [0], [1], [0, 0, 1, 1], [], []>} : vector<2x8xf32>, vector<8x64xf32>, vector<2x64xf32> -> vector<2x64xf32>
    %594 = arith.addf %591, %593 : vector<2x64xf32>
    %c0_387 = arith.constant 0 : index
    %c0_388 = arith.constant 0 : index
    %595 = vector.load %arg18[%c0_387, %c0_388] : memref<16x64xf32, #tpu.memory_space<vmem>>, vector<16x64xf32>
    %cst_389 = arith.constant dense<0.000000e+00> : vector<2x64xf32>
    %596 = tpu.matmul %577, %595, %cst_389 {dimension_numbers = #tpu.dot_dimension_numbers<[1], [0], [0], [1], [0, 0, 1, 1], [], []>} : vector<2x16xf32>, vector<16x64xf32>, vector<2x64xf32> -> vector<2x64xf32>
    %597 = arith.addf %594, %596 : vector<2x64xf32>
    %c0_390 = arith.constant 0 : index
    %c0_391 = arith.constant 0 : index
    %598 = vector.load %arg19[%c0_390, %c0_391] : memref<1x64xf32, #tpu.memory_space<vmem>>, vector<1x64xf32>
    %599 = vector.broadcast %598 : vector<1x64xf32> to vector<2x64xf32>
    %600 = arith.addf %597, %599 : vector<2x64xf32>
    %cst_392 = arith.constant 0.000000e+00 : f32
    %601 = vector.broadcast %cst_392 : f32 to vector<2x64xf32>
    %602 = arith.maximumf %600, %601 : vector<2x64xf32>
    %c0_393 = arith.constant 0 : index
    %c0_394 = arith.constant 0 : index
    %603 = vector.load %arg20[%c0_393, %c0_394] : memref<64x4xf32, #tpu.memory_space<vmem>>, vector<64x4xf32>
    %cst_395 = arith.constant dense<0.000000e+00> : vector<2x4xf32>
    %604 = tpu.matmul %602, %603, %cst_395 {dimension_numbers = #tpu.dot_dimension_numbers<[1], [0], [0], [1], [0, 0, 1, 1], [], []>} : vector<2x64xf32>, vector<64x4xf32>, vector<2x4xf32> -> vector<2x4xf32>
    %c0_396 = arith.constant 0 : index
    %c0_397 = arith.constant 0 : index
    %605 = vector.load %arg21[%c0_396, %c0_397] : memref<1x4xf32, #tpu.memory_space<vmem>>, vector<1x4xf32>
    %606 = vector.broadcast %605 : vector<1x4xf32> to vector<2x4xf32>
    %607 = arith.addf %604, %606 : vector<2x4xf32>
    %608 = arith.subf %607, %581 : vector<2x4xf32>
    %609 = arith.mulf %608, %608 : vector<2x4xf32>
    %610 = arith.addf %3, %609 : vector<2x4xf32>
    %c5 = arith.constant 5 : index
    %c0_398 = arith.constant 0 : index
    %c0_399 = arith.constant 0 : index
    %611 = vector.load %arg1[%c5, %c0_398, %c0_399] : memref<8x2x8xf32, #tpu.memory_space<vmem>>, vector<1x2x8xf32>
    %612 = vector.shape_cast %611 : vector<1x2x8xf32> to vector<2x8xf32>
    %c5_400 = arith.constant 5 : index
    %c0_401 = arith.constant 0 : index
    %c0_402 = arith.constant 0 : index
    %613 = vector.load %arg3[%c5_400, %c0_401, %c0_402] : memref<8x2x4xf32, #tpu.memory_space<vmem>>, vector<1x2x4xf32>
    %614 = vector.shape_cast %613 : vector<1x2x4xf32> to vector<2x4xf32>
    %c5_403 = arith.constant 5 : index
    %c0_404 = arith.constant 0 : index
    %c0_405 = arith.constant 0 : index
    %615 = vector.load %arg4[%c5_403, %c0_404, %c0_405] : memref<8x2x16xf32, #tpu.memory_space<vmem>>, vector<1x2x16xf32>
    %616 = vector.shape_cast %615 : vector<1x2x16xf32> to vector<2x16xf32>
    %c5_406 = arith.constant 5 : index
    %c0_407 = arith.constant 0 : index
    %617 = memref.load %arg5[%c5_406, %c0_407] : memref<8x2xf32, #tpu.memory_space<smem>>
    %c5_408 = arith.constant 5 : index
    %c1_409 = arith.constant 1 : index
    %618 = memref.load %arg5[%c5_408, %c1_409] : memref<8x2xf32, #tpu.memory_space<smem>>
    %c1_410 = arith.constant 1 : index
    %c0_411 = arith.constant 0 : index
    %c0_412 = arith.constant 0 : index
    %619 = vector.load %arg0[%c1_410, %c0_411, %c0_412] : memref<8x2x4xf32, #tpu.memory_space<vmem>>, vector<1x2x4xf32>
    %620 = vector.shape_cast %619 : vector<1x2x4xf32> to vector<2x4xf32>
    %621 = vector.broadcast %617 : f32 to vector<2x4xf32>
    %622 = arith.mulf %621, %620 : vector<2x4xf32>
    %623 = vector.broadcast %618 : f32 to vector<2x4xf32>
    %624 = arith.mulf %623, %614 : vector<2x4xf32>
    %625 = arith.addf %622, %624 : vector<2x4xf32>
    %c0_413 = arith.constant 0 : index
    %c0_414 = arith.constant 0 : index
    %626 = vector.load %arg15[%c0_413, %c0_414] : memref<4x64xf32, #tpu.memory_space<vmem>>, vector<4x64xf32>
    %cst_415 = arith.constant dense<0.000000e+00> : vector<2x64xf32>
    %627 = tpu.matmul %625, %626, %cst_415 {dimension_numbers = #tpu.dot_dimension_numbers<[1], [0], [0], [1], [0, 0, 1, 1], [], []>} : vector<2x4xf32>, vector<4x64xf32>, vector<2x64xf32> -> vector<2x64xf32>
    %c0_416 = arith.constant 0 : index
    %c0_417 = arith.constant 0 : index
    %628 = vector.load %arg16[%c0_416, %c0_417] : memref<32x64xf32, #tpu.memory_space<vmem>>, vector<32x64xf32>
    %cst_418 = arith.constant dense<0.000000e+00> : vector<2x64xf32>
    %629 = tpu.matmul %523, %628, %cst_418 {dimension_numbers = #tpu.dot_dimension_numbers<[1], [0], [0], [1], [0, 0, 1, 1], [], []>} : vector<2x32xf32>, vector<32x64xf32>, vector<2x64xf32> -> vector<2x64xf32>
    %630 = arith.addf %627, %629 : vector<2x64xf32>
    %c0_419 = arith.constant 0 : index
    %c0_420 = arith.constant 0 : index
    %631 = vector.load %arg17[%c0_419, %c0_420] : memref<8x64xf32, #tpu.memory_space<vmem>>, vector<8x64xf32>
    %cst_421 = arith.constant dense<0.000000e+00> : vector<2x64xf32>
    %632 = tpu.matmul %612, %631, %cst_421 {dimension_numbers = #tpu.dot_dimension_numbers<[1], [0], [0], [1], [0, 0, 1, 1], [], []>} : vector<2x8xf32>, vector<8x64xf32>, vector<2x64xf32> -> vector<2x64xf32>
    %633 = arith.addf %630, %632 : vector<2x64xf32>
    %c0_422 = arith.constant 0 : index
    %c0_423 = arith.constant 0 : index
    %634 = vector.load %arg18[%c0_422, %c0_423] : memref<16x64xf32, #tpu.memory_space<vmem>>, vector<16x64xf32>
    %cst_424 = arith.constant dense<0.000000e+00> : vector<2x64xf32>
    %635 = tpu.matmul %616, %634, %cst_424 {dimension_numbers = #tpu.dot_dimension_numbers<[1], [0], [0], [1], [0, 0, 1, 1], [], []>} : vector<2x16xf32>, vector<16x64xf32>, vector<2x64xf32> -> vector<2x64xf32>
    %636 = arith.addf %633, %635 : vector<2x64xf32>
    %c0_425 = arith.constant 0 : index
    %c0_426 = arith.constant 0 : index
    %637 = vector.load %arg19[%c0_425, %c0_426] : memref<1x64xf32, #tpu.memory_space<vmem>>, vector<1x64xf32>
    %638 = vector.broadcast %637 : vector<1x64xf32> to vector<2x64xf32>
    %639 = arith.addf %636, %638 : vector<2x64xf32>
    %cst_427 = arith.constant 0.000000e+00 : f32
    %640 = vector.broadcast %cst_427 : f32 to vector<2x64xf32>
    %641 = arith.maximumf %639, %640 : vector<2x64xf32>
    %c0_428 = arith.constant 0 : index
    %c0_429 = arith.constant 0 : index
    %642 = vector.load %arg20[%c0_428, %c0_429] : memref<64x4xf32, #tpu.memory_space<vmem>>, vector<64x4xf32>
    %cst_430 = arith.constant dense<0.000000e+00> : vector<2x4xf32>
    %643 = tpu.matmul %641, %642, %cst_430 {dimension_numbers = #tpu.dot_dimension_numbers<[1], [0], [0], [1], [0, 0, 1, 1], [], []>} : vector<2x64xf32>, vector<64x4xf32>, vector<2x4xf32> -> vector<2x4xf32>
    %c0_431 = arith.constant 0 : index
    %c0_432 = arith.constant 0 : index
    %644 = vector.load %arg21[%c0_431, %c0_432] : memref<1x4xf32, #tpu.memory_space<vmem>>, vector<1x4xf32>
    %645 = vector.broadcast %644 : vector<1x4xf32> to vector<2x4xf32>
    %646 = arith.addf %643, %645 : vector<2x4xf32>
    %647 = arith.subf %646, %620 : vector<2x4xf32>
    %648 = arith.mulf %647, %647 : vector<2x4xf32>
    %649 = arith.addf %610, %648 : vector<2x4xf32>
    %c6 = arith.constant 6 : index
    %c0_433 = arith.constant 0 : index
    %c0_434 = arith.constant 0 : index
    %650 = vector.load %arg1[%c6, %c0_433, %c0_434] : memref<8x2x8xf32, #tpu.memory_space<vmem>>, vector<1x2x8xf32>
    %651 = vector.shape_cast %650 : vector<1x2x8xf32> to vector<2x8xf32>
    %c6_435 = arith.constant 6 : index
    %c0_436 = arith.constant 0 : index
    %c0_437 = arith.constant 0 : index
    %652 = vector.load %arg3[%c6_435, %c0_436, %c0_437] : memref<8x2x4xf32, #tpu.memory_space<vmem>>, vector<1x2x4xf32>
    %653 = vector.shape_cast %652 : vector<1x2x4xf32> to vector<2x4xf32>
    %c6_438 = arith.constant 6 : index
    %c0_439 = arith.constant 0 : index
    %c0_440 = arith.constant 0 : index
    %654 = vector.load %arg4[%c6_438, %c0_439, %c0_440] : memref<8x2x16xf32, #tpu.memory_space<vmem>>, vector<1x2x16xf32>
    %655 = vector.shape_cast %654 : vector<1x2x16xf32> to vector<2x16xf32>
    %c6_441 = arith.constant 6 : index
    %c0_442 = arith.constant 0 : index
    %656 = memref.load %arg5[%c6_441, %c0_442] : memref<8x2xf32, #tpu.memory_space<smem>>
    %c6_443 = arith.constant 6 : index
    %c1_444 = arith.constant 1 : index
    %657 = memref.load %arg5[%c6_443, %c1_444] : memref<8x2xf32, #tpu.memory_space<smem>>
    %c2_445 = arith.constant 2 : index
    %c0_446 = arith.constant 0 : index
    %c0_447 = arith.constant 0 : index
    %658 = vector.load %arg0[%c2_445, %c0_446, %c0_447] : memref<8x2x4xf32, #tpu.memory_space<vmem>>, vector<1x2x4xf32>
    %659 = vector.shape_cast %658 : vector<1x2x4xf32> to vector<2x4xf32>
    %660 = vector.broadcast %656 : f32 to vector<2x4xf32>
    %661 = arith.mulf %660, %659 : vector<2x4xf32>
    %662 = vector.broadcast %657 : f32 to vector<2x4xf32>
    %663 = arith.mulf %662, %653 : vector<2x4xf32>
    %664 = arith.addf %661, %663 : vector<2x4xf32>
    %c0_448 = arith.constant 0 : index
    %c0_449 = arith.constant 0 : index
    %665 = vector.load %arg15[%c0_448, %c0_449] : memref<4x64xf32, #tpu.memory_space<vmem>>, vector<4x64xf32>
    %cst_450 = arith.constant dense<0.000000e+00> : vector<2x64xf32>
    %666 = tpu.matmul %664, %665, %cst_450 {dimension_numbers = #tpu.dot_dimension_numbers<[1], [0], [0], [1], [0, 0, 1, 1], [], []>} : vector<2x4xf32>, vector<4x64xf32>, vector<2x64xf32> -> vector<2x64xf32>
    %c0_451 = arith.constant 0 : index
    %c0_452 = arith.constant 0 : index
    %667 = vector.load %arg16[%c0_451, %c0_452] : memref<32x64xf32, #tpu.memory_space<vmem>>, vector<32x64xf32>
    %cst_453 = arith.constant dense<0.000000e+00> : vector<2x64xf32>
    %668 = tpu.matmul %523, %667, %cst_453 {dimension_numbers = #tpu.dot_dimension_numbers<[1], [0], [0], [1], [0, 0, 1, 1], [], []>} : vector<2x32xf32>, vector<32x64xf32>, vector<2x64xf32> -> vector<2x64xf32>
    %669 = arith.addf %666, %668 : vector<2x64xf32>
    %c0_454 = arith.constant 0 : index
    %c0_455 = arith.constant 0 : index
    %670 = vector.load %arg17[%c0_454, %c0_455] : memref<8x64xf32, #tpu.memory_space<vmem>>, vector<8x64xf32>
    %cst_456 = arith.constant dense<0.000000e+00> : vector<2x64xf32>
    %671 = tpu.matmul %651, %670, %cst_456 {dimension_numbers = #tpu.dot_dimension_numbers<[1], [0], [0], [1], [0, 0, 1, 1], [], []>} : vector<2x8xf32>, vector<8x64xf32>, vector<2x64xf32> -> vector<2x64xf32>
    %672 = arith.addf %669, %671 : vector<2x64xf32>
    %c0_457 = arith.constant 0 : index
    %c0_458 = arith.constant 0 : index
    %673 = vector.load %arg18[%c0_457, %c0_458] : memref<16x64xf32, #tpu.memory_space<vmem>>, vector<16x64xf32>
    %cst_459 = arith.constant dense<0.000000e+00> : vector<2x64xf32>
    %674 = tpu.matmul %655, %673, %cst_459 {dimension_numbers = #tpu.dot_dimension_numbers<[1], [0], [0], [1], [0, 0, 1, 1], [], []>} : vector<2x16xf32>, vector<16x64xf32>, vector<2x64xf32> -> vector<2x64xf32>
    %675 = arith.addf %672, %674 : vector<2x64xf32>
    %c0_460 = arith.constant 0 : index
    %c0_461 = arith.constant 0 : index
    %676 = vector.load %arg19[%c0_460, %c0_461] : memref<1x64xf32, #tpu.memory_space<vmem>>, vector<1x64xf32>
    %677 = vector.broadcast %676 : vector<1x64xf32> to vector<2x64xf32>
    %678 = arith.addf %675, %677 : vector<2x64xf32>
    %cst_462 = arith.constant 0.000000e+00 : f32
    %679 = vector.broadcast %cst_462 : f32 to vector<2x64xf32>
    %680 = arith.maximumf %678, %679 : vector<2x64xf32>
    %c0_463 = arith.constant 0 : index
    %c0_464 = arith.constant 0 : index
    %681 = vector.load %arg20[%c0_463, %c0_464] : memref<64x4xf32, #tpu.memory_space<vmem>>, vector<64x4xf32>
    %cst_465 = arith.constant dense<0.000000e+00> : vector<2x4xf32>
    %682 = tpu.matmul %680, %681, %cst_465 {dimension_numbers = #tpu.dot_dimension_numbers<[1], [0], [0], [1], [0, 0, 1, 1], [], []>} : vector<2x64xf32>, vector<64x4xf32>, vector<2x4xf32> -> vector<2x4xf32>
    %c0_466 = arith.constant 0 : index
    %c0_467 = arith.constant 0 : index
    %683 = vector.load %arg21[%c0_466, %c0_467] : memref<1x4xf32, #tpu.memory_space<vmem>>, vector<1x4xf32>
    %684 = vector.broadcast %683 : vector<1x4xf32> to vector<2x4xf32>
    %685 = arith.addf %682, %684 : vector<2x4xf32>
    %686 = arith.subf %685, %659 : vector<2x4xf32>
    %687 = arith.mulf %686, %686 : vector<2x4xf32>
    %688 = arith.addf %649, %687 : vector<2x4xf32>
    %c7 = arith.constant 7 : index
    %c0_468 = arith.constant 0 : index
    %c0_469 = arith.constant 0 : index
    %689 = vector.load %arg1[%c7, %c0_468, %c0_469] : memref<8x2x8xf32, #tpu.memory_space<vmem>>, vector<1x2x8xf32>
    %690 = vector.shape_cast %689 : vector<1x2x8xf32> to vector<2x8xf32>
    %c7_470 = arith.constant 7 : index
    %c0_471 = arith.constant 0 : index
    %c0_472 = arith.constant 0 : index
    %691 = vector.load %arg3[%c7_470, %c0_471, %c0_472] : memref<8x2x4xf32, #tpu.memory_space<vmem>>, vector<1x2x4xf32>
    %692 = vector.shape_cast %691 : vector<1x2x4xf32> to vector<2x4xf32>
    %c7_473 = arith.constant 7 : index
    %c0_474 = arith.constant 0 : index
    %c0_475 = arith.constant 0 : index
    %693 = vector.load %arg4[%c7_473, %c0_474, %c0_475] : memref<8x2x16xf32, #tpu.memory_space<vmem>>, vector<1x2x16xf32>
    %694 = vector.shape_cast %693 : vector<1x2x16xf32> to vector<2x16xf32>
    %c7_476 = arith.constant 7 : index
    %c0_477 = arith.constant 0 : index
    %695 = memref.load %arg5[%c7_476, %c0_477] : memref<8x2xf32, #tpu.memory_space<smem>>
    %c7_478 = arith.constant 7 : index
    %c1_479 = arith.constant 1 : index
    %696 = memref.load %arg5[%c7_478, %c1_479] : memref<8x2xf32, #tpu.memory_space<smem>>
    %c3_480 = arith.constant 3 : index
    %c0_481 = arith.constant 0 : index
    %c0_482 = arith.constant 0 : index
    %697 = vector.load %arg0[%c3_480, %c0_481, %c0_482] : memref<8x2x4xf32, #tpu.memory_space<vmem>>, vector<1x2x4xf32>
    %698 = vector.shape_cast %697 : vector<1x2x4xf32> to vector<2x4xf32>
    %699 = vector.broadcast %695 : f32 to vector<2x4xf32>
    %700 = arith.mulf %699, %698 : vector<2x4xf32>
    %701 = vector.broadcast %696 : f32 to vector<2x4xf32>
    %702 = arith.mulf %701, %692 : vector<2x4xf32>
    %703 = arith.addf %700, %702 : vector<2x4xf32>
    %c0_483 = arith.constant 0 : index
    %c0_484 = arith.constant 0 : index
    %704 = vector.load %arg15[%c0_483, %c0_484] : memref<4x64xf32, #tpu.memory_space<vmem>>, vector<4x64xf32>
    %cst_485 = arith.constant dense<0.000000e+00> : vector<2x64xf32>
    %705 = tpu.matmul %703, %704, %cst_485 {dimension_numbers = #tpu.dot_dimension_numbers<[1], [0], [0], [1], [0, 0, 1, 1], [], []>} : vector<2x4xf32>, vector<4x64xf32>, vector<2x64xf32> -> vector<2x64xf32>
    %c0_486 = arith.constant 0 : index
    %c0_487 = arith.constant 0 : index
    %706 = vector.load %arg16[%c0_486, %c0_487] : memref<32x64xf32, #tpu.memory_space<vmem>>, vector<32x64xf32>
    %cst_488 = arith.constant dense<0.000000e+00> : vector<2x64xf32>
    %707 = tpu.matmul %523, %706, %cst_488 {dimension_numbers = #tpu.dot_dimension_numbers<[1], [0], [0], [1], [0, 0, 1, 1], [], []>} : vector<2x32xf32>, vector<32x64xf32>, vector<2x64xf32> -> vector<2x64xf32>
    %708 = arith.addf %705, %707 : vector<2x64xf32>
    %c0_489 = arith.constant 0 : index
    %c0_490 = arith.constant 0 : index
    %709 = vector.load %arg17[%c0_489, %c0_490] : memref<8x64xf32, #tpu.memory_space<vmem>>, vector<8x64xf32>
    %cst_491 = arith.constant dense<0.000000e+00> : vector<2x64xf32>
    %710 = tpu.matmul %690, %709, %cst_491 {dimension_numbers = #tpu.dot_dimension_numbers<[1], [0], [0], [1], [0, 0, 1, 1], [], []>} : vector<2x8xf32>, vector<8x64xf32>, vector<2x64xf32> -> vector<2x64xf32>
    %711 = arith.addf %708, %710 : vector<2x64xf32>
    %c0_492 = arith.constant 0 : index
    %c0_493 = arith.constant 0 : index
    %712 = vector.load %arg18[%c0_492, %c0_493] : memref<16x64xf32, #tpu.memory_space<vmem>>, vector<16x64xf32>
    %cst_494 = arith.constant dense<0.000000e+00> : vector<2x64xf32>
    %713 = tpu.matmul %694, %712, %cst_494 {dimension_numbers = #tpu.dot_dimension_numbers<[1], [0], [0], [1], [0, 0, 1, 1], [], []>} : vector<2x16xf32>, vector<16x64xf32>, vector<2x64xf32> -> vector<2x64xf32>
    %714 = arith.addf %711, %713 : vector<2x64xf32>
    %c0_495 = arith.constant 0 : index
    %c0_496 = arith.constant 0 : index
    %715 = vector.load %arg19[%c0_495, %c0_496] : memref<1x64xf32, #tpu.memory_space<vmem>>, vector<1x64xf32>
    %716 = vector.broadcast %715 : vector<1x64xf32> to vector<2x64xf32>
    %717 = arith.addf %714, %716 : vector<2x64xf32>
    %cst_497 = arith.constant 0.000000e+00 : f32
    %718 = vector.broadcast %cst_497 : f32 to vector<2x64xf32>
    %719 = arith.maximumf %717, %718 : vector<2x64xf32>
    %c0_498 = arith.constant 0 : index
    %c0_499 = arith.constant 0 : index
    %720 = vector.load %arg20[%c0_498, %c0_499] : memref<64x4xf32, #tpu.memory_space<vmem>>, vector<64x4xf32>
    %cst_500 = arith.constant dense<0.000000e+00> : vector<2x4xf32>
    %721 = tpu.matmul %719, %720, %cst_500 {dimension_numbers = #tpu.dot_dimension_numbers<[1], [0], [0], [1], [0, 0, 1, 1], [], []>} : vector<2x64xf32>, vector<64x4xf32>, vector<2x4xf32> -> vector<2x4xf32>
    %c0_501 = arith.constant 0 : index
    %c0_502 = arith.constant 0 : index
    %722 = vector.load %arg21[%c0_501, %c0_502] : memref<1x4xf32, #tpu.memory_space<vmem>>, vector<1x4xf32>
    %723 = vector.broadcast %722 : vector<1x4xf32> to vector<2x4xf32>
    %724 = arith.addf %721, %723 : vector<2x4xf32>
    %725 = arith.subf %724, %698 : vector<2x4xf32>
    %726 = arith.mulf %725, %725 : vector<2x4xf32>
    %727 = arith.addf %688, %726 : vector<2x4xf32>
    %728 = vector.shape_cast %540 : vector<2x32xf32> to vector<1x2x32xf32>
    %cst_503 = arith.constant dense<0.000000e+00> : vector<1xf32>
    %729 = vector.multi_reduction <add>, %728, %cst_503 [1, 2] : vector<1x2x32xf32> to vector<1xf32>
    %730 = vector.shape_cast %729 : vector<1xf32> to vector<1x1x1xf32>
    %731 = vector.extract %730[0, 0, 0] : f32 from vector<1x1x1xf32>
    %732 = vector.broadcast %731 : f32 to vector<1x1xf32>
    %cst_504 = arith.constant 1.562500e-02 : f32
    %733 = vector.broadcast %cst_504 : f32 to vector<1x1xf32>
    %734 = arith.mulf %732, %733 : vector<1x1xf32>
    %c0_505 = arith.constant 0 : index
    %c0_506 = arith.constant 0 : index
    %735 = vector.load %arg30[%c0_505, %c0_506] : memref<1x1xf32, #tpu.memory_space<vmem>>, vector<1x1xf32>
    tpu.vector_store %arg30[%c0_505, %c0_506], %734 {strides = array<i32>} : memref<1x1xf32, #tpu.memory_space<vmem>>, vector<1x1xf32>,
    %736 = vector.shape_cast %571 : vector<2x4xf32> to vector<1x2x4xf32>
    %cst_507 = arith.constant dense<0.000000e+00> : vector<1xf32>
    %737 = vector.multi_reduction <add>, %736, %cst_507 [1, 2] : vector<1x2x4xf32> to vector<1xf32>
    %738 = vector.shape_cast %737 : vector<1xf32> to vector<1x1x1xf32>
    %739 = vector.extract %738[0, 0, 0] : f32 from vector<1x1x1xf32>
    %740 = vector.broadcast %739 : f32 to vector<1x1xf32>
    %cst_508 = arith.constant 1.250000e-01 : f32
    %741 = vector.broadcast %cst_508 : f32 to vector<1x1xf32>
    %742 = arith.mulf %740, %741 : vector<1x1xf32>
    %c0_509 = arith.constant 0 : index
    %c0_510 = arith.constant 0 : index
    %743 = vector.load %arg31[%c0_509, %c0_510] : memref<1x1xf32, #tpu.memory_space<vmem>>, vector<1x1xf32>
    tpu.vector_store %arg31[%c0_509, %c0_510], %742 {strides = array<i32>} : memref<1x1xf32, #tpu.memory_space<vmem>>, vector<1x1xf32>,
    %744 = vector.shape_cast %727 : vector<2x4xf32> to vector<1x2x4xf32>
    %cst_511 = arith.constant dense<0.000000e+00> : vector<1xf32>
    %745 = vector.multi_reduction <add>, %744, %cst_511 [1, 2] : vector<1x2x4xf32> to vector<1xf32>
    %746 = vector.shape_cast %745 : vector<1xf32> to vector<1x1x1xf32>
    %747 = vector.extract %746[0, 0, 0] : f32 from vector<1x1x1xf32>
    %748 = vector.broadcast %747 : f32 to vector<1x1xf32>
    %cst_512 = arith.constant 1.250000e-01 : f32
    %749 = vector.broadcast %cst_512 : f32 to vector<1x1xf32>
    %750 = arith.mulf %748, %749 : vector<1x1xf32>
    %c0_513 = arith.constant 0 : index
    %c0_514 = arith.constant 0 : index
    %751 = vector.load %arg32[%c0_513, %c0_514] : memref<1x1xf32, #tpu.memory_space<vmem>>, vector<1x1xf32>
    tpu.vector_store %arg32[%c0_513, %c0_514], %750 {strides = array<i32>} : memref<1x1xf32, #tpu.memory_space<vmem>>, vector<1x1xf32>,
    return
  }
}

</mosaic_0001>

<bundles_post_ra>
// kernel: stochdiff_fore_pallas.1
= control target key start
LH: loop header
LB: loop body
LE: loop exit
PB: predicated region body
PF: predicated region fallthrough
CT: control target
= control target key end

     0   :  { %s3019_s6 = smov 1   ;;  %s3020_s10 = smov 2   ;;  %s4032_s0 = inlined_call_operand.smem [shape: u32[33], index: -1, kind: input, shape index: {}] }
   0x1   :  { %s3067_s5 = sld [smem:[%s4032_s0]]   ;;  %s3021_s14 = smov 3  }
   0x2   :  { %s3072_s9 = sld [smem:[%s4032_s0 + %s3019_s6]]   ;;  %s3022_s18 = smov 4  }
   0x3   :  { %s3077_s13 = sld [smem:[%s4032_s0 + %s3020_s10]]   ;;  %s3023_s22 = smov 5  }
   0x4   :  { %s3082_s17 = sld [smem:[%s4032_s0 + %s3021_s14]]   ;;  %s3024_s26 = smov 6  }
   0x5   :  { %s3087_s21 = sld [smem:[%s4032_s0 + %s3022_s18]]   ;;  %s3025_s30 = smov 7  }
   0x6   :  { %s3092_s25 = sld [smem:[%s4032_s0 + %s3023_s22]]   ;;  %s3026_s4 = smov 8  }
   0x7   :  { %s3097_s29 = sld [smem:[%s4032_s0 + %s3024_s26]]   ;;  %s3027_s10 = smov 9  }
   0x8   :  { %s3102_s3 = sld [smem:[%s4032_s0 + %s3025_s30]]   ;;  %s3028_s15 = smov 10  }
   0x9   :  { %s3107_s8 = sld [smem:[%s4032_s0 + %s3026_s4]]   ;;  %s3029_s20 = smov 11  }
   0xa   :  { %s3112_s14 = sld [smem:[%s4032_s0 + %s3027_s10]]   ;;  %s3030_s26 = smov 12  }
   0xb   :  { %4062 = sst [smem:[#allocation12_spill]] %s3087_s21  ;;  %s3031_s1 = smov 13  }
   0xc   :  { %s3117_s19 = sld [smem:[%s4032_s0 + %s3028_s15]]   ;;  %s3032_s7 = smov 14  }
   0xd   :  { %s3122_s24 = sld [smem:[%s4032_s0 + %s3029_s20]]   ;;  %s3033_s15 = smov 15  }
   0xe   :  { %s3127_s30 = sld [smem:[%s4032_s0 + %s3030_s26]]   ;;  %s3034_s22 = smov 16  }
   0xf   :  { %s3132_s6 = sld [smem:[%s4032_s0 + %s3031_s1]]   ;;  %s3035_s28 = smov 17  }
  0x10   :  { %4063 = sst [smem:[#allocation13_spill]] %s3112_s14 }
  0x11   :  { %s3137_s12 = sld [smem:[%s4032_s0 + %s3032_s7]]   ;;  %s3036_s7 = smov 18  }
  0x12   :  { %s3142_s20 = sld [smem:[%s4032_s0 + %s3033_s15]]   ;;  %s3037_s15 = smov 19  }
  0x13   :  { %s3147_s27 = sld [smem:[%s4032_s0 + %s3034_s22]]   ;;  %s3038_s22 = smov 20  }
  0x14   :  { %s3152_s4 = sld [smem:[%s4032_s0 + %s3035_s28]]   ;;  %s3039_s28 = smov 21  }
  0x15   :  { %s3157_s14 = sld [smem:[%s4032_s0 + %s3036_s7]]   ;;  %s3040_s7 = smov 22  }
  0x16   :  { %s3167_s21 = sld [smem:[%s4032_s0 + %s3038_s22]]   ;;  %s3042_s22 = smov 24  }
  0x17   :  { %4064 = sst [smem:[#allocation14_spill]] %s3137_s12 }
  0x18   :  { %s3162_s12 = sld [smem:[%s4032_s0 + %s3037_s15]]   ;;  %s3041_s15 = smov 23  }
  0x19   :  { %4065 = sst [smem:[#allocation15_spill]] %s3147_s27 }
  0x1a   :  { %s3172_s27 = sld [smem:[%s4032_s0 + %s3039_s28]]   ;;  %s3043_s28 = smov 25  }
  0x1b   :  { %4066 = sst [smem:[#allocation16_spill]] %s3157_s14 }
  0x1c   :  { %4068 = sst [smem:[#allocation18_spill]] %s3167_s21 }
  0x1d   :  { %s3177_s14 = sld [smem:[%s4032_s0 + %s3040_s7]]   ;;  %s3044_s7 = smov 26  }
  0x1e   :  { %4067 = sst [smem:[#allocation17_spill]] %s3162_s12 }
  0x1f   :  { %s3182_s12 = sld [smem:[%s4032_s0 + %s3041_s15]]   ;;  %s3045_s15 = smov 27  }
  0x20   :  { %4069 = sst [smem:[#allocation19_spill]] %s3172_s27 }
  0x21   :  { %s3187_s21 = sld [smem:[%s4032_s0 + %s3042_s22]]   ;;  %s3046_s22 = smov 28  }
  0x22   :  { %s3192_s27 = sld [smem:[%s4032_s0 + %s3043_s28]]   ;;  %s3047_s28 = smov 29  }
  0x23   :  { %4070 = sst [smem:[#allocation20_spill]] %s3177_s14 }
  0x24   :  { %s3197_s14 = sld [smem:[%s4032_s0 + %s3044_s7]]   ;;  %s3048_s7 = smov 30  }
  0x25   :  { %4071 = sst [smem:[#allocation21_spill]] %s3182_s12 }
  0x26   :  { %s3202_s12 = sld [smem:[%s4032_s0 + %s3045_s15]]   ;;  %s3049_s15 = smov 31  }
  0x27   :  { %4072 = sst [smem:[#allocation22_spill]] %s3187_s21 }
  0x28   :  { %4073 = sst [smem:[#allocation23_spill]] %s3192_s27 }
  0x29   :  { %s3207_s21 = sld [smem:[%s4032_s0 + %s3046_s22]]   ;;  %s3050_s22 = smov 32  }
  0x2a   :  { %4074 = sst [smem:[#allocation24_spill]] %s3197_s14 }
  0x2b   :  { %s3212_s27 = sld [smem:[%s4032_s0 + %s3047_s28]]  }
  0x2c   :  { %4075 = sst [smem:[#allocation25_spill]] %s3202_s12 }
  0x2d   :  { %s3217_s14 = sld [smem:[%s4032_s0 + %s3048_s7]]  }
  0x2e   :  { %s3222_s12 = sld [smem:[%s4032_s0 + %s3049_s15]]  }
  0x2f   :  { %4076 = sst [smem:[#allocation26_spill]] %s3207_s21 }
  0x30   :  { %s3227_s21 = sld [smem:[%s4032_s0 + %s3050_s22]]  }
  0x31   :  { %71 = vsyncpa [#allocation4], 0 }
  0x32   :  { %72 = vsyncpa [#allocation3], 0 }
  0x33   :  { %73 = vsyncpa [#allocation7], 0  ;;  %s89_s28 = sshll.u32 %s3092_s25, 4  ;;  %s2933_s7 = scalar_lea.vmem %s3092_s25, 8  ;;  %s90_s28 = int_to_ptr.vmem [resolvable:$true] %s89_s28 }
  0x34   :  { %s2929_s1 = sshra.s32 %s90_s28, 4  ;;  %s2930_s1 = int_to_ptr.vmem [resolvable:$true] %s2929_s1 }
  0x35   :  { %s2931_s2 = scalar_lea.vmem %s2930_s1, 8  ;;  %p2934_p1 = scmp.lt.s32.totalorder %s2930_s1, %s3092_s25 }
  0x36   :  { %p2932_p0 = scmp.ne.s32.totalorder %s2930_s1, %s2931_s2  ;;  %p2935_p2 = scmp.lt.s32.totalorder %s2933_s7, %s2931_s2 }
  0x38   :  { %p2936_p3 = por %p2935_p2, %p2934_p1 }
  0x3a   :  { %p2937_p4 = pnand %p2936_p3, %p2932_p0 }
  0x3c   :  { %2940 = shalt.err (!%p2937_p4)
}
  0x3d   :  { %s3051_s0 = smov [#allocation2]  }
  0x3e   :  { %92 = dma.vmem_to_smem %s90_s28, 128, %s3051_s0, [#allocation4]  }
  0x3f   :  { %3013 = dma.done.wait [#allocation4], 128  }
  0x40   :  { %3014 = vsyncadd [#allocation4], 4294967168 }
  0x41   :  { %145 = sfence }
  0x42   :  { %v3233_v0 = vld [vmem:[%s3097_s29] sm:$0xf]  ;;  %vm194_vm0 = vcmask 1043456   ;;  %vm190_vm1 = vcmask 31744   ;;  %v3241_v2 = vld [vmem:[%s3122_s24 + $0x18] sm:$0xff]  ;;  %v3250_v4 = vld [vmem:[%s3122_s24 + $0x10] sm:$0xff] }
  0x43   :  { %v3236_v1 = vld [vmem:[%s3067_s5] sm:$0x3]  ;;  %2622 = vmatpush.msk.msra.mxu2 %vm194_vm0, %v3233_v0  ;;  %v3244_v3 = vld [vmem:[%s3117_s19 + $0x18] sm:$0xff]  ;;  %v3253_v5 = vld [vmem:[%s3117_s19 + $0x10] sm:$0xff]  ;;  %v4043_v10 = vmov 0.0   ;;  %s3053_s25 = smov 32  }
  0x44   :  { %2623 = vmatmul.msk.f32.vlgmr.msra.gmra.mxu2 %vm190_vm1, %v3236_v1  ;;  %261 = vmatpush.msra.mxu3 %v3244_v3  ;;  %v3257_v6 = vld [vmem:[%s3122_s24 + $0x8] sm:$0xff]  ;;  %v3267_v8 = vld [vmem:[%s3122_s24] sm:$0xff]  ;;  %v3276_v11 = vld [vmem:[%s3107_s8 + $0x18] sm:$0xff]  ;;  %vm161_vm2 = vcmask 261120   ;;  %s3054_s10 = smov 96   ;;  %s151_s11 = sld [smem:[#allocation2]] }
  0x45   :  { %238 = vmatpush.msrb.mxu2 %v3241_v2  ;;  %v3263_v7 = vld [vmem:[%s3117_s19 + $0x8] sm:$0xff]  ;;  %v3270_v9 = vld [vmem:[%s3117_s19] sm:$0xff]  ;;  %v3279_v12 = vld [vmem:[%s3107_s8 + $0x10] sm:$0xff]  ;;  %177 = vmatpush.msra.mxu0 %v3276_v11  ;;  %s4083_s15 = sld [smem:[#allocation21_spill]]  ;;  %vm405_vm3 = vcmask 64512   ;;  %vm432_vm4 = vcmask 130048  }
  0x46   :  { %262 = vmatpush.msra.mxu3 %v3253_v5  ;;  %v148_v13 = vld [vmem:[%s3077_s13] sm:$0x3]  ;;  %v3284_v14 = vld [vmem:[%s3107_s8 + $0x8] sm:$0xff]  ;;  %v3300_v19 = vld [vmem:[%s3132_s6 + $0x18] sm:$0xff]  ;;  %s2621_s16 = sld [smem:[#allocation2 + $0x1]]  ;;  %vm475_vm5 = vcmask 523264  }
  0x47   :  { %239 = vmatpush.msrb.mxu2 %v3250_v4  ;;  %278 = vrot.lane.b32.xlu0 %v148_v13, %s3053_s25  ;;  %v3289_v15 = vld [vmem:[%s3107_s8] sm:$0xff]  ;;  %4077 = vst [vmem:[#allocation27_spill] sm:$0xff] %v3300_v19  ;;  %v3303_v20 = vld [vmem:[%s3132_s6 + $0x10] sm:$0xff]  ;;  %v3307_v21 = vld [vmem:[%s3132_s6 + $0x8] sm:$0xff]  ;;  %s4084_s18 = sld [smem:[#allocation15_spill]] }
  0x48   :  { %263 = vmatpush.msra.mxu3 %v3263_v7  ;;  %178 = vmatpush.msra.mxu0 %v3279_v12  ;;  %v3295_v16 = vld [vmem:[%s3102_s3] ss:$0 sm:$0xff]  ;;  %4078 = vst [vmem:[#allocation28_spill] sm:$0xff] %v3303_v20  ;;  %s4087_s22 = sld [smem:[#allocation16_spill]] }
  0x49   :  { %240 = vmatpush.msrb.mxu2 %v3257_v6  ;;  %310 = vmatpush.msra.mxu1 %v3300_v19  ;;  %4079 = vst [vmem:[#allocation29_spill] sm:$0xff] %v3307_v21  ;;  %v3312_v23 = vld [vmem:[%s3127_s30] ss:$0 sm:$0xff]  ;;  %s4088_s23 = sld [smem:[#allocation20_spill]] }
  0x4a   :  { %264 = vmatpush.msra.mxu3 %v3270_v9  ;;  %179 = vmatpush.msra.mxu0 %v3284_v14  ;;  %v3323_v32 = vld [vmem:[%s3132_s6] sm:$0xff]  ;;  %v345_v36 = vstv %s151_s11  ;;  %s4089_s26 = sld [smem:[#allocation12_spill]] }
  0x4b   :  { %241 = vmatpush.msrb.mxu2 %v3267_v8  ;;  %311 = vmatpush.msra.mxu1 %v3303_v20  ;;  %4082 = vst [vmem:[#allocation32_spill] sm:$0xff] %v3323_v32  ;;  %v149_v35 = vld [vmem:[%s3082_s17] sm:$0x3]  ;;  %v346_v38 = vmul.f32 %v345_v36, %v3236_v1  ;;  %v3343_v44 = vld [vmem:[%s4083_s15 + $0x18] sm:$0xff]  ;;  %v3351_v46 = vld [vmem:[%s4083_s15 + $0x10] sm:$0xff]  ;;  %s4090_s28 = sld [smem:[#allocation14_spill]] }
  0x4c   :  { %242 = vmatmul.f32.vlgmr.msrb.gmra.mxu2 %v4043_v10  ;;  %180 = vmatpush.msra.mxu0 %v3289_v15  ;;  %v347_v37 = vstv %s2621_s16  ;;  %v3331_v40 = vld [vmem:[%s3142_s20] sm:$0xf]  ;;  %v3362_v49 = vld [vmem:[%s4083_s15 + $0x8] sm:$0xff]  ;;  %s4091_s1 = sld [smem:[#allocation23_spill]] }
  0x4d   :  { %181 = vmatmul.f32.vlgmr.msra.gmra.mxu0 %v4043_v10  ;;  %312 = vmatpush.msra.mxu1 %v3307_v21  ;;  %v348_v39 = vmul.f32 %v347_v37, %v149_v35  ;;  %4085 = vst [vmem:[#allocation33_spill] sm:$0xff] %v3331_v40  ;;  %v3334_v41 = vld [vmem:[%s3152_s4] sm:$0xff]  ;;  %v3346_v45 = vld [vmem:[%s4084_s18 + $0x18] sm:$0xff]  ;;  %v3354_v47 = vld [vmem:[%s4084_s18 + $0x10] sm:$0xff]  ;;  %s4092_s2 = sld [smem:[#allocation22_spill]] }
  0x4e   :  { %4086 = vst [vmem:[#allocation34_spill] sm:$0xff] %v3334_v41  ;;  %2628 = vmatpush.msk.msra.mxu2 %vm194_vm0, %v3331_v40  ;;  %424 = vmatpush.msrb.mxu3 %v3334_v41  ;;  %v147_v43 = vld [vmem:[%s3072_s9] sm:$0x3]  ;;  %v3359_v48 = vld [vmem:[%s4087_s22 + $0x8] sm:$0xff]  ;;  %s4094_s7 = sld [smem:[#allocation18_spill]] }
  0x4f   :  { %313 = vmatpush.msra.mxu1 %v3323_v32  ;;  %v349_v42 = vadd.f32 %v348_v39, %v346_v38  ;;  %370 = vmatpush.msrb.mxu0 %v3346_v45  ;;  %v3365_v50 = vld [vmem:[%s4084_s18 + $0x8] sm:$0xff]  ;;  %v3370_v51 = vld [vmem:[%s4088_s23] sm:$0xf]  ;;  %s4095_s0 = sld [smem:[#allocation17_spill]] }
  0x50   :  { %519 = vmatpush.msrb.mxu2 %v3343_v44  ;;  %v3374_v52 = vld [vmem:[%s4083_s15] sm:$0xff]  ;;  %s4097_s11 = sld [smem:[#allocation24_spill]]  ;;  %s3055_s15 = smov 64  }
  0x51   :  { %371 = vmatpush.msrb.mxu0 %v3354_v47  ;;  %450 = vmatpush.msrb.mxu1 %v3359_v48  ;;  %v3377_v53 = vld [vmem:[%s4084_s18] sm:$0xff]  ;;  %s4100_s16 = sld [smem:[#allocation26_spill]] }
  0x52   :  { %520 = vmatpush.msrb.mxu2 %v3351_v46  ;;  %4093 = vst [vmem:[#allocation35_spill] sm:$0xff] %v3377_v53  ;;  %v3383_v54 = vld [vmem:[%s4087_s22] sm:$0xff]  ;;  %v3392_v57 = vld [vmem:[%s4091_s1 + $0x18] sm:$0xff]  ;;  %v3401_v59 = vld [vmem:[%s4091_s1 + $0x10] sm:$0xff]  ;;  %s4101_s23 = sld [smem:[#allocation25_spill]] }
  0x53   :  { %372 = vmatpush.msrb.mxu0 %v3365_v50  ;;  %v150_v55 = vld [vmem:[%s4089_s26] sm:$0x3]  ;;  %451 = vmatpush.msrb.mxu1 %v3383_v54  ;;  %v3406_v61 = vld [vmem:[%s4091_s1 + $0x8] sm:$0xff] }
  0x54   :  { %2629 = vmatmul.msk.f32.vlgmr.msra.gmra.mxu2 %vm190_vm1, %v349_v42  ;;  %v3387_v56 = vld [vmem:[%s4090_s28] ss:$0 sm:$0xff]  ;;  %v3442_v35 = vld [vmem:[%s4094_s7 + $0x18] sm:$0xff]  ;;  %v3446_v36 = vld [vmem:[%s4094_s7 + $0x10] sm:$0xff] }
  0x55   :  { %521 = vmatpush.msrb.mxu2 %v3362_v49  ;;  %373 = vmatpush.msrb.mxu0 %v3377_v53  ;;  %v3395_v58 = vld [vmem:[%s4092_s2] sm:$0xff]  ;;  %v3450_v37 = vld [vmem:[%s4094_s7 + $0x8] sm:$0xff]  ;;  %s2674_s2 = sld [smem:[#allocation2 + $0x100]] }
  0x56   :  { %v3411_v63 = vld [vmem:[%s4091_s1] sm:$0xff]  ;;  %s2646_s1 = sld [smem:[#allocation2 + $0x81]] }
  0x57   :  { %522 = vmatpush.msrb.mxu2 %v3374_v52  ;;  %v3454_v38 = vld [vmem:[%s4094_s7] sm:$0xff] }
  0x59   :  { %588 = vmatpush.msra.mxu2 %v3392_v57 }
  0x5b   :  { %589 = vmatpush.msra.mxu2 %v3401_v59 }
  0x5d   :  { %590 = vmatpush.msra.mxu2 %v3406_v61 }
  0x5f   :  { %591 = vmatpush.msra.mxu2 %v3411_v63 }
  0xb9   :  { %v279_v29 = vpop.permute.xlu0 %278 }
  0xc7   :  { %v215_v17 = vpop.f32.mrf.mxu2 }
  0xc8   :  { %v216_v18 = vadd.f32 %v3295_v16, %v215_v17 }
  0xca   :  { %2624 = vmatmul.msk.f32.vlgmr.msra.gmra.mxu3 %vm161_vm2, %v216_v18  ;;  %v3461_v39 = vpop.f32.mrf.mxu0 }
  0xcb   :  { %2634 = vmatpush.msk.msra.mxu3 %vm194_vm0, %v3370_v51  ;;  %4096 = vst [vmem:[#allocation36_spill] sm:$0xff] %v3461_v39 }
  0xcf   :  { %v243_v22 = vpop.f32.mrf.mxu2 }
  0xd2   :  { %2630 = vmatmul.msk.f32.vlgmr.msrb.gmra.mxu3 %vm405_vm3, %v147_v43 }
  0xd7   :  { %v401_v42 = vpop.f32.mrf.mxu2 }
  0xda   :  { %2635 = vmatmul.msk.f32.vlgmr.msra.gmra.mxu3 %vm190_vm1, %v3236_v1  ;;  %v3416_v1 = vld [vmem:[%s4094_s7 + $0x38] sm:$0xff] }
  0xdb   :  { %487 = vmatpush.msra.mxu0 %v3416_v1 }
 0x14d   :  { %v266_v24 = vpop.f32.mrf.mxu3 }
 0x14e   :  { %v267_v25 = vadd.f32 %v266_v24, %v243_v22 }
 0x150   :  { %v3315_v26 = vadd.f32 %v3312_v23, %v267_v25 }
 0x152   :  { %4080 = vst [vmem:[#allocation30_spill] sm:$0xff] %v3315_v26  ;;  %v274_v27 = vmul.f32 0.5, %v3315_v26 }
 0x154   :  { %v275_v28 = vmul.f32 1.442695, %v274_v27 }
 0x156   :  { %2812 = vpow2.f32 %v275_v28 }
 0x15c   :  { %v3318_v30 = vpop.eup %2812 }
 0x15d   :  { %4081 = vst [vmem:[#allocation31_spill] sm:$0xff] %v3318_v30  ;;  %v281_v31 = vmul.f32 %v3318_v30, %v279_v29  ;;  %v3470_v30 = vld [vmem:[%s4097_s11] ss:$0 sm:$0xff]  ;;  %s2675_s11 = sld [smem:[#allocation2 + $0x101]] }
 0x15e   :  { %4099 = vst [vmem:[#allocation38_spill] sm:$0xff] %v3470_v30 }
 0x15f   :  { %283 = vrot.lane.b32.xlu0 %v281_v31, %s3054_s10  ;;  %v3430_v31 = vld [vmem:[%s4094_s7 + $0x30] sm:$0xff] }
 0x160   :  { %488 = vmatpush.msra.mxu0 %v3430_v31 }
 0x1d1   :  { %v284_v33 = vpop.permute.xlu0 %283 }
 0x1d2   :  { %v286_v34 = vadd.f32 %v284_v33, %v3315_v26  ;;  %v3434_v33 = vld [vmem:[%s4094_s7 + $0x28] sm:$0xff]  ;;  %v3532_v26 = vld [vmem:[%s3212_s27] ss:$0 sm:$0xff]  ;;  %s2645_s27 = sld [smem:[#allocation2 + $0x80]] }
 0x1d3   :  { %489 = vmatpush.msra.mxu0 %v3434_v33  ;;  %4104 = vst [vmem:[#allocation40_spill] sm:$0xff] %v3532_v26 }
 0x1d4   :  { %2625 = vmatmul.msk.f32.vlgmr.msra.gmra.mxu1 %vm161_vm2, %v286_v34  ;;  %v3438_v34 = vld [vmem:[%s4094_s7 + $0x20] sm:$0xff] }
 0x1d5   :  { %566 = vmatpush.msra.mxu1 %v3395_v58  ;;  %490 = vmatpush.msra.mxu0 %v3438_v34 }
 0x1d7   :  { %491 = vmatpush.msra.mxu0 %v3442_v35 }
 0x1d9   :  { %492 = vmatpush.msra.mxu0 %v3446_v36 }
 0x1db   :  { %493 = vmatpush.msra.mxu0 %v3450_v37 }
 0x1dc   :  { %2631 = vmatmul.msk.f32.vlgmr.msrb.gmra.mxu1 %vm432_vm4, %v150_v55 }
 0x1dd   :  { %494 = vmatpush.msra.mxu0 %v3454_v38 }
 0x1e4   :  { %2636 = vmatmul.msk.f32.vlgmr.msra.gmra.mxu1 %vm405_vm3, %v147_v43  ;;  %v426_v43 = vpop.f32.mrf.mxu3 }
 0x251   :  { %v315_v60 = vpop.f32.mrf.mxu1 }
 0x252   :  { %v316_v62 = vadd.f32 %v3387_v56, %v315_v60 }
 0x254   :  { %v319_v13 = vand.u32 2147483647, %v316_v62  ;;  %v318_v27 = vmax.f32 %v316_v62, 0.0 }
 0x256   :  { %v320_v17 = vsub.f32 0.0, %v319_v13 }
 0x258   :  { %v321_v18 = vmul.f32 1.442695, %v320_v17  ;;  %v3464_v17 = vld [vmem:[%s4095_s0] ss:$0 sm:$0xff] }
 0x259   :  { %v453_v60 = vpop.f32.mrf.mxu1  ;;  %4098 = vst [vmem:[#allocation37_spill] sm:$0xff] %v3464_v17 }
 0x25a   :  { %2814 = vpow2.f32 %v321_v18 }
 0x260   :  { %v2815_v22 = vpop.eup %2814 }
 0x261   :  { %v323_v24 = vadd.f32 1.0, %v2815_v22 }
 0x263   :  { %2816 = vlog2.f32 %v323_v24  ;;  %v547_v24 = vpop.f32.mrf.mxu3 }
 0x269   :  { %v2817_v25 = vpop.eup %2816 }
 0x26a   :  { %v325_v28 = vmul.f32 0.6931472, %v2817_v25 }
 0x26c   :  { %v326_v29 = vadd.f32 %v325_v28, %v318_v27 }
 0x26e   :  { %2627 = vmatmul.msk.f32.vlgmr.msrb.gmra.mxu0 %vm161_vm2, %v326_v29  ;;  %2633 = vmatmul.msk.f32.vlgmr.msrb.gmra.mxu2 %vm161_vm2, %v326_v29  ;;  %v568_v29 = vpop.f32.mrf.mxu1 }
 0x26f   :  { %2648 = vmatpush.msk.msrb.mxu2 %vm194_vm0, %v3233_v0  ;;  %768 = vmatpush.msrb.mxu0 %v3276_v11 }
 0x271   :  { %769 = vmatpush.msrb.mxu0 %v3279_v12 }
 0x273   :  { %770 = vmatpush.msrb.mxu0 %v3284_v14 }
 0x275   :  { %771 = vmatpush.msrb.mxu0 %v3289_v15 }
 0x276   :  { %592 = vmatmul.f32.vlgmr.msra.gmra.mxu2 %v4043_v10 }
 0x277   :  { %926 = vmatpush.msra.mxu2 %v3346_v45 }
 0x279   :  { %927 = vmatpush.msra.mxu2 %v3354_v47 }
 0x27b   :  { %928 = vmatpush.msra.mxu2 %v3365_v50 }
 0x27d   :  { %929 = vmatpush.msra.mxu2 %v3377_v53 }
 0x2eb   :  { %v375_v55 = vpop.f32.mrf.mxu0 }
 0x2ec   :  { %v402_v62 = vadd.f32 %v401_v42, %v375_v55 }
 0x2ee   :  { %v429_v13 = vadd.f32 %v426_v43, %v402_v62 }
 0x2f0   :  { %v456_v18 = vadd.f32 %v453_v60, %v429_v13 }
 0x2f1   :  { %v524_v22 = vpop.f32.mrf.mxu2 }
 0x2f2   :  { %v461_v25 = vadd.f32 %v3464_v17, %v456_v18  ;;  %v548_v28 = vadd.f32 %v547_v24, %v524_v22 }
 0x2f4   :  { %v462_v27 = vmax.f32 %v461_v25, 0.0  ;;  %v571_v10 = vadd.f32 %v568_v29, %v548_v28 }
 0x2f6   :  { %2632 = vmatmul.msk.f32.vlgmr.msra.gmra.mxu0 %vm475_vm5, %v462_v27 }
 0x2f7   :  { %871 = vmatpush.msra.mxu0 %v3300_v19 }
 0x2f9   :  { %v593_v42 = vpop.f32.mrf.mxu2  ;;  %872 = vmatpush.msra.mxu0 %v3303_v20 }
 0x2fa   :  { %v596_v43 = vadd.f32 %v593_v42, %v571_v10 }
 0x2fb   :  { %873 = vmatpush.msra.mxu0 %v3307_v21 }
 0x2fc   :  { %v601_v55 = vadd.f32 %v3470_v30, %v596_v43 }
 0x2fd   :  { %874 = vmatpush.msra.mxu0 %v3323_v32 }
 0x2fe   :  { %2818 = vtanh.f32 %v601_v55  ;;  %v2637_v62 = vmul.f32 -1.442695, %v601_v55 }
 0x300   :  { %2820 = vpow2.f32 %v2637_v62 }
 0x304   :  { %v2819_v60 = vpop.eup %2818 }
 0x305   :  { %624 = vrot.lane.b32.xlu1 %v2819_v60, %s3055_s15 }
 0x306   :  { %v2821_v13 = vpop.eup %2820 }
 0x307   :  { %v605_v18 = vadd.f32 1.0, %v2821_v13 }
 0x309   :  { %2822 = vrcp.f32 %v605_v18  ;;  %v617_v28 = vand.u32 2147483648, %v605_v18  ;;  %vm611_vm7 = vweird.f32 %v605_v18  ;;  %v615_v29 = vand.u32 2147483647, %v605_v18 }
 0x30b   :  { %v618_v43 = vor.u32 1.1754944e-38, %v617_v28  ;;  %vm616_vm9 = vcmp.eq.f32.partialorder %v615_v29, 8.507059e+37  ;;  %v3493_v28 = vld [vmem:[%s4101_s23 + $0x10] sm:$0xff]  ;;  %v3496_v29 = vld [vmem:[%s4100_s16 + $0x8] sm:$0xff] }
 0x30f   :  { %v2823_v22 = vpop.eup %2822 }
 0x310   :  { %v607_v24 = vmul.f32 %v2823_v22, %v605_v18  ;;  %vm612_vm6 = vweird.f32 %v2823_v22 }
 0x311   :  { %vm613_vm8 = vmor %vm611_vm7, %vm612_vm6 }
 0x312   :  { %v608_v25 = vsub.f32 1.0, %v607_v24 }
 0x314   :  { %v609_v10 = vmul.f32 %v2823_v22, %v608_v25 }
 0x316   :  { %v610_v27 = vadd.f32 %v2823_v22, %v609_v10  ;;  %v3486_v10 = vld [vmem:[%s4100_s16 + $0x10] sm:$0xff] }
 0x318   :  { %v614_v42 = vsel %vm613_vm8, %v2823_v22, %v610_v27  ;;  %v3483_v22 = vld [vmem:[%s4100_s16 + $0x18] sm:$0xff] }
 0x319   :  { %v619_v60 = vsel %vm616_vm9, %v618_v43, %v614_v42  ;;  %659 = vmatpush.msrb.mxu3 %v3483_v22  ;;  %v3490_v27 = vld [vmem:[%s4101_s23 + $0x18] sm:$0xff]  ;;  %v3501_v42 = vld [vmem:[%s4101_s23 + $0x8] sm:$0xff]  ;;  %v3504_v43 = vld [vmem:[%s4100_s16] sm:$0xff] }
 0x31a   :  { %v622_v13 = vmul.f32 0.0, %v619_v60  ;;  %684 = vmatpush.msrb.mxu1 %v3490_v27 }
 0x31b   :  { %660 = vmatpush.msrb.mxu3 %v3486_v10 }
 0x31c   :  { %685 = vmatpush.msrb.mxu1 %v3493_v28 }
 0x31d   :  { %661 = vmatpush.msrb.mxu3 %v3496_v29 }
 0x31e   :  { %686 = vmatpush.msrb.mxu1 %v3501_v42 }
 0x31f   :  { %662 = vmatpush.msrb.mxu3 %v3504_v43 }
 0x321   :  { %811 = vmatpush.msra.mxu3 %v3241_v2 }
 0x323   :  { %812 = vmatpush.msra.mxu3 %v3250_v4 }
 0x325   :  { %813 = vmatpush.msra.mxu3 %v3257_v6 }
 0x327   :  { %814 = vmatpush.msra.mxu3 %v3267_v8 }
 0x377   :  { %v625_v55 = vpop.permute.xlu1 %624 }
 0x378   :  { %v627_v62 = vmul.f32 %v625_v55, %v619_v60  ;;  %v3509_v55 = vld [vmem:[%s4101_s23] sm:$0xff] }
 0x379   :  { %687 = vmatpush.msrb.mxu1 %v3509_v55 }
 0x37a   :  { %629 = vrot.lane.b32.xlu1 %v627_v62, %s3053_s25  ;;  %v4103_v62 = vmov 0.0  }
 0x37b   :  { %663 = vmatmul.f32.vlgmr.msrb.gmra.mxu3 %v4103_v62  ;;  %834 = vmatpush.msra.mxu1 %v3244_v3 }
 0x37c   :  { %2655 = vmatpush.msk.msrb.mxu3 %vm194_vm0, %v3331_v40 }
 0x37d   :  { %835 = vmatpush.msra.mxu1 %v3253_v5 }
 0x37f   :  { %836 = vmatpush.msra.mxu1 %v3263_v7 }
 0x381   :  { %837 = vmatpush.msra.mxu1 %v3270_v9 }
 0x3ec   :  { %v630_v24 = vpop.permute.xlu1 %629 }
 0x3ed   :  { %v3478_v25 = vadd.f32 %v630_v24, %v622_v13 }
 0x3ef   :  { %4102 = vst [vmem:[#allocation39_spill] sm:$0xff] %v3478_v25  ;;  %2824 = vtanh.f32 %v3478_v25 }
 0x3f5   :  { %v2825_v18 = vpop.eup %2824 }
 0x3f6   :  { %635 = vrot.lane.b32.xlu2 %v2825_v18, %s3055_s15 }
 0x3fe   :  { %v664_v62 = vpop.f32.mrf.mxu3 }
 0x450   :  { %v636_v13 = vpop.permute.xlu2 %635 }
 0x451   :  { %v638_v24 = vmul.f32 %v636_v13, %v619_v60 }
 0x453   :  { %668 = vrot.lane.b32.xlu2 %v638_v24, %s3053_s25 }
 0x4ad   :  { %v3526_v18 = vpop.permute.xlu2 %668 }
 0x4ae   :  { %2638 = vmatmul.msk.f32.vlgmr.msrb.gmra.mxu1 %vm161_vm2, %v3526_v18 }
 0x4af   :  { %975 = vmatpush.msrb.mxu1 %v3334_v41 }
 0x52b   :  { %v689_v39 = vpop.f32.mrf.mxu1 }
 0x52c   :  { %v690_v25 = vadd.f32 %v689_v39, %v664_v62 }
 0x52e   :  { %v696_v32 = vadd.f32 %v3532_v26, %v690_v25 }
 0x530   :  { %2826 = vtanh.f32 %v696_v32  ;;  %v2639_v60 = vmul.f32 -1.442695, %v696_v32 }
 0x532   :  { %2828 = vpow2.f32 %v2639_v60 }
 0x536   :  { %v2827_v40 = vpop.eup %2826 }
 0x537   :  { %719 = vrot.lane.b32.xlu0 %v2827_v40, %s3055_s15 }
 0x538   :  { %v2829_v13 = vpop.eup %2828 }
 0x539   :  { %v700_v24 = vadd.f32 1.0, %v2829_v13 }
 0x53b   :  { %2830 = vrcp.f32 %v700_v24  ;;  %v712_v17 = vand.u32 2147483648, %v700_v24  ;;  %vm706_vm11 = vweird.f32 %v700_v24  ;;  %v710_v39 = vand.u32 2147483647, %v700_v24 }
 0x53d   :  { %v713_v62 = vor.u32 1.1754944e-38, %v712_v17  ;;  %vm711_vm13 = vcmp.eq.f32.partialorder %v710_v39, 8.507059e+37 }
 0x541   :  { %v2831_v21 = vpop.eup %2830 }
 0x542   :  { %v702_v20 = vmul.f32 %v2831_v21, %v700_v24  ;;  %vm707_vm10 = vweird.f32 %v2831_v21  ;;  %v2642_v24 = vld [vmem:[%s3077_s13 + $0x2] sm:$0x3] }
 0x543   :  { %vm708_vm12 = vmor %vm706_vm11, %vm707_vm10 }
 0x544   :  { %v703_v19 = vsub.f32 1.0, %v702_v20  ;;  %v3544_v20 = vld [vmem:[%s3067_s5 + $0x2] sm:$0x3] }
 0x545   :  { %2649 = vmatmul.msk.f32.vlgmr.msrb.gmra.mxu2 %vm190_vm1, %v3544_v20 }
 0x546   :  { %v704_v41 = vmul.f32 %v2831_v21, %v703_v19  ;;  %1018 = vmatpush.msrb.mxu2 %v3416_v1 }
 0x548   :  { %v705_v30 = vadd.f32 %v2831_v21, %v704_v41  ;;  %1019 = vmatpush.msrb.mxu2 %v3430_v31 }
 0x54a   :  { %v709_v25 = vsel %vm708_vm12, %v2831_v21, %v705_v30  ;;  %1020 = vmatpush.msrb.mxu2 %v3434_v33 }
 0x54b   :  { %v714_v32 = vsel %vm711_vm13, %v713_v62, %v709_v25 }
 0x54c   :  { %v717_v13 = vmul.f32 0.0, %v714_v32  ;;  %1021 = vmatpush.msrb.mxu2 %v3438_v34 }
 0x54e   :  { %1022 = vmatpush.msrb.mxu2 %v3442_v35 }
 0x550   :  { %1023 = vmatpush.msrb.mxu2 %v3446_v36 }
 0x552   :  { %1024 = vmatpush.msrb.mxu2 %v3450_v37 }
 0x554   :  { %1025 = vmatpush.msrb.mxu2 %v3454_v38 }
 0x5a9   :  { %v720_v40 = vpop.permute.xlu0 %719 }
 0x5aa   :  { %v722_v60 = vmul.f32 %v720_v40, %v714_v32 }
 0x5ac   :  { %724 = vrot.lane.b32.xlu1 %v722_v60, %s3053_s25 }
 0x5c8   :  { %v796_v17 = vpop.f32.mrf.mxu2 }
 0x5c9   :  { %v797_v39 = vadd.f32 %v3295_v16, %v796_v17 }
 0x5cb   :  { %2651 = vmatmul.msk.f32.vlgmr.msra.gmra.mxu1 %vm161_vm2, %v797_v39  ;;  %v3585_v39 = vpop.f32.mrf.mxu0 }
 0x5cc   :  { %2661 = vmatpush.msk.msra.mxu1 %vm194_vm0, %v3370_v51 }
 0x61e   :  { %v725_v26 = vpop.permute.xlu1 %724 }
 0x61f   :  { %v3537_v53 = vadd.f32 %v725_v26, %v717_v13 }
 0x621   :  { %2832 = vtanh.f32 %v3537_v53  ;;  %747 = vrot.lane.b32.xlu0 %v3537_v53, %s3055_s15 }
 0x627   :  { %v2833_v19 = vpop.eup %2832 }
 0x628   :  { %730 = vrot.lane.b32.xlu2 %v2833_v19, %s3055_s15 }
 0x630   :  { %847 = vrot.lane.b32.xlu2 %v2642_v24, %s3053_s25 }
 0x648   :  { %v839_v62 = vpop.f32.mrf.mxu1 }
 0x682   :  { %v731_v21 = vpop.permute.xlu2 %730 }
 0x683   :  { %v3556_v26 = vmul.f32 %v731_v21, %v714_v32 }
 0x68a   :  { %v848_v21 = vpop.permute.xlu2 %847 }
 0x693   :  { %v748_v30 = vpop.permute.xlu0 %747 }
 0x694   :  { %v750_v41 = vadd.f32 %v748_v30, %v3556_v26 }
 0x696   :  { %752 = vrot.lane.b32.xlu1 %v750_v41, %s3053_s25 }
 0x708   :  { %v753_v25 = vpop.permute.xlu1 %752 }
 0x709   :  { %2647 = vmatmul.msk.f32.vlgmr.msrb.gmra.mxu0 %vm161_vm2, %v753_v25  ;;  %2650 = vmatmul.msk.f32.vlgmr.msra.gmra.mxu3 %vm161_vm2, %v753_v25  ;;  %v2643_v25 = vld [vmem:[%s3082_s17 + $0x2] sm:$0x3] }
 0x70a   :  { %1045 = vmatpush.msra.mxu3 %v3343_v44  ;;  %998 = vmatpush.msrb.mxu0 %v3359_v48 }
 0x70c   :  { %1046 = vmatpush.msra.mxu3 %v3351_v46  ;;  %999 = vmatpush.msrb.mxu0 %v3383_v54 }
 0x70e   :  { %1047 = vmatpush.msra.mxu3 %v3362_v49 }
 0x710   :  { %1048 = vmatpush.msra.mxu3 %v3374_v52 }
 0x78c   :  { %v816_v40 = vpop.f32.mrf.mxu3 }
 0x78d   :  { %v840_v32 = vadd.f32 %v839_v62, %v816_v40  ;;  %v906_v62 = vstv %s2645_s27  ;;  %v908_v40 = vstv %s2646_s1 }
 0x78f   :  { %v3575_v60 = vadd.f32 %v3312_v23, %v840_v32  ;;  %v907_v32 = vmul.f32 %v3544_v20, %v906_v62 }
 0x791   :  { %v843_v13 = vmul.f32 0.5, %v3575_v60 }
 0x793   :  { %v844_v19 = vmul.f32 1.442695, %v843_v13  ;;  %v909_v13 = vmul.f32 %v2643_v25, %v908_v40 }
 0x795   :  { %2834 = vpow2.f32 %v844_v19  ;;  %v910_v19 = vadd.f32 %v909_v13, %v907_v32 }
 0x797   :  { %2656 = vmatmul.msk.f32.vlgmr.msrb.gmra.mxu3 %vm190_vm1, %v910_v19 }
 0x798   :  { %1106 = vmatpush.msrb.mxu3 %v3392_v57 }
 0x79a   :  { %1107 = vmatpush.msrb.mxu3 %v3401_v59 }
 0x79b   :  { %v3578_v30 = vpop.eup %2834 }
 0x79c   :  { %v850_v41 = vmul.f32 %v3578_v30, %v848_v21  ;;  %v3591_v21 = vpop.f32.mrf.mxu0  ;;  %1108 = vmatpush.msrb.mxu3 %v3406_v61 }
 0x79e   :  { %852 = vrot.lane.b32.xlu0 %v850_v41, %s3054_s10  ;;  %v2641_v41 = vld [vmem:[%s3072_s9 + $0x2] sm:$0x3]  ;;  %1109 = vmatpush.msrb.mxu3 %v3411_v63 }
 0x79f   :  { %2657 = vmatmul.msk.f32.vlgmr.msrb.gmra.mxu1 %vm405_vm3, %v2641_v41 }
 0x7a0   :  { %1170 = vmatpush.msrb.mxu1 %v3483_v22 }
 0x7a2   :  { %1171 = vmatpush.msrb.mxu1 %v3486_v10 }
 0x7a4   :  { %1172 = vmatpush.msrb.mxu1 %v3496_v29 }
 0x7a6   :  { %1173 = vmatpush.msrb.mxu1 %v3504_v43 }
 0x7a7   :  { %2662 = vmatmul.msk.f32.vlgmr.msra.gmra.mxu1 %vm190_vm1, %v3544_v20 }
 0x7a8   :  { %1318 = vmatpush.msra.mxu1 %v3241_v2 }
 0x7aa   :  { %1319 = vmatpush.msra.mxu1 %v3250_v4  ;;  %v4105_v4 = vld [vmem:[#allocation35_spill] sm:$0xff] }
 0x7ac   :  { %1320 = vmatpush.msra.mxu1 %v3257_v6 }
 0x7ae   :  { %1321 = vmatpush.msra.mxu1 %v3267_v8 }
 0x810   :  { %v853_v17 = vpop.permute.xlu0 %852 }
 0x811   :  { %v855_v24 = vadd.f32 %v853_v17, %v3575_v60  ;;  %v2644_v17 = vld [vmem:[%s4089_s26 + $0x2] sm:$0x3] }
 0x813   :  { %2652 = vmatmul.msk.f32.vlgmr.msra.gmra.mxu0 %vm161_vm2, %v855_v24 }
 0x814   :  { %1088 = vmatpush.msra.mxu0 %v3395_v58 }
 0x81b   :  { %2658 = vmatmul.msk.f32.vlgmr.msrb.gmra.mxu0 %vm432_vm4, %v2644_v17 }
 0x81c   :  { %1195 = vmatpush.msrb.mxu0 %v3490_v27 }
 0x81e   :  { %1196 = vmatpush.msrb.mxu0 %v3493_v28 }
 0x820   :  { %1197 = vmatpush.msrb.mxu0 %v3501_v42 }
 0x822   :  { %1198 = vmatpush.msrb.mxu0 %v3509_v55 }
 0x823   :  { %2663 = vmatmul.msk.f32.vlgmr.msra.gmra.mxu0 %vm405_vm3, %v2641_v41 }
 0x824   :  { %1341 = vmatpush.msra.mxu0 %v3244_v3 }
 0x826   :  { %1342 = vmatpush.msra.mxu0 %v3253_v5  ;;  %v954_v5 = vpop.f32.mrf.mxu3 }
 0x828   :  { %1343 = vmatpush.msra.mxu0 %v3263_v7 }
 0x82a   :  { %1344 = vmatpush.msra.mxu0 %v3270_v9 }
 0x890   :  { %v876_v24 = vpop.f32.mrf.mxu0 }
 0x891   :  { %v877_v25 = vadd.f32 %v3387_v56, %v876_v24 }
 0x893   :  { %v880_v62 = vand.u32 2147483647, %v877_v25  ;;  %v879_v19 = vmax.f32 %v877_v25, 0.0 }
 0x895   :  { %v881_v40 = vsub.f32 0.0, %v880_v62 }
 0x897   :  { %v882_v32 = vmul.f32 1.442695, %v881_v40 }
 0x898   :  { %v1001_v6 = vpop.f32.mrf.mxu0 }
 0x899   :  { %2836 = vpow2.f32 %v882_v32  ;;  %v4107_v32 = vld [vmem:[#allocation38_spill] sm:$0xff] }
 0x89f   :  { %v2837_v2 = vpop.eup %2836 }
 0x8a0   :  { %v884_v20 = vadd.f32 1.0, %v2837_v2 }
 0x8a2   :  { %2838 = vlog2.f32 %v884_v20  ;;  %v4108_v20 = vld [vmem:[#allocation27_spill] sm:$0xff] }
 0x8a8   :  { %v2839_v13 = vpop.eup %2838 }
 0x8a9   :  { %v886_v3 = vmul.f32 0.6931472, %v2839_v13  ;;  %v4109_v13 = vld [vmem:[#allocation28_spill] sm:$0xff] }
 0x8ab   :  { %v887_v41 = vadd.f32 %v886_v3, %v879_v19  ;;  %v4110_v19 = vld [vmem:[#allocation29_spill] sm:$0xff]  ;;  %v4111_v3 = vld [vmem:[#allocation32_spill] sm:$0xff] }
 0x8ad   :  { %2654 = vmatmul.msk.f32.vlgmr.msra.gmra.mxu2 %vm161_vm2, %v887_v41  ;;  %2660 = vmatmul.msk.f32.vlgmr.msra.gmra.mxu3 %vm161_vm2, %v887_v41 }
 0x8ae   :  { %2677 = vmatpush.msk.msra.mxu3 %vm194_vm0, %v3233_v0  ;;  %1275 = vmatpush.msra.mxu2 %v3276_v11  ;;  %v977_v0 = vpop.f32.mrf.mxu1 }
 0x8b0   :  { %1276 = vmatpush.msra.mxu2 %v3279_v12 }
 0x8b2   :  { %1277 = vmatpush.msra.mxu2 %v3284_v14 }
 0x8b4   :  { %1278 = vmatpush.msra.mxu2 %v3289_v15  ;;  %v1090_v15 = vpop.f32.mrf.mxu0 }
 0x8b5   :  { %2664 = vmatmul.msk.f32.vlgmr.msrb.gmra.mxu3 %vm161_vm2, %v3526_v18  ;;  %v4106_v18 = vld [vmem:[#allocation37_spill] sm:$0xff] }
 0x8b6   :  { %1433 = vmatpush.msrb.mxu3 %v3346_v45  ;;  %v1070_v7 = vpop.f32.mrf.mxu1 }
 0x8b8   :  { %1434 = vmatpush.msrb.mxu3 %v3354_v47 }
 0x8ba   :  { %1435 = vmatpush.msrb.mxu3 %v3365_v50 }
 0x8bc   :  { %1436 = vmatpush.msrb.mxu3 %v4105_v4 }
 0x930   :  { %v931_v8 = vpop.f32.mrf.mxu2  ;;  %v1050_v9 = vpop.f32.mrf.mxu3 }
 0x931   :  { %v955_v11 = vadd.f32 %v954_v5, %v931_v8  ;;  %v1071_v14 = vadd.f32 %v1070_v7, %v1050_v9 }
 0x933   :  { %v980_v12 = vadd.f32 %v977_v0, %v955_v11  ;;  %v1093_v45 = vadd.f32 %v1090_v15, %v1071_v14 }
 0x935   :  { %v1004_v17 = vadd.f32 %v1001_v6, %v980_v12 }
 0x937   :  { %v1005_v24 = vadd.f32 %v4106_v18, %v1004_v17 }
 0x938   :  { %v1111_v25 = vpop.f32.mrf.mxu3 }
 0x939   :  { %v1006_v62 = vmax.f32 %v1005_v24, 0.0  ;;  %v1114_v40 = vadd.f32 %v1111_v25, %v1093_v45 }
 0x93b   :  { %v1115_v2 = vadd.f32 %v4107_v32, %v1114_v40  ;;  %2659 = vmatmul.msk.f32.vlgmr.msrb.gmra.mxu2 %vm475_vm5, %v1006_v62  ;;  %v4112_v40 = vld [vmem:[#allocation33_spill] sm:$0xff] }
 0x93c   :  { %1378 = vmatpush.msrb.mxu2 %v4108_v20 }
 0x93d   :  { %2840 = vtanh.f32 %v1115_v2  ;;  %v2665_v0 = vmul.f32 -1.442695, %v1115_v2  ;;  %v4113_v2 = vld [vmem:[#allocation39_spill] sm:$0xff] }
 0x93e   :  { %1379 = vmatpush.msrb.mxu2 %v4109_v13 }
 0x93f   :  { %2842 = vpow2.f32 %v2665_v0 }
 0x940   :  { %1380 = vmatpush.msrb.mxu2 %v4110_v19 }
 0x942   :  { %1381 = vmatpush.msrb.mxu2 %v4111_v3 }
 0x943   :  { %v2841_v41 = vpop.eup %2840 }
 0x944   :  { %1138 = vrot.lane.b32.xlu1 %v2841_v41, %s3055_s15 }
 0x945   :  { %v2843_v5 = vpop.eup %2842 }
 0x946   :  { %v1119_v6 = vadd.f32 1.0, %v2843_v5 }
 0x948   :  { %2844 = vrcp.f32 %v1119_v6  ;;  %v1131_v14 = vand.u32 2147483648, %v1119_v6  ;;  %vm1125_vm15 = vweird.f32 %v1119_v6  ;;  %v1129_v15 = vand.u32 2147483647, %v1119_v6 }
 0x94a   :  { %v1132_v24 = vor.u32 1.1754944e-38, %v1131_v14  ;;  %vm1130_vm7 = vcmp.eq.f32.partialorder %v1129_v15, 8.507059e+37 }
 0x94c   :  { %1154 = vrot.lane.b32.xlu1 %v3556_v26, %s3053_s25 }
 0x94e   :  { %v2845_v7 = vpop.eup %2844 }
 0x94f   :  { %v1121_v8 = vmul.f32 %v2845_v7, %v1119_v6  ;;  %vm1126_vm14 = vweird.f32 %v2845_v7  ;;  %v4114_v6 = vld [vmem:[#allocation34_spill] sm:$0xff] }
 0x950   :  { %vm1127_vm6 = vmor %vm1125_vm15, %vm1126_vm14 }
 0x951   :  { %v1122_v9 = vsub.f32 1.0, %v1121_v8 }
 0x953   :  { %v1123_v11 = vmul.f32 %v2845_v7, %v1122_v9 }
 0x955   :  { %v1124_v12 = vadd.f32 %v2845_v7, %v1123_v11  ;;  %v4115_v11 = vld [vmem:[#allocation40_spill] sm:$0xff] }
 0x957   :  { %v1128_v17 = vsel %vm1127_vm6, %v2845_v7, %v1124_v12 }
 0x958   :  { %v1133_v26 = vsel %vm1130_vm7, %v1132_v24, %v1128_v17 }
 0x959   :  { %v1136_v20 = vmul.f32 %v1133_v26, %v4113_v2 }
 0x9b6   :  { %v1139_v45 = vpop.permute.xlu1 %1138 }
 0x9b7   :  { %v1141_v25 = vmul.f32 %v1139_v45, %v1133_v26 }
 0x9b9   :  { %1143 = vrot.lane.b32.xlu2 %v1141_v25, %s3053_s25 }
 0x9be   :  { %v1155_v62 = vpop.permute.xlu1 %1154 }
 0x9bf   :  { %2666 = vmatmul.msk.f32.vlgmr.msrb.gmra.mxu1 %vm161_vm2, %v1155_v62 }
 0x9c0   :  { %2684 = vmatpush.msk.msrb.mxu1 %vm194_vm0, %v4112_v40 }
 0xa13   :  { %v1144_v13 = vpop.permute.xlu2 %1143 }
 0xa14   :  { %v3649_v19 = vadd.f32 %v1144_v13, %v1136_v20 }
 0xa16   :  { %2846 = vtanh.f32 %v3649_v19 }
 0xa1c   :  { %v2847_v3 = vpop.eup %2846 }
 0xa1d   :  { %1149 = vrot.lane.b32.xlu0 %v2847_v3, %s3055_s15 }
 0xa3c   :  { %v1175_v7 = vpop.f32.mrf.mxu1 }
 0xa8f   :  { %v1150_v41 = vpop.permute.xlu0 %1149 }
 0xa90   :  { %v1152_v0 = vmul.f32 %v1150_v41, %v1133_v26 }
 0xa92   :  { %1179 = vrot.lane.b32.xlu2 %v1152_v0, %s3053_s25 }
 0xaec   :  { %v3654_v5 = vpop.permute.xlu2 %1179 }
 0xaed   :  { %2667 = vmatmul.msk.f32.vlgmr.msrb.gmra.mxu0 %vm161_vm2, %v3654_v5 }
 0xaee   :  { %1482 = vmatpush.msrb.mxu0 %v4114_v6 }
 0xb6a   :  { %v1200_v8 = vpop.f32.mrf.mxu0 }
 0xb6b   :  { %v1201_v9 = vadd.f32 %v1200_v8, %v1175_v7 }
 0xb6d   :  { %v1203_v12 = vadd.f32 %v4115_v11, %v1201_v9 }
 0xb6f   :  { %2848 = vtanh.f32 %v1203_v12  ;;  %v2668_v15 = vmul.f32 -1.442695, %v1203_v12 }
 0xb71   :  { %2850 = vpow2.f32 %v2668_v15 }
 0xb75   :  { %v2849_v14 = vpop.eup %2848 }
 0xb76   :  { %1226 = vrot.lane.b32.xlu0 %v2849_v14, %s3055_s15  ;;  %v3670_v14 = vld [vmem:[%s3067_s5 + $0x4] sm:$0x3] }
 0xb77   :  { %v2851_v17 = vpop.eup %2850  ;;  %2678 = vmatmul.msk.f32.vlgmr.msra.gmra.mxu3 %vm190_vm1, %v3670_v14 }
 0xb78   :  { %v1207_v24 = vadd.f32 1.0, %v2851_v17  ;;  %1525 = vmatpush.msra.mxu3 %v3416_v1 }
 0xb7a   :  { %2852 = vrcp.f32 %v1207_v24  ;;  %v1219_v2 = vand.u32 2147483648, %v1207_v24  ;;  %vm1213_vm9 = vweird.f32 %v1207_v24  ;;  %v1217_v20 = vand.u32 2147483647, %v1207_v24  ;;  %1526 = vmatpush.msra.mxu3 %v3430_v31 }
 0xb7c   :  { %v1220_v3 = vor.u32 1.1754944e-38, %v1219_v2  ;;  %vm1218_vm11 = vcmp.eq.f32.partialorder %v1217_v20, 8.507059e+37  ;;  %1527 = vmatpush.msra.mxu3 %v3434_v33  ;;  %v2670_v20 = vld [vmem:[%s3072_s9 + $0x4] sm:$0x3] }
 0xb7e   :  { %1528 = vmatpush.msra.mxu3 %v3438_v34  ;;  %v2671_v34 = vld [vmem:[%s3077_s13 + $0x4] sm:$0x3] }
 0xb80   :  { %v2853_v45 = vpop.eup %2852  ;;  %1529 = vmatpush.msra.mxu3 %v3442_v35 }
 0xb81   :  { %v1209_v26 = vmul.f32 %v2853_v45, %v1207_v24  ;;  %vm1214_vm8 = vweird.f32 %v2853_v45  ;;  %v2673_v24 = vld [vmem:[%s4089_s26 + $0x4] sm:$0x3] }
 0xb82   :  { %vm1215_vm10 = vmor %vm1213_vm9, %vm1214_vm8  ;;  %1530 = vmatpush.msra.mxu3 %v3446_v36 }
 0xb83   :  { %v1210_v25 = vsub.f32 1.0, %v1209_v26  ;;  %v1413_v26 = vstv %s2674_s2 }
 0xb84   :  { %1531 = vmatpush.msra.mxu3 %v3450_v37 }
 0xb85   :  { %v1211_v62 = vmul.f32 %v2853_v45, %v1210_v25  ;;  %v1415_v25 = vstv %s2675_s11 }
 0xb86   :  { %1532 = vmatpush.msra.mxu3 %v3454_v38 }
 0xb87   :  { %v1212_v40 = vadd.f32 %v2853_v45, %v1211_v62  ;;  %v1414_v62 = vmul.f32 %v3670_v14, %v1413_v26 }
 0xb89   :  { %v1216_v13 = vsel %vm1215_vm10, %v2853_v45, %v1212_v40  ;;  %v2672_v45 = vld [vmem:[%s3082_s17 + $0x4] sm:$0x3]  ;;  %vm2499_vm10 = vcmask 254976  }
 0xb8a   :  { %v1221_v0 = vsel %vm1218_vm11, %v1220_v3, %v1216_v13  ;;  %v1416_v40 = vmul.f32 %v2672_v45, %v1415_v25  ;;  %v2906_v45 = vld [vmem:[%s3132_s6 + $0x18] sm:$0xff]  ;;  %v2907_v25 = vld [vmem:[%s3132_s6 + $0x10] sm:$0xff] }
 0xb8b   :  { %v1224_v7 = vmul.f32 %v1221_v0, %v3537_v53 }
 0xb8c   :  { %v1417_v2 = vadd.f32 %v1416_v40, %v1414_v62  ;;  %v2908_v62 = vld [vmem:[%s3132_s6 + $0x8] sm:$0xff]  ;;  %v2909_v40 = vld [vmem:[%s3132_s6] sm:$0xff]  ;;  %s3896_s6 = sld [smem:[#allocation2 + $0x200]] }
 0xbe8   :  { %v1227_v41 = vpop.permute.xlu0 %1226 }
 0xbe9   :  { %v1229_v6 = vmul.f32 %v1227_v41, %v1221_v0 }
 0xbeb   :  { %1231 = vrot.lane.b32.xlu1 %v1229_v6, %s3053_s25 }
 0xbfa   :  { %v1303_v31 = vpop.f32.mrf.mxu3 }
 0xbfb   :  { %v1304_v33 = vadd.f32 %v3295_v16, %v1303_v31  ;;  %v2905_v31 = vld [vmem:[%s4084_s18 + $0x18] sm:$0xff]  ;;  %s4120_s18 = sld [smem:[#allocation19_spill]] }
 0xbfd   :  { %2680 = vmatmul.msk.f32.vlgmr.msra.gmra.mxu0 %vm161_vm2, %v1304_v33 }
 0xbfe   :  { %2690 = vmatpush.msk.msra.mxu0 %vm194_vm0, %v3370_v51 }
 0xc05   :  { %2686 = vmatmul.msk.f32.vlgmr.msrb.gmra.mxu0 %vm405_vm3, %v2670_v20 }
 0xc06   :  { %1677 = vmatpush.msrb.mxu0 %v3483_v22 }
 0xc08   :  { %1678 = vmatpush.msrb.mxu0 %v3486_v10  ;;  %v2895_v10 = vld [vmem:[%s3122_s24 + $0x10] sm:$0xff] }
 0xc0a   :  { %1679 = vmatpush.msrb.mxu0 %v3496_v29 }
 0xc0c   :  { %1680 = vmatpush.msrb.mxu0 %v3504_v43  ;;  %v2899_v43 = vld [vmem:[%s3122_s24] sm:$0xff] }
 0xc0d   :  { %2691 = vmatmul.msk.f32.vlgmr.msra.gmra.mxu0 %vm190_vm1, %v3670_v14 }
 0xc5d   :  { %v1232_v8 = vpop.permute.xlu1 %1231 }
 0xc5e   :  { %v3663_v9 = vadd.f32 %v1232_v8, %v1224_v7  ;;  %v2900_v8 = vld [vmem:[%s3097_s29] sm:$0xf]  ;;  %s4116_s29 = sld [smem:[#allocation13_spill]] }
 0xc60   :  { %2854 = vtanh.f32 %v3663_v9  ;;  %1254 = vrot.lane.b32.xlu0 %v3663_v9, %s3055_s15 }
 0xc66   :  { %v2855_v12 = vpop.eup %2854 }
 0xc67   :  { %1237 = vrot.lane.b32.xlu2 %v2855_v12, %s3055_s15  ;;  %v2901_v12 = vld [vmem:[%s3107_s8 + $0x18] sm:$0xff] }
 0xc6f   :  { %1354 = vrot.lane.b32.xlu2 %v2671_v34, %s3053_s25 }
 0xc7a   :  { %v1346_v16 = vpop.f32.mrf.mxu0 }
 0xc82   :  { %v1484_v34 = vpop.f32.mrf.mxu0 }
 0xcc1   :  { %v1238_v53 = vpop.permute.xlu2 %1237 }
 0xcc2   :  { %v3682_v15 = vmul.f32 %v1238_v53, %v1221_v0  ;;  %v2902_v53 = vld [vmem:[%s3107_s8 + $0x10] sm:$0xff] }
 0xcd2   :  { %v1255_v17 = vpop.permute.xlu0 %1254 }
 0xcd3   :  { %v1257_v1 = vadd.f32 %v1255_v17, %v3682_v15  ;;  %v2903_v17 = vld [vmem:[%s3107_s8 + $0x8] sm:$0xff] }
 0xcd5   :  { %1259 = vrot.lane.b32.xlu1 %v1257_v1, %s3053_s25  ;;  %v2904_v1 = vld [vmem:[%s3107_s8] sm:$0xff]  ;;  %s2731_s8 = sld [smem:[#allocation2 + $0x280]] }
 0xd47   :  { %v1260_v35 = vpop.permute.xlu1 %1259 }
 0xd48   :  { %2676 = vmatmul.msk.f32.vlgmr.msra.gmra.mxu2 %vm161_vm2, %v1260_v35  ;;  %2679 = vmatmul.msk.f32.vlgmr.msra.gmra.mxu1 %vm161_vm2, %v1260_v35 }
 0xd49   :  { %1505 = vmatpush.msra.mxu2 %v3359_v48  ;;  %1552 = vmatpush.msra.mxu1 %v3343_v44  ;;  %v1355_v44 = vpop.permute.xlu2 %1354 }
 0xd4b   :  { %1506 = vmatpush.msra.mxu2 %v3383_v54  ;;  %1553 = vmatpush.msra.mxu1 %v3351_v46 }
 0xd4d   :  { %1554 = vmatpush.msra.mxu1 %v3362_v49 }
 0xd4f   :  { %1555 = vmatpush.msra.mxu1 %v3374_v52 }
 0xd50   :  { %2685 = vmatmul.msk.f32.vlgmr.msrb.gmra.mxu1 %vm190_vm1, %v1417_v2 }
 0xd51   :  { %1613 = vmatpush.msrb.mxu1 %v3392_v57  ;;  %v2892_v57 = vld [vmem:[%s3117_s19 + $0x18] sm:$0xff] }
 0xd53   :  { %1614 = vmatpush.msrb.mxu1 %v3401_v59  ;;  %v2893_v59 = vld [vmem:[%s3122_s24 + $0x18] sm:$0xff] }
 0xd54   :  { %1825 = vmatpush.msra.mxu0 %v2893_v59 }
 0xd55   :  { %1615 = vmatpush.msrb.mxu1 %v3406_v61  ;;  %v2894_v61 = vld [vmem:[%s3117_s19 + $0x10] sm:$0xff] }
 0xd56   :  { %1826 = vmatpush.msra.mxu0 %v2895_v10 }
 0xd57   :  { %1616 = vmatpush.msrb.mxu1 %v3411_v63  ;;  %v2897_v63 = vld [vmem:[%s3122_s24 + $0x8] sm:$0xff]  ;;  %s2741_s24 = sld [smem:[#allocation2 + $0x300]] }
 0xd58   :  { %1827 = vmatpush.msra.mxu0 %v2897_v63 }
 0xd5a   :  { %1828 = vmatpush.msra.mxu0 %v2899_v43 }
 0xdc5   :  { %v1323_v36 = vpop.f32.mrf.mxu1 }
 0xdc6   :  { %v1347_v51 = vadd.f32 %v1346_v16, %v1323_v36  ;;  %v1577_v36 = vpop.f32.mrf.mxu0 }
 0xdc8   :  { %v3701_v37 = vadd.f32 %v3312_v23, %v1347_v51  ;;  %v3711_v23 = vpop.f32.mrf.mxu2 }
 0xdca   :  { %v1350_v48 = vmul.f32 0.5, %v3701_v37 }
 0xdcc   :  { %v1351_v38 = vmul.f32 1.442695, %v1350_v48 }
 0xdcd   :  { %v1461_v33 = vpop.f32.mrf.mxu1 }
 0xdce   :  { %2856 = vpow2.f32 %v1351_v38 }
 0xdd4   :  { %v3704_v54 = vpop.eup %2856 }
 0xdd5   :  { %v1357_v46 = vmul.f32 %v3704_v54, %v1355_v44 }
 0xdd7   :  { %1359 = vrot.lane.b32.xlu0 %v1357_v46, %s3054_s10 }
 0xe49   :  { %v1360_v49 = vpop.permute.xlu0 %1359 }
 0xe4a   :  { %v1362_v52 = vadd.f32 %v1360_v49, %v3701_v37 }
 0xe4c   :  { %2681 = vmatmul.msk.f32.vlgmr.msrb.gmra.mxu2 %vm161_vm2, %v1362_v52 }
 0xe4d   :  { %1595 = vmatpush.msrb.mxu2 %v3395_v58  ;;  %v3725_v58 = vpop.f32.mrf.mxu2 }
 0xe54   :  { %2687 = vmatmul.msk.f32.vlgmr.msra.gmra.mxu2 %vm432_vm4, %v2673_v24 }
 0xe55   :  { %1702 = vmatpush.msra.mxu2 %v3490_v27 }
 0xe57   :  { %1703 = vmatpush.msra.mxu2 %v3493_v28  ;;  %v2896_v28 = vld [vmem:[%s3117_s19 + $0x8] sm:$0xff] }
 0xe59   :  { %1704 = vmatpush.msra.mxu2 %v3501_v42  ;;  %v2898_v42 = vld [vmem:[%s3117_s19] sm:$0xff]  ;;  %s2732_s19 = sld [smem:[#allocation2 + $0x281]] }
 0xe5b   :  { %1705 = vmatpush.msra.mxu2 %v3509_v55 }
 0xe5c   :  { %2692 = vmatmul.msk.f32.vlgmr.msrb.gmra.mxu2 %vm405_vm3, %v2670_v20 }
 0xe5d   :  { %1848 = vmatpush.msrb.mxu2 %v2892_v57 }
 0xe5f   :  { %1849 = vmatpush.msrb.mxu2 %v2894_v61 }
 0xe61   :  { %1850 = vmatpush.msrb.mxu2 %v2896_v28 }
 0xe63   :  { %1851 = vmatpush.msrb.mxu2 %v2898_v42 }
 0xecf   :  { %v1383_v22 = vpop.f32.mrf.mxu2 }
 0xed0   :  { %v1384_v27 = vadd.f32 %v3387_v56, %v1383_v22 }
 0xed2   :  { %v1387_v29 = vand.u32 2147483647, %v1384_v27  ;;  %v1386_v0 = vmax.f32 %v1384_v27, 0.0 }
 0xed4   :  { %v1388_v55 = vsub.f32 0.0, %v1387_v29 }
 0xed6   :  { %v1389_v13 = vmul.f32 1.442695, %v1388_v55 }
 0xed7   :  { %v1508_v35 = vpop.f32.mrf.mxu2 }
 0xed8   :  { %2858 = vpow2.f32 %v1389_v13 }
 0xede   :  { %v2859_v3 = vpop.eup %2858 }
 0xedf   :  { %v1391_v41 = vadd.f32 1.0, %v2859_v3  ;;  %v1597_v48 = vpop.f32.mrf.mxu2 }
 0xee1   :  { %2860 = vlog2.f32 %v1391_v41 }
 0xee7   :  { %v2861_v56 = vpop.eup %2860 }
 0xee8   :  { %v1393_v6 = vmul.f32 0.6931472, %v2861_v56 }
 0xeea   :  { %v1394_v7 = vadd.f32 %v1393_v6, %v1386_v0  ;;  %v3775_v0 = vld [vmem:[%s3142_s20] sm:$0xf]  ;;  %s3899_s20 = sld [smem:[#allocation2 + $0x201]] }
 0xeec   :  { %2683 = vmatmul.msk.f32.vlgmr.msrb.gmra.mxu3 %vm161_vm2, %v1394_v7  ;;  %2689 = vmatmul.msk.f32.vlgmr.msra.gmra.mxu1 %vm161_vm2, %v1394_v7 }
 0xeed   :  { %2706 = vmatpush.msk.msra.mxu1 %vm194_vm0, %v2900_v8  ;;  %1782 = vmatpush.msrb.mxu3 %v2901_v12 }
 0xeef   :  { %1783 = vmatpush.msrb.mxu3 %v2902_v53 }
 0xef1   :  { %1784 = vmatpush.msrb.mxu3 %v2903_v17 }
 0xef3   :  { %1785 = vmatpush.msrb.mxu3 %v2904_v1 }
 0xef4   :  { %2693 = vmatmul.msk.f32.vlgmr.msrb.gmra.mxu1 %vm161_vm2, %v3654_v5 }
 0xef5   :  { %1940 = vmatpush.msrb.mxu1 %v2905_v31 }
 0xef7   :  { %1941 = vmatpush.msrb.mxu1 %v3354_v47 }
 0xef9   :  { %1942 = vmatpush.msrb.mxu1 %v3365_v50 }
 0xefb   :  { %1943 = vmatpush.msrb.mxu1 %v4105_v4 }
 0xf69   :  { %v1557_v16 = vpop.f32.mrf.mxu1 }
 0xf6a   :  { %v1578_v51 = vadd.f32 %v1577_v36, %v1557_v16 }
 0xf6c   :  { %v1600_v44 = vadd.f32 %v1597_v48, %v1578_v51 }
 0xf6f   :  { %v1438_v38 = vpop.f32.mrf.mxu3 }
 0xf70   :  { %v1462_v5 = vadd.f32 %v1461_v33, %v1438_v38 }
 0xf71   :  { %v1618_v46 = vpop.f32.mrf.mxu1 }
 0xf72   :  { %v1487_v49 = vadd.f32 %v1484_v34, %v1462_v5  ;;  %v1621_v47 = vadd.f32 %v1618_v46, %v1600_v44 }
 0xf74   :  { %v1511_v50 = vadd.f32 %v1508_v35, %v1487_v49  ;;  %v1622_v4 = vadd.f32 %v4107_v32, %v1621_v47 }
 0xf76   :  { %v1512_v52 = vadd.f32 %v4106_v18, %v1511_v50  ;;  %2862 = vtanh.f32 %v1622_v4  ;;  %v2694_v2 = vmul.f32 -1.442695, %v1622_v4 }
 0xf78   :  { %v1513_v24 = vmax.f32 %v1512_v52, 0.0  ;;  %2864 = vpow2.f32 %v2694_v2  ;;  %v3806_v2 = vld [vmem:[%s4094_s7 + $0x38] sm:$0xff] }
 0xf7a   :  { %2688 = vmatmul.msk.f32.vlgmr.msra.gmra.mxu3 %vm475_vm5, %v1513_v24 }
 0xf7b   :  { %1885 = vmatpush.msra.mxu3 %v2906_v45  ;;  %v2700_v45 = vld [vmem:[%s3077_s13 + $0x6] sm:$0x3]  ;;  %s2703_s13 = sld [smem:[#allocation2 + $0x180]] }
 0xf7c   :  { %v2863_v26 = vpop.eup %2862 }
 0xf7d   :  { %1645 = vrot.lane.b32.xlu1 %v2863_v26, %s3055_s15  ;;  %1886 = vmatpush.msra.mxu3 %v2907_v25  ;;  %v3793_v26 = vld [vmem:[%s4116_s29] ss:$0 sm:$0xff] }
 0xf7e   :  { %v2865_v32 = vpop.eup %2864  ;;  %v774_v25 = vadd.f32 %v3793_v26, %v3591_v21  ;;  %v3810_v21 = vld [vmem:[%s4094_s7 + $0x30] sm:$0xff] }
 0xf7f   :  { %1887 = vmatpush.msra.mxu3 %v2908_v62  ;;  %v1626_v20 = vadd.f32 1.0, %v2865_v32  ;;  %v3814_v32 = vld [vmem:[%s4094_s7 + $0x28] sm:$0xff] }
 0xf81   :  { %1888 = vmatpush.msra.mxu3 %v2909_v40  ;;  %2866 = vrcp.f32 %v1626_v20  ;;  %v1638_v10 = vand.u32 2147483648, %v1626_v20  ;;  %vm1632_vm13 = vweird.f32 %v1626_v20  ;;  %v1636_v27 = vand.u32 2147483647, %v1626_v20  ;;  %v3801_v40 = vld [vmem:[%s3067_s5 + $0x6] sm:$0x3] }
 0xf82   :  { %2707 = vmatmul.msk.f32.vlgmr.msra.gmra.mxu1 %vm190_vm1, %v3801_v40 }
 0xf83   :  { %v1639_v63 = vor.u32 1.1754944e-38, %v1638_v10  ;;  %vm1637_vm15 = vcmp.eq.f32.partialorder %v1636_v27, 8.507059e+37  ;;  %2032 = vmatpush.msra.mxu1 %v3806_v2 }
 0xf85   :  { %2033 = vmatpush.msra.mxu1 %v3810_v21 }
 0xf87   :  { %v2867_v18 = vpop.eup %2866  ;;  %2034 = vmatpush.msra.mxu1 %v3814_v32 }
 0xf88   :  { %v1628_v57 = vmul.f32 %v2867_v18, %v1626_v20  ;;  %vm1633_vm12 = vweird.f32 %v2867_v18  ;;  %v3818_v20 = vld [vmem:[%s4094_s7 + $0x20] sm:$0xff] }
 0xf89   :  { %vm1634_vm14 = vmor %vm1632_vm13, %vm1633_vm12  ;;  %2035 = vmatpush.msra.mxu1 %v3818_v20 }
 0xf8a   :  { %v1629_v59 = vsub.f32 1.0, %v1628_v57  ;;  %v3826_v57 = vld [vmem:[%s4094_s7 + $0x10] sm:$0xff] }
 0xf8c   :  { %v1630_v61 = vmul.f32 %v2867_v18, %v1629_v59  ;;  %v3830_v59 = vld [vmem:[%s4094_s7 + $0x8] sm:$0xff] }
 0xf8e   :  { %v1631_v22 = vadd.f32 %v2867_v18, %v1630_v61  ;;  %v3834_v61 = vld [vmem:[%s4094_s7] sm:$0xff] }
 0xf90   :  { %v1635_v28 = vsel %vm1634_vm14, %v2867_v18, %v1631_v22  ;;  %v3822_v18 = vld [vmem:[%s4094_s7 + $0x18] sm:$0xff]  ;;  %v888_v22 = vsub.f32 0.0, %v774_v25  ;;  %s2957_s7 = scalar_lea.hbm %s3222_s12, 1 }
 0xf91   :  { %v1640_v42 = vsel %vm1637_vm15, %v1639_v63, %v1635_v28  ;;  %2036 = vmatpush.msra.mxu1 %v3822_v18 }
 0xf92   :  { %v1643_v55 = vmul.f32 %v1640_v42, %v3649_v19  ;;  %v3782_v19 = vld [vmem:[%s3152_s4] sm:$0xff]  ;;  %v889_v27 = vmul.f32 1.442695, %v888_v22 }
 0xf93   :  { %2037 = vmatpush.msra.mxu1 %v3826_v57  ;;  %v2923_v22 = vld [vmem:[%s3127_s30] ss:$0 sm:$0xff]  ;;  %s2742_s30 = sld [smem:[#allocation2 + $0x301]] }
 0xf95   :  { %2038 = vmatpush.msra.mxu1 %v3830_v59 }
 0xf97   :  { %2039 = vmatpush.msra.mxu1 %v3834_v61 }
 0xfef   :  { %v1646_v29 = vpop.permute.xlu1 %1645 }
 0xff0   :  { %v1648_v43 = vmul.f32 %v1646_v29, %v1640_v42  ;;  %v893_v29 = vmul.f32 %v3578_v30, %v3578_v30 }
 0xff2   :  { %1650 = vrot.lane.b32.xlu2 %v1648_v43, %s3053_s25 }
 0xffa   :  { %1661 = vrot.lane.b32.xlu2 %v3682_v15, %s3053_s25 }
0x104c   :  { %v1651_v13 = vpop.permute.xlu2 %1650 }
0x104d   :  { %v1653_v3 = vadd.f32 %v1651_v13, %v1643_v55 }
0x104f   :  { %2868 = vtanh.f32 %v1653_v3 }
0x1054   :  { %v1662_v41 = vpop.permute.xlu2 %1661 }
0x1055   :  { %v2869_v56 = vpop.eup %2868  ;;  %2695 = vmatmul.msk.f32.vlgmr.msrb.gmra.mxu0 %vm161_vm2, %v1662_v41 }
0x1056   :  { %1656 = vrot.lane.b32.xlu0 %v2869_v56, %s3055_s15  ;;  %2713 = vmatpush.msk.msrb.mxu0 %vm194_vm0, %v3775_v0  ;;  %v4117_v56 = vld [vmem:[#allocation36_spill] sm:$0xff] }
0x10c8   :  { %v1657_v6 = vpop.permute.xlu0 %1656 }
0x10c9   :  { %v1659_v7 = vmul.f32 %v1657_v6, %v1640_v42  ;;  %v891_v42 = vsub.f32 %v774_v25, %v3575_v60  ;;  %v183_v6 = vadd.f32 %v3793_v26, %v4117_v56 }
0x10cb   :  { %1686 = vrot.lane.b32.xlu1 %v1659_v7, %s3053_s25 }
0x10d2   :  { %v1682_v8 = vpop.f32.mrf.mxu0 }
0x113d   :  { %v1687_v15 = vpop.permute.xlu1 %1686 }
0x113e   :  { %2696 = vmatmul.msk.f32.vlgmr.msra.gmra.mxu2 %vm161_vm2, %v1687_v15  ;;  %v892_v15 = vmul.f32 0.5, %v891_v42 }
0x113f   :  { %1989 = vmatpush.msra.mxu2 %v3782_v19 }
0x11c1   :  { %v1707_v12 = vpop.f32.mrf.mxu2 }
0x11c2   :  { %v1708_v53 = vadd.f32 %v1707_v12, %v1682_v8 }
0x11c4   :  { %v1710_v17 = vadd.f32 %v4115_v11, %v1708_v53  ;;  %v4118_v53 = vld [vmem:[#allocation30_spill] sm:$0xff] }
0x11c5   :  { %v333_v30 = vsub.f32 %v4118_v53, %v183_v6 }
0x11c6   :  { %2870 = vtanh.f32 %v1710_v17  ;;  %v2697_v31 = vmul.f32 -1.442695, %v1710_v17 }
0x11c7   :  { %v334_v17 = vmul.f32 %v333_v30, %v333_v30 }
0x11c8   :  { %2872 = vpow2.f32 %v2697_v31 }
0x11cc   :  { %v2871_v1 = vpop.eup %2870 }
0x11cd   :  { %1733 = vrot.lane.b32.xlu0 %v2871_v1, %s3055_s15  ;;  %v2920_v1 = vld [vmem:[%s3102_s3] ss:$0 sm:$0xff]  ;;  %s2704_s3 = sld [smem:[#allocation2 + $0x181]] }
0x11ce   :  { %v2873_v33 = vpop.eup %2872 }
0x11cf   :  { %v1714_v34 = vadd.f32 1.0, %v2873_v33  ;;  %v327_v33 = vsub.f32 0.0, %v183_v6 }
0x11d1   :  { %2874 = vrcp.f32 %v1714_v34  ;;  %v1726_v38 = vand.u32 2147483648, %v1714_v34  ;;  %vm1720_vm7 = vweird.f32 %v1714_v34  ;;  %v1724_v44 = vand.u32 2147483647, %v1714_v34 }
0x11d3   :  { %v1727_v5 = vor.u32 1.1754944e-38, %v1726_v38  ;;  %vm1725_vm9 = vcmp.eq.f32.partialorder %v1724_v44, 8.507059e+37  ;;  %v4119_v38 = vld [vmem:[#allocation31_spill] sm:$0xff] }
0x11d4   :  { %v332_v44 = vmul.f32 %v4119_v38, %v4119_v38 }
0x11d7   :  { %v2875_v35 = vpop.eup %2874 }
0x11d8   :  { %v1716_v16 = vmul.f32 %v2875_v35, %v1714_v34  ;;  %vm1721_vm6 = vweird.f32 %v2875_v35  ;;  %v328_v34 = vmul.f32 1.442695, %v327_v33 }
0x11d9   :  { %vm1722_vm8 = vmor %vm1720_vm7, %vm1721_vm6 }
0x11da   :  { %v1717_v36 = vsub.f32 1.0, %v1716_v16  ;;  %v3851_v16 = vld [vmem:[%s4087_s22 + $0x8] sm:$0xff] }
0x11dc   :  { %v1718_v51 = vmul.f32 %v2875_v35, %v1717_v36  ;;  %v3857_v36 = vld [vmem:[%s4087_s22] sm:$0xff] }
0x11de   :  { %v1719_v48 = vadd.f32 %v2875_v35, %v1718_v51 }
0x11e0   :  { %v1723_v11 = vsel %vm1722_vm8, %v2875_v35, %v1719_v48  ;;  %v330_v48 = vsub.f32 %v183_v6, %v4118_v53 }
0x11e1   :  { %v1728_v49 = vsel %vm1725_vm9, %v1727_v5, %v1723_v11 }
0x11e2   :  { %v1731_v50 = vmul.f32 %v1728_v49, %v3663_v9  ;;  %v894_v9 = vsub.f32 %v3575_v60, %v774_v25  ;;  %v1810_v60 = vpop.f32.mrf.mxu1 }
0x11e3   :  { %v1811_v31 = vadd.f32 %v2920_v1, %v1810_v60 }
0x11e4   :  { %v895_v62 = vmul.f32 %v894_v9, %v894_v9 }
0x11e5   :  { %2709 = vmatmul.msk.f32.vlgmr.msrb.gmra.mxu2 %vm161_vm2, %v1811_v31 }
0x11e6   :  { %2101 = vmatpush.msrb.mxu2 %v3782_v19 }
0x123f   :  { %v1734_v46 = vpop.permute.xlu0 %1733 }
0x1240   :  { %v1736_v47 = vmul.f32 %v1734_v46, %v1728_v49 }
0x1242   :  { %1738 = vrot.lane.b32.xlu1 %v1736_v47, %s3053_s25 }
0x1268   :  { %v1853_v25 = vpop.f32.mrf.mxu2 }
0x12b4   :  { %v1739_v4 = vpop.permute.xlu1 %1738 }
0x12b5   :  { %v1741_v52 = vadd.f32 %v1739_v4, %v1731_v50 }
0x12b7   :  { %2876 = vtanh.f32 %v1741_v52  ;;  %1761 = vrot.lane.b32.xlu0 %v1741_v52, %s3055_s15 }
0x12b8   :  { %2878 = vpow2.f32 %v889_v27 }
0x12b9   :  { %2880 = vpow2.f32 %v328_v34 }
0x12bd   :  { %v2877_v24 = vpop.eup %2876 }
0x12be   :  { %1744 = vrot.lane.b32.xlu2 %v2877_v24, %s3055_s15  ;;  %v2879_v63 = vpop.eup %2878 }
0x12bf   :  { %v901_v3 = vmul.f32 0.5, %v2879_v63  ;;  %v2881_v51 = vpop.eup %2880 }
0x12c0   :  { %v340_v5 = vmul.f32 0.5, %v2881_v51 }
0x12c6   :  { %1861 = vrot.lane.b32.xlu2 %v2700_v45, %s3053_s25  ;;  %v3863_v45 = vpop.f32.mrf.mxu3 }
0x12ce   :  { %897 = vrot.lane.b32.xlu2 %v895_v62, %s3053_s25 }
0x1318   :  { %v1745_v10 = vpop.permute.xlu2 %1744 }
0x1319   :  { %v1747_v43 = vmul.f32 %v1745_v10, %v1728_v49  ;;  %v331_v49 = vmul.f32 0.5, %v330_v48  ;;  %v1400_v48 = vmul.f32 %v3704_v54, %v3704_v54  ;;  %v2720_v54 = vld [vmem:[%s4089_s26 + $0x8] sm:$0x3] }
0x1320   :  { %v1862_v28 = vpop.permute.xlu2 %1861 }
0x1328   :  { %v898_v55 = vpop.permute.xlu2 %897 }
0x1329   :  { %v900_v13 = vadd.f32 %v898_v55, %v893_v29  ;;  %v1762_v41 = vpop.permute.xlu0 %1761 }
0x132a   :  { %v1764_v7 = vadd.f32 %v1762_v41, %v1747_v43 }
0x132b   :  { %v902_v8 = vmul.f32 %v901_v3, %v900_v13  ;;  %v1281_v3 = vadd.f32 %v3793_v26, %v3725_v58 }
0x132c   :  { %1766 = vrot.lane.b32.xlu1 %v1764_v7, %s3053_s25 }
0x132d   :  { %v903_v12 = vadd.f32 %v902_v8, %v892_v15  ;;  %v1401_v56 = vsub.f32 %v3701_v37, %v1281_v3  ;;  %v1395_v8 = vsub.f32 0.0, %v1281_v3  ;;  %v1398_v51 = vsub.f32 %v1281_v3, %v3701_v37  ;;  %v2699_v37 = vld [vmem:[%s3072_s9 + $0x6] sm:$0x3]  ;;  %v2739_v3 = vld [vmem:[%s3082_s17 + $0xc] sm:$0x3] }
0x132e   :  { %2715 = vmatmul.msk.f32.vlgmr.msra.gmra.mxu2 %vm405_vm3, %v2699_v37 }
0x132f   :  { %v2653_v4 = vadd.f32 -0.5, %v903_v12  ;;  %v1402_v6 = vmul.f32 %v1401_v56, %v1401_v56  ;;  %v1396_v60 = vmul.f32 1.442695, %v1395_v8  ;;  %2733 = vmatpush.msk.msra.mxu2 %vm194_vm0, %v3775_v0  ;;  %v3908_v56 = vld [vmem:[%s3067_s5 + $0x2] sm:$0x3] }
0x1334   :  { %336 = vrot.lane.b32.xlu1 %v334_v17, %s3053_s25 }
0x139e   :  { %v1767_v35 = vpop.permute.xlu1 %1766 }
0x139f   :  { %2705 = vmatmul.msk.f32.vlgmr.msrb.gmra.mxu3 %vm161_vm2, %v1767_v35  ;;  %2708 = vmatmul.msk.f32.vlgmr.msra.gmra.mxu0 %vm161_vm2, %v1767_v35 }
0x13a0   :  { %2012 = vmatpush.msrb.mxu3 %v3851_v16  ;;  %2723 = vmatpush.msk.msra.mxu0 %vm194_vm0, %v3775_v0 }
0x13a2   :  { %2013 = vmatpush.msrb.mxu3 %v3857_v36 }
0x13a6   :  { %v337_v11 = vpop.permute.xlu1 %336 }
0x13a7   :  { %v339_v46 = vadd.f32 %v337_v11, %v332_v44 }
0x13a9   :  { %v341_v47 = vmul.f32 %v340_v5, %v339_v46  ;;  %v1399_v5 = vmul.f32 0.5, %v1398_v51 }
0x13ab   :  { %v342_v50 = vadd.f32 %v341_v47, %v331_v49 }
0x13ad   :  { %v2626_v52 = vadd.f32 -0.5, %v342_v50 }
0x13af   :  { %v905_v24 = vadd.f32 %v2653_v4, %v2626_v52 }
0x141c   :  { %v1830_v9 = vpop.f32.mrf.mxu0 }
0x141d   :  { %v1854_v62 = vadd.f32 %v1853_v25, %v1830_v9  ;;  %v2702_v25 = vld [vmem:[%s4089_s26 + $0x6] sm:$0x3] }
0x141f   :  { %v1856_v10 = vadd.f32 %v2923_v22, %v1854_v62  ;;  %v1920_v62 = vstv %s2703_s13  ;;  %v2718_v22 = vld [vmem:[%s3072_s9 + $0x8] sm:$0x3] }
0x1420   :  { %2725 = vmatmul.msk.f32.vlgmr.msrb.gmra.mxu2 %vm405_vm3, %v2718_v22  ;;  %v1991_v22 = vpop.f32.mrf.mxu2 }
0x1421   :  { %v1857_v27 = vmul.f32 0.5, %v1856_v10  ;;  %2256 = vmatpush.msrb.mxu2 %v3806_v2 }
0x1422   :  { %v1787_v63 = vpop.f32.mrf.mxu3 }
0x1423   :  { %v1858_v29 = vmul.f32 1.442695, %v1857_v27  ;;  %v1788_v42 = vadd.f32 %v3793_v26, %v1787_v63  ;;  %v1921_v27 = vmul.f32 %v3801_v40, %v1920_v62  ;;  %v2701_v63 = vld [vmem:[%s3082_s17 + $0x6] sm:$0x3]  ;;  %2257 = vmatpush.msrb.mxu2 %v3810_v21 }
0x1425   :  { %v1908_v43 = vsub.f32 %v1856_v10, %v1788_v42  ;;  %2882 = vpow2.f32 %v1858_v29  ;;  %v1902_v7 = vsub.f32 0.0, %v1788_v42  ;;  %v1905_v53 = vsub.f32 %v1788_v42, %v1856_v10  ;;  %2258 = vmatpush.msrb.mxu2 %v3814_v32 }
0x1426   :  { %v1922_v29 = vstv %s2704_s3 }
0x1427   :  { %v1909_v55 = vmul.f32 %v1908_v43, %v1908_v43  ;;  %v1903_v15 = vmul.f32 1.442695, %v1902_v7  ;;  %v1906_v58 = vmul.f32 0.5, %v1905_v53  ;;  %v1923_v42 = vmul.f32 %v2701_v63, %v1922_v29  ;;  %v2729_v43 = vld [vmem:[%s3082_s17 + $0xa] sm:$0x3]  ;;  %2259 = vmatpush.msrb.mxu2 %v3818_v20 }
0x1429   :  { %1911 = vrot.lane.b32.xlu1 %v1909_v55, %s3053_s25  ;;  %2884 = vpow2.f32 %v1903_v15  ;;  %v2167_v55 = vstv %s2731_s8  ;;  %v2279_v15 = vstv %s2741_s24  ;;  %2260 = vmatpush.msrb.mxu2 %v3822_v18 }
0x142a   :  { %2886 = vpow2.f32 %v1396_v60  ;;  %v2280_v8 = vmul.f32 %v3670_v14, %v2279_v15  ;;  %v2719_v60 = vld [vmem:[%s3082_s17 + $0x8] sm:$0x3] }
0x142b   :  { %v2883_v13 = vpop.eup %2882  ;;  %2261 = vmatpush.msrb.mxu2 %v3826_v57 }
0x142c   :  { %v1864_v41 = vmul.f32 %v2883_v13, %v1862_v28  ;;  %v1907_v30 = vmul.f32 %v2883_v13, %v2883_v13  ;;  %v2169_v13 = vstv %s2732_s19 }
0x142d   :  { %v2170_v7 = vmul.f32 %v2729_v43, %v2169_v13  ;;  %2262 = vmatpush.msrb.mxu2 %v3830_v59 }
0x142e   :  { %1866 = vrot.lane.b32.xlu0 %v1864_v41, %s3054_s10  ;;  %v1924_v41 = vadd.f32 %v1923_v42, %v1921_v27 }
0x142f   :  { %v2885_v12 = vpop.eup %2884  ;;  %2263 = vmatpush.msrb.mxu2 %v3834_v61 }
0x1430   :  { %v1915_v31 = vmul.f32 0.5, %v2885_v12  ;;  %v2887_v35 = vpop.eup %2886  ;;  %v2281_v12 = vstv %s2742_s30  ;;  %2714 = vmatmul.msk.f32.vlgmr.msrb.gmra.mxu0 %vm190_vm1, %v1924_v41 }
0x1431   :  { %v1408_v11 = vmul.f32 0.5, %v2887_v35  ;;  %2144 = vmatpush.msrb.mxu0 %v3806_v2  ;;  %v2926_v35 = vld [vmem:[%s4090_s28] ss:$0 sm:$0xff] }
0x1433   :  { %2145 = vmatpush.msrb.mxu0 %v3810_v21 }
0x1435   :  { %2146 = vmatpush.msrb.mxu0 %v3814_v32 }
0x1436   :  { %1404 = vrot.lane.b32.xlu0 %v1402_v6, %s3053_s25  ;;  %v2168_v6 = vmul.f32 %v3908_v56, %v2167_v55  ;;  %s2751_s25 = sld [smem:[#allocation2 + $0x380]] }
0x1437   :  { %2147 = vmatpush.msrb.mxu0 %v3818_v20 }
0x1438   :  { %v2171_v53 = vadd.f32 %v2170_v7, %v2168_v6  ;;  %v3957_v7 = vld [vmem:[%s4095_s0] ss:$0 sm:$0xff] }
0x1439   :  { %2148 = vmatpush.msrb.mxu0 %v3822_v18 }
0x143a   :  { %2734 = vmatmul.msk.f32.vlgmr.msra.gmra.mxu2 %vm190_vm1, %v2171_v53 }
0x143b   :  { %2460 = vmatpush.msra.mxu2 %v3851_v16  ;;  %2149 = vmatpush.msrb.mxu0 %v3826_v57 }
0x143d   :  { %2461 = vmatpush.msra.mxu2 %v3857_v36  ;;  %2150 = vmatpush.msrb.mxu0 %v3830_v59 }
0x143f   :  { %2151 = vmatpush.msrb.mxu0 %v3834_v61 }
0x149b   :  { %v1912_v17 = vpop.permute.xlu1 %1911 }
0x149c   :  { %v1914_v1 = vadd.f32 %v1912_v17, %v1907_v30  ;;  %v2282_v30 = vmul.f32 %v2739_v3, %v2281_v12 }
0x149e   :  { %v1916_v26 = vmul.f32 %v1915_v31, %v1914_v1  ;;  %v2283_v17 = vadd.f32 %v2282_v30, %v2280_v8  ;;  %v2055_v1 = vstv %s3896_s6  ;;  %v2057_v31 = vstv %s3899_s20  ;;  %v2730_v30 = vld [vmem:[%s4089_s26 + $0xa] sm:$0x3] }
0x14a0   :  { %v1917_v28 = vadd.f32 %v1916_v26, %v1906_v58  ;;  %v1867_v33 = vpop.permute.xlu0 %1866  ;;  %v3926_v58 = vld [vmem:[%s3067_s5] sm:$0x3] }
0x14a1   :  { %v1869_v34 = vadd.f32 %v1867_v33, %v1856_v10  ;;  %v2728_v10 = vld [vmem:[%s3072_s9 + $0xa] sm:$0x3]  ;;  %v2056_v26 = vmul.f32 %v3926_v58, %v2055_v1  ;;  %v2738_v1 = vld [vmem:[%s3072_s9 + $0xc] sm:$0x3] }
0x14a2   :  { %v2711_v50 = vadd.f32 -0.5, %v1917_v28  ;;  %v2058_v28 = vmul.f32 %v2719_v60, %v2057_v31  ;;  %v2391_v60 = vstv %s2751_s25  ;;  %v2749_v31 = vld [vmem:[%s3082_s17 + $0xe] sm:$0x3]  ;;  %s3056_s17 = smov [#allocation6]  }
0x14a3   :  { %2710 = vmatmul.msk.f32.vlgmr.msra.gmra.mxu3 %vm161_vm2, %v1869_v34  ;;  %s2557_s22 = sshll.u32 %s3056_s17, 4  ;;  %s2558_s22 = int_to_ptr.vmem [resolvable:$true] %s2557_s22 }
0x14a4   :  { %2124 = vmatpush.msra.mxu3 %v3851_v16  ;;  %v2059_v33 = vadd.f32 %v2058_v28, %v2056_v26  ;;  %v2748_v28 = vld [vmem:[%s3072_s9 + $0xe] sm:$0x3] }
0x14a6   :  { %2125 = vmatpush.msra.mxu3 %v3857_v36  ;;  %2724 = vmatmul.msk.f32.vlgmr.msra.gmra.mxu0 %vm190_vm1, %v2059_v33  ;;  %v2392_v33 = vmul.f32 %v3801_v40, %v2391_v60 }
0x14a7   :  { %2348 = vmatpush.msra.mxu0 %v3851_v16 }
0x14a8   :  { %v1405_v38 = vpop.permute.xlu0 %1404 }
0x14a9   :  { %v1407_v44 = vadd.f32 %v1405_v38, %v1400_v48  ;;  %2349 = vmatpush.msra.mxu0 %v3857_v36 }
0x14ab   :  { %v1409_v46 = vmul.f32 %v1408_v11, %v1407_v44  ;;  %2716 = vmatmul.msk.f32.vlgmr.msrb.gmra.mxu3 %vm432_vm4, %v2702_v25 }
0x14ac   :  { %2213 = vmatpush.msrb.mxu3 %v3782_v19 }
0x14ad   :  { %v1410_v49 = vadd.f32 %v1409_v46, %v1399_v5  ;;  %v1968_v62 = vpop.f32.mrf.mxu0 }
0x14af   :  { %v2682_v47 = vadd.f32 -0.5, %v1410_v49 }
0x14b1   :  { %v1412_v4 = vadd.f32 %v2682_v47, %v905_v24 }
0x14b3   :  { %v1919_v52 = vadd.f32 %v2711_v50, %v1412_v4  ;;  %2726 = vmatmul.msk.f32.vlgmr.msra.gmra.mxu3 %vm432_vm4, %v2720_v54 }
0x14b4   :  { %2743 = vmatpush.msk.msra.mxu3 %vm194_vm0, %v3775_v0 }
0x14b5   :  { %2496 = vrot.lane.b32.xlu2 %v1919_v52, %s3054_s10  ;;  %s2752_s10 = sld [smem:[#allocation2 + $0x381]] }
0x14bb   :  { %2735 = vmatmul.msk.f32.vlgmr.msrb.gmra.mxu3 %vm405_vm3, %v2728_v10  ;;  %v2393_v26 = vstv %s2752_s10 }
0x14bc   :  { %2368 = vmatpush.msrb.mxu3 %v3806_v2 }
0x14be   :  { %2369 = vmatpush.msrb.mxu3 %v3810_v21 }
0x14c0   :  { %2370 = vmatpush.msrb.mxu3 %v3814_v32 }
0x14c2   :  { %2371 = vmatpush.msrb.mxu3 %v3818_v20 }
0x14c3   :  { %2744 = vmatmul.msk.f32.vlgmr.msra.gmra.mxu3 %vm190_vm1, %v2283_v17  ;;  %v2740_v17 = vld [vmem:[%s4089_s26 + $0xc] sm:$0x3] }
0x14c4   :  { %2372 = vmatpush.msrb.mxu3 %v3822_v18 }
0x14c6   :  { %2373 = vmatpush.msrb.mxu3 %v3826_v57 }
0x14c8   :  { %2374 = vmatpush.msrb.mxu3 %v3830_v59 }
0x14ca   :  { %2375 = vmatpush.msrb.mxu3 %v3834_v61 }
0x150f   :  { %v2497_v24 = vpop.permute.xlu2 %2496 }
0x1510   :  { %v2500_v9 = vsel %vm2499_vm10, %v2497_v24, 0.0 }
0x1511   :  { %2501 = vadd.xlane.f32.xlu0 %v2500_v9 }
0x1523   :  { %v2080_v27 = vpop.f32.mrf.mxu0 }
0x1526   :  { %v1890_v34 = vpop.f32.mrf.mxu3 }
0x1527   :  { %v1891_v51 = vadd.f32 %v2926_v35, %v1890_v34 }
0x1529   :  { %v1894_v48 = vand.u32 2147483647, %v1891_v51  ;;  %v1893_v49 = vmax.f32 %v1891_v51, 0.0 }
0x152b   :  { %v1895_v38 = vsub.f32 0.0, %v1894_v48 }
0x152d   :  { %v1896_v44 = vmul.f32 1.442695, %v1895_v38 }
0x152e   :  { %v2015_v10 = vpop.f32.mrf.mxu3 }
0x152f   :  { %2888 = vpow2.f32 %v1896_v44 }
0x1535   :  { %v2889_v11 = vpop.eup %2888 }
0x1536   :  { %v1898_v5 = vadd.f32 1.0, %v2889_v11  ;;  %v2127_v13 = vpop.f32.mrf.mxu3 }
0x1538   :  { %2890 = vlog2.f32 %v1898_v5 }
0x153e   :  { %v2891_v46 = vpop.eup %2890 }
0x153f   :  { %v1900_v47 = vmul.f32 0.6931472, %v2891_v46 }
0x1541   :  { %v1901_v50 = vadd.f32 %v1900_v47, %v1893_v49 }
0x1543   :  { %2712 = vmatmul.msk.f32.vlgmr.msrb.gmra.mxu1 %vm161_vm2, %v1901_v50  ;;  %vm2512_vm2 = vcmask 0  }
0x1544   :  { %2236 = vmatpush.msrb.mxu1 %v3851_v16 }
0x1546   :  { %2237 = vmatpush.msrb.mxu1 %v3857_v36  ;;  %v2103_v36 = vpop.f32.mrf.mxu2 }
0x154e   :  { %v2192_v35 = vpop.f32.mrf.mxu2 }
0x1584   :  { %v2502_v4 = vpop.xlane.xlu0 %2501 }
0x1585   :  { %v2503_v52 = vrot.slane %v2502_v4, 4 }
0x1587   :  { %v2504_v25 = vadd.f32 %v2503_v52, %v2502_v4 }
0x1589   :  { %v2505_v37 = vrot.slane %v2504_v25, 2 }
0x158b   :  { %v2506_v54 = vadd.f32 %v2505_v37, %v2504_v25 }
0x158d   :  { %v2507_v24 = vrot.slane %v2506_v54, 1 }
0x158f   :  { %v2508_v9 = vadd.f32 %v2507_v24, %v2506_v54 }
0x1591   :  { %2758 = vpush %v2508_v9 }
0x15c0   :  { %v3951_v63 = vpop.f32.mrf.mxu1 }
0x15c1   :  { %v1969_v29 = vadd.f32 %v1968_v62, %v3951_v63  ;;  %v2081_v16 = vadd.f32 %v2080_v27, %v3951_v63 }
0x15c2   :  { %s2759_s4 = spop %2758 }
0x15c3   :  { %v1994_v42 = vadd.f32 %v1991_v22, %v1969_v29  ;;  %v2106_v43 = vadd.f32 %v2103_v36, %v2081_v16  ;;  %v2510_v55 = vstv %s2759_s4 }
0x15c4   :  { %v2511_v3 = vmul.f32 0.015625, %v2510_v55 }
0x15c5   :  { %v2018_v41 = vadd.f32 %v2015_v10, %v1994_v42  ;;  %v2130_v6 = vadd.f32 %v2127_v13, %v2106_v43  ;;  %v2750_v10 = vld [vmem:[%s4089_s26 + $0xe] sm:$0x3]  ;;  %s2559_s26 = sshll.u32 %s3222_s12, 4  ;;  %s2560_s26 = int_to_ptr.hbm [resolvable:$true] %s2559_s26 }
0x15c6   :  { %2513 = vst.msk [vmem:[#allocation5] sm:$0x1] %vm2512_vm2, %v2511_v3 }
0x15c7   :  { %v2131_v15 = vadd.f32 %v3957_v7, %v2130_v6  ;;  %v2019_v8 = vadd.f32 %v3957_v7, %v2018_v41 }
0x15c9   :  { %v2132_v12 = vmax.f32 %v2131_v15, 0.0  ;;  %v2020_v53 = vmax.f32 %v2019_v8, 0.0 }
0x15cb   :  { %2717 = vmatmul.msk.f32.vlgmr.msra.gmra.mxu1 %vm475_vm5, %v2020_v53  ;;  %2727 = vmatmul.msk.f32.vlgmr.msrb.gmra.mxu0 %vm475_vm5, %v2132_v12 }
0x15cc   :  { %2325 = vmatpush.msra.mxu1 %v3782_v19  ;;  %2437 = vmatpush.msrb.mxu0 %v3782_v19  ;;  %v2394_v19 = vmul.f32 %v2749_v31, %v2393_v26 }
0x15ce   :  { %v2395_v34 = vadd.f32 %v2394_v19, %v2392_v33 }
0x15d3   :  { %2736 = vmatmul.msk.f32.vlgmr.msrb.gmra.mxu1 %vm432_vm4, %v2730_v30  ;;  %2746 = vmatmul.msk.f32.vlgmr.msra.gmra.mxu0 %vm432_vm4, %v2740_v17 }
0x15d4   :  { %2753 = vmatpush.msk.msrb.mxu1 %vm194_vm0, %v3775_v0  ;;  %v3987_v0 = vld [vmem:[%s4120_s18] ss:$0 sm:$0xff]  ;;  %vm2514_vm0 = vcmask 25600  }
0x15db   :  { %2745 = vmatmul.msk.f32.vlgmr.msra.gmra.mxu1 %vm405_vm3, %v2738_v1  ;;  %2755 = vmatmul.msk.f32.vlgmr.msrb.gmra.mxu0 %vm405_vm3, %v2748_v28 }
0x15dc   :  { %2480 = vmatpush.msra.mxu1 %v3806_v2  ;;  %v1028_v2 = vadd.f32 %v3987_v0, %v3711_v23  ;;  %v2215_v23 = vpop.f32.mrf.mxu3 }
0x15de   :  { %2481 = vmatpush.msra.mxu1 %v3810_v21  ;;  %v497_v21 = vadd.f32 %v3987_v0, %v3585_v39  ;;  %v2193_v39 = vadd.f32 %v2192_v35, %v3951_v63 }
0x15e0   :  { %2482 = vmatpush.msra.mxu1 %v3814_v32  ;;  %v1535_v32 = vadd.f32 %v3987_v0, %v3863_v45  ;;  %v2218_v46 = vadd.f32 %v2215_v23, %v2193_v39 }
0x15e2   :  { %2483 = vmatpush.msra.mxu1 %v3818_v20  ;;  %v1030_v20 = vsub.f32 %v1028_v2, %v3908_v56 }
0x15e3   :  { %2754 = vmatmul.msk.f32.vlgmr.msrb.gmra.mxu1 %vm190_vm1, %v2395_v34 }
0x15e4   :  { %2484 = vmatpush.msra.mxu1 %v3822_v18  ;;  %v499_v18 = vsub.f32 %v497_v21, %v3926_v58  ;;  %v2304_v25 = vpop.f32.mrf.mxu3  ;;  %v2928_v21 = vld [vmem:[%s3067_s5 + $0x4] sm:$0x3]  ;;  %s2953_s5 = sshra.s32 %s2560_s26, 4  ;;  %s2954_s5 = int_to_ptr.hbm [resolvable:$true] %s2953_s5 }
0x15e5   :  { %v2305_v54 = vadd.f32 %v2304_v25, %v3951_v63  ;;  %s2955_s28 = scalar_lea.hbm %s2954_s5, 1  ;;  %p2958_p6 = scmp.lt.s32.totalorder %s2954_s5, %s3222_s12 }
0x15e6   :  { %2485 = vmatpush.msra.mxu1 %v3826_v57  ;;  %v1537_v57 = vsub.f32 %v1535_v32, %v3670_v14  ;;  %v500_v51 = vmul.f32 %v499_v18, %v499_v18  ;;  %p2956_p5 = scmp.ne.s32.totalorder %s2954_s5, %s2955_s28  ;;  %p2959_p7 = scmp.lt.s32.totalorder %s2957_s7, %s2955_s28 }
0x15e8   :  { %2486 = vmatpush.msra.mxu1 %v3830_v59  ;;  %v1031_v59 = vmul.f32 %v1030_v20, %v1030_v20  ;;  %v1538_v48 = vmul.f32 %v1537_v57, %v1537_v57  ;;  %p2960_p8 = por %p2959_p7, %p2958_p6 }
0x15ea   :  { %2487 = vmatpush.msra.mxu1 %v3834_v61  ;;  %v1032_v44 = vadd.f32 %v1031_v59, %v500_v51  ;;  %p2961_p9 = pnand %p2960_p8, %p2956_p5 }
0x15ec   :  { %v1539_v5 = vadd.f32 %v1538_v48, %v1032_v44 }
0x1648   :  { %v2041_v61 = vpop.f32.mrf.mxu1  ;;  %v2153_v14 = vpop.f32.mrf.mxu0 }
0x1649   :  { %v2042_v38 = vadd.f32 %v3987_v0, %v2041_v61  ;;  %v2154_v41 = vadd.f32 %v3987_v0, %v2153_v14 }
0x164b   :  { %v2044_v11 = vsub.f32 %v2042_v38, %v3801_v40  ;;  %v2156_v8 = vsub.f32 %v2154_v41, %v3926_v58 }
0x164d   :  { %v2045_v45 = vmul.f32 %v2044_v11, %v2044_v11  ;;  %v2157_v60 = vmul.f32 %v2156_v8, %v2156_v8 }
0x164f   :  { %v2046_v49 = vadd.f32 %v2045_v45, %v1539_v5 }
0x1650   :  { %v2239_v47 = vpop.f32.mrf.mxu1  ;;  %v2351_v9 = vpop.f32.mrf.mxu0 }
0x1651   :  { %v2242_v50 = vadd.f32 %v2239_v47, %v2218_v46  ;;  %v2515_v4 = vsel %vm2514_vm0, %v2046_v49, 0.0 }
0x1652   :  { %2516 = vadd.xlane.f32.xlu1 %v2515_v4 }
0x1653   :  { %v2243_v52 = vadd.f32 %v3957_v7, %v2242_v50 }
0x1655   :  { %v2244_v37 = vmax.f32 %v2243_v52, 0.0 }
0x1657   :  { %2737 = vmatmul.msk.f32.vlgmr.msrb.gmra.mxu2 %vm475_vm5, %v2244_v37 }
0x1658   :  { %v2327_v24 = vpop.f32.mrf.mxu1  ;;  %v2439_v17 = vpop.f32.mrf.mxu0 }
0x1659   :  { %v2330_v62 = vadd.f32 %v2327_v24, %v2305_v54 }
0x165b   :  { %v2354_v22 = vadd.f32 %v2351_v9, %v2330_v62 }
0x165d   :  { %v2355_v27 = vadd.f32 %v3957_v7, %v2354_v22 }
0x165f   :  { %v2356_v29 = vmax.f32 %v2355_v27, 0.0  ;;  %2756 = vmatmul.msk.f32.vlgmr.msra.gmra.mxu2 %vm432_vm4, %v2750_v10 }
0x1660   :  { %v2416_v6 = vpop.f32.mrf.mxu1 }
0x1661   :  { %2747 = vmatmul.msk.f32.vlgmr.msrb.gmra.mxu3 %vm475_vm5, %v2356_v29  ;;  %v2417_v53 = vadd.f32 %v2416_v6, %v3951_v63 }
0x1663   :  { %v2442_v31 = vadd.f32 %v2439_v17, %v2417_v53 }
0x16c5   :  { %v2517_v16 = vpop.xlane.xlu1 %2516 }
0x16c6   :  { %v2518_v36 = vrot.slane %v2517_v16, 4 }
0x16c8   :  { %v2519_v42 = vadd.f32 %v2518_v36, %v2517_v16 }
0x16ca   :  { %v2520_v43 = vrot.slane %v2519_v42, 2 }
0x16cc   :  { %v2521_v55 = vadd.f32 %v2520_v43, %v2519_v42 }
0x16ce   :  { %v2522_v13 = vrot.slane %v2521_v55, 1 }
0x16d0   :  { %v2523_v3 = vadd.f32 %v2522_v13, %v2521_v55 }
0x16d2   :  { %2760 = vpush %v2523_v3 }
0x16da   :  { %v2265_v15 = vpop.f32.mrf.mxu2 }
0x16db   :  { %v2266_v12 = vadd.f32 %v3987_v0, %v2265_v15 }
0x16dd   :  { %v2268_v30 = vsub.f32 %v2266_v12, %v3908_v56 }
0x16df   :  { %v2269_v1 = vmul.f32 %v2268_v30, %v2268_v30 }
0x16e1   :  { %v2270_v26 = vadd.f32 %v2269_v1, %v2157_v60 }
0x16e2   :  { %v2463_v28 = vpop.f32.mrf.mxu2 }
0x16e3   :  { %v2466_v33 = vadd.f32 %v2463_v28, %v2442_v31 }
0x16e4   :  { %v2377_v56 = vpop.f32.mrf.mxu3 }
0x16e5   :  { %v2467_v19 = vadd.f32 %v3957_v7, %v2466_v33  ;;  %v2378_v63 = vadd.f32 %v3987_v0, %v2377_v56 }
0x16e7   :  { %v2468_v34 = vmax.f32 %v2467_v19, 0.0  ;;  %v2380_v32 = vsub.f32 %v2378_v63, %v2928_v21 }
0x16e9   :  { %2757 = vmatmul.msk.f32.vlgmr.msra.gmra.mxu1 %vm475_vm5, %v2468_v34  ;;  %v2381_v18 = vmul.f32 %v2380_v32, %v2380_v32 }
0x16eb   :  { %v2382_v35 = vadd.f32 %v2381_v18, %v2270_v26 }
0x1703   :  { %s2761_s9 = spop %2760 }
0x1704   :  { %v2525_v58 = vstv %s2761_s9 }
0x1705   :  { %v2526_v2 = vmul.f32 0.125, %v2525_v58 }
0x1707   :  { %2527 = vst.msk [vmem:[#allocation6] sm:$0x1] %vm2512_vm2, %v2526_v2 }
0x1766   :  { %v2489_v20 = vpop.f32.mrf.mxu1 }
0x1767   :  { %v2490_v57 = vadd.f32 %v3987_v0, %v2489_v20 }
0x1769   :  { %v2492_v7 = vsub.f32 %v2490_v57, %v3801_v40 }
0x176b   :  { %v2493_v59 = vmul.f32 %v2492_v7, %v2492_v7 }
0x176d   :  { %v2494_v61 = vadd.f32 %v2493_v59, %v2382_v35 }
0x176f   :  { %v2528_v51 = vsel %vm2514_vm0, %v2494_v61, 0.0 }
0x1770   :  { %2529 = vadd.xlane.f32.xlu2 %v2528_v51 }
0x1771   :  { %2964 = shalt.err (!%p2961_p9)
}
0x1772   :  { %2562 = dma.vmem_to_hbm [thread:$0]  %s2558_s22, 16, %s2560_s26, [#allocation7]  }
0x1773   :  { %s2548_s0 = sshll.u32 %s3217_s14, 4  ;;  %s3057_s15 = smov [#allocation5]   ;;  %s2549_s0 = int_to_ptr.hbm [resolvable:$true] %s2548_s0 }
0x1774   :  { %s2546_s16 = sshll.u32 %s3057_s15, 4  ;;  %s2977_s23 = sshra.s32 %s2549_s0, 4  ;;  %s2547_s16 = int_to_ptr.vmem [resolvable:$true] %s2546_s16  ;;  %s2978_s23 = int_to_ptr.hbm [resolvable:$true] %s2977_s23 }
0x1775   :  { %s2979_s27 = scalar_lea.hbm %s2978_s23, 1  ;;  %s2981_s1 = scalar_lea.hbm %s3217_s14, 1 }
0x1776   :  { %p2980_p10 = scmp.ne.s32.totalorder %s2978_s23, %s2979_s27  ;;  %p2982_p11 = scmp.lt.s32.totalorder %s2978_s23, %s3217_s14 }
0x1777   :  { %p2983_p12 = scmp.lt.s32.totalorder %s2981_s1, %s2979_s27 }
0x1779   :  { %p2984_p13 = por %p2983_p12, %p2982_p11 }
0x177b   :  { %p2985_p0 = pnand %p2984_p13, %p2980_p10 }
0x177d   :  { %2988 = shalt.err (!%p2985_p0)
}
0x177e   :  { %2551 = dma.vmem_to_hbm [thread:$0]  %s2547_s16, 16, %s2549_s0, [#allocation3]  }
0x177f   :  { %s3058_s12 = smov [#allocation8]   ;;  %s2570_s11 = sshll.u32 %s3227_s21, 4  ;;  %s2571_s11 = int_to_ptr.hbm [resolvable:$true] %s2570_s11 }
0x1780   :  { %s2568_s2 = sshll.u32 %s3058_s12, 4  ;;  %s3001_s29 = sshra.s32 %s2571_s11, 4  ;;  %s2569_s2 = int_to_ptr.vmem [resolvable:$true] %s2568_s2  ;;  %s3002_s29 = int_to_ptr.hbm [resolvable:$true] %s3001_s29 }
0x1781   :  { %s3003_s13 = scalar_lea.hbm %s3002_s29, 1  ;;  %s3005_s3 = scalar_lea.hbm %s3227_s21, 1 }
0x1782   :  { %p3004_p1 = scmp.ne.s32.totalorder %s3002_s29, %s3003_s13  ;;  %p3006_p2 = scmp.lt.s32.totalorder %s3002_s29, %s3227_s21 }
0x1783   :  { %p3007_p3 = scmp.lt.s32.totalorder %s3005_s3, %s3003_s13 }
0x1785   :  { %p3008_p4 = por %p3007_p3, %p3006_p2 }
0x1787   :  { %p3009_p5 = pnand %p3008_p4, %p3004_p1 }
0x17e3   :  { %v2530_v40 = vpop.xlane.xlu2 %2529 }
0x17e4   :  { %v2531_v0 = vrot.slane %v2530_v40, 4 }
0x17e6   :  { %v2532_v48 = vadd.f32 %v2531_v0, %v2530_v40 }
0x17e8   :  { %v2533_v38 = vrot.slane %v2532_v48, 2 }
0x17ea   :  { %v2534_v23 = vadd.f32 %v2533_v38, %v2532_v48 }
0x17ec   :  { %v2535_v44 = vrot.slane %v2534_v23, 1 }
0x17ee   :  { %v2536_v39 = vadd.f32 %v2535_v44, %v2534_v23 }
0x17f0   :  { %2762 = vpush %v2536_v39 }
0x1821   :  { %s2763_s14 = spop %2762 }
0x1822   :  { %v2538_v11 = vstv %s2763_s14 }
0x1823   :  { %v2539_v45 = vmul.f32 0.125, %v2538_v11 }
0x1825   :  { %2540 = vst.msk [vmem:[#allocation8] sm:$0x1] %vm2512_vm2, %v2539_v45 }
0x1826   :  { %3012 = shalt.err (!%p3009_p5)
}
0x1827   :  { %2573 = dma.vmem_to_hbm [thread:$0]  %s2569_s2, 16, %s2571_s11, [#allocation7]  }
0x1828   :  { %3015 = dma.done.wait [#allocation3], 16  }
0x1829   :  { %3016 = vsyncadd [#allocation3], 4294967280 }
0x182a   :  { %3017 = dma.done.wait [#allocation7], 32  }
0x182b   :  { %3018 = vsyncadd [#allocation7], 4294967264 }
0x182c   :  { %2586 = vsyncpa [#allocation3], 1 }
0x182d   :  { %2587 = vsyncpa [#allocation7], 1 }
0x182e   :  { %2588 = vsyncpa [#allocation4], 1 }

</bundles_post_ra>
